<compile_context>
chip_gen: v6e
topology: v6e:2x2x1
jax: 0.10.0
libtpu: 0.0.40
codegen_flags: <defaults>
</compile_context>

<pallas_src>
import math
from functools import partial

import jax
import jax.numpy as jnp
from jax import lax
from jax.experimental import pallas as pl
from jax.experimental.pallas import tpu as pltpu

# ----------------------- small config (consistent with the module) ------------
IMG = 16             # img_size (scaled down)
PATCH = 4            # patch_size
IN_CH = 3            # in_chans
EMBED = 128          # embed_dim (scaled down)
DEPTH = 2            # number of transformer layers (scaled down)
HEADS = 4            # num_heads (scaled down)
FF = 256             # dim_feedforward (scaled down from PyTorch default 2048)
NUM_CLASSES = 12     # len(CLASS_VALUES)

N_PATCH = (IMG // PATCH) ** 2        # 16 patch tokens
SEQ = N_PATCH + 1                    # +1 cls token = 17
SEQ_PAD = 24                         # padded to a multiple of 8 sublanes
HEAD_DIM = EMBED // HEADS            # 32
K_PATCH = IN_CH * PATCH * PATCH      # flattened patch length = 48
HEAD_PAD = 128                       # lane-dense head output width
LN_EPS = 1e-5
NEG_INF = -1e30


# --------------------------------- kernel -------------------------------------
def _layernorm(x, gamma, beta):
    mu = jnp.mean(x, axis=-1, keepdims=True)
    var = jnp.mean((x - mu) * (x - mu), axis=-1, keepdims=True)
    return (x - mu) * lax.rsqrt(var + LN_EPS) * gamma + beta


def vit_fused_kernel(
    patches_ref,                      # (B*N_PATCH, K_PATCH) f32
    cls_ref,                          # (1, E) f32
    pos_ref,                          # (SEQ_PAD, E) f32 (pad rows zero)
    pw_ref,                           # (K_PATCH, E) bf16
    pb_ref,                           # (1, E) f32
    wqkv_ref,                         # (DEPTH, E, 3E) bf16
    bqkv_ref,                         # (DEPTH, 3E) f32
    wo_ref,                           # (DEPTH, E, E) bf16
    bo_ref,                           # (DEPTH, E) f32
    ln1g_ref, ln1b_ref,               # (DEPTH, E) f32
    w1_ref,                           # (DEPTH, E, FF) bf16
    b1_ref,                           # (DEPTH, FF) f32
    w2_ref,                           # (DEPTH, FF, E) bf16
    b2_ref,                           # (DEPTH, E) f32
    ln2g_ref, ln2b_ref,               # (DEPTH, E) f32
    ng_ref, nb_ref,                   # (1, E) f32
    hw_ref,                           # (E, HEAD_PAD) bf16
    hb_ref,                           # (1, HEAD_PAD) f32
    o_ref,                            # (B, HEAD_PAD) f32
    *, batch,
):
    # ---- patch embedding (Conv2d kernel==stride  ->  one matmul) --------------
    tokens = (
        jnp.dot(patches_ref[...].astype(jnp.bfloat16), pw_ref[...],
                preferred_element_type=jnp.float32)
        + pb_ref[0]
    )                                                         # (B*N_PATCH, E)

    # ---- build padded token sequence: [cls | patches | zero-pad] + pos --------
    cls = cls_ref[...]                                        # (1, E)
    pos = pos_ref[...]                                        # (SEQ_PAD, E)
    pad = jnp.zeros((SEQ_PAD - SEQ, EMBED), jnp.float32)
    rows = []
    for b in range(batch):                                    # static unroll
        tb = tokens[b * N_PATCH:(b + 1) * N_PATCH, :]         # (N_PATCH, E)
        rows.append(jnp.concatenate([cls, tb, pad], axis=0) + pos)
    x = jnp.concatenate(rows, axis=0)                         # (B*SEQ_PAD, E)

    # additive mask for padded key columns (same for every layer / sample)
    col = lax.broadcasted_iota(jnp.int32, (SEQ_PAD, SEQ_PAD), 1)
    mask_bias = jnp.where(col < SEQ, 0.0, NEG_INF).astype(jnp.float32)

    scale = 1.0 / math.sqrt(HEAD_DIM)

    # ---- transformer encoder layers (post-norm, relu FFN) ---------------------
    for d in range(DEPTH):                                    # static unroll
        wqkv = wqkv_ref[d]                                    # (E, 3E) bf16
        wo = wo_ref[d]                                        # (E, E)  bf16

        qkv = (
            jnp.dot(x.astype(jnp.bfloat16), wqkv,
                    preferred_element_type=jnp.float32)
            + bqkv_ref[d]
        )                                                     # (B*SP, 3E) f32

        attn_blocks = []
        for b in range(batch):
            r0 = b * SEQ_PAD
            qkv_b = qkv[r0:r0 + SEQ_PAD, :]                   # (SP, 3E)
            acc = jnp.zeros((SEQ_PAD, EMBED), jnp.float32)
            for h in range(HEADS):
                c0 = h * HEAD_DIM
                qh = qkv_b[:, c0:c0 + HEAD_DIM]
                kh = qkv_b[:, EMBED + c0:EMBED + c0 + HEAD_DIM]
                vh = qkv_b[:, 2 * EMBED + c0:2 * EMBED + c0 + HEAD_DIM]

                s = jnp.dot(qh.astype(jnp.bfloat16),
                            kh.astype(jnp.bfloat16).T,
                            preferred_element_type=jnp.float32) * scale
                s = s + mask_bias
                s = s - jnp.max(s, axis=-1, keepdims=True)
                p = jnp.exp(s)
                inv = pl.reciprocal(jnp.sum(p, axis=-1, keepdims=True),
                                    approx=True)
                a = p * inv                                   # (SP, SP) f32

                ctx_h = jnp.dot(a.astype(jnp.bfloat16),
                                vh.astype(jnp.bfloat16),
                                preferred_element_type=jnp.float32)  # (SP, Dh)
                # fold the per-head slice of the output projection in here:
                acc = acc + jnp.dot(ctx_h.astype(jnp.bfloat16),
                                    wo[c0:c0 + HEAD_DIM, :],
                                    preferred_element_type=jnp.float32)
            attn_blocks.append(acc)
        attn_out = jnp.concatenate(attn_blocks, axis=0) + bo_ref[d]   # (B*SP, E)

        # add & norm 1
        h1 = _layernorm(x + attn_out, ln1g_ref[d], ln1b_ref[d])

        # feed-forward (relu)
        ff = (
            jnp.dot(h1.astype(jnp.bfloat16), w1_ref[d],
                    preferred_element_type=jnp.float32)
            + b1_ref[d]
        )
        ff = jnp.maximum(ff, 0.0)
        ff = (
            jnp.dot(ff.astype(jnp.bfloat16), w2_ref[d],
                    preferred_element_type=jnp.float32)
            + b2_ref[d]
        )

        # add & norm 2
        x = _layernorm(h1 + ff, ln2g_ref[d], ln2b_ref[d])

    # ---- final LayerNorm on cls tokens + classification head ------------------
    cls_rows = jnp.concatenate(
        [x[b * SEQ_PAD:b * SEQ_PAD + 1, :] for b in range(batch)], axis=0
    )                                                         # (B, E)
    cls_n = _layernorm(cls_rows, ng_ref[0], nb_ref[0])
    o_ref[...] = (
        jnp.dot(cls_n.astype(jnp.bfloat16), hw_ref[...],
                preferred_element_type=jnp.float32)
        + hb_ref[0]
    )                                                         # (B, HEAD_PAD)


# ------------------------------ pallas wrapper ---------------------------------
def vit_forward(x, params):
    # x: (B, C, H, W) NCHW float32
    B = x.shape[0]

    # Conv2d(kernel=stride=patch) == gather non-overlapping patches + matmul.
    # Patch vector ordering is (c, ph, pw) to match Conv2d weight (E, C, ph, pw).
    xp = x.reshape(B, IN_CH, IMG // PATCH, PATCH, IMG // PATCH, PATCH)
    xp = xp.transpose(0, 2, 4, 1, 3, 5)                       # B, H', W', C, ph, pw
    patches = xp.reshape(B * N_PATCH, K_PATCH)

    args = (
        patches,
        params["cls_token"], params["pos_embed_pad"],
        params["patch_w"], params["patch_b"],
        params["wqkv"], params["bqkv"], params["wo"], params["bo"],
        params["ln1_g"], params["ln1_b"],
        params["w1"], params["b1"], params["w2"], params["b2"],
        params["ln2_g"], params["ln2_b"],
        params["norm_g"], params["norm_b"],
        params["head_w_pad"], params["head_b_pad"],
    )

    vmem = pltpu.MemorySpace.VMEM
    out = pl.pallas_call(
        partial(vit_fused_kernel, batch=B),
        out_shape=jax.ShapeDtypeStruct((B, HEAD_PAD), jnp.float32),
        in_specs=[pl.BlockSpec(memory_space=vmem) for _ in args],
        out_specs=pl.BlockSpec(memory_space=vmem),
    )(*args)

    return out[:, :NUM_CLASSES]                               # (B, NUM_CLASSES)


# -------------------------------- parameters -----------------------------------
def init_params(key):
    ks = jax.random.split(key, 5)
    p = {}

    # Conv2d(in_chans, embed, kernel=stride=patch) -> matmul weight (K, E), bf16
    p["patch_w"] = (0.02 * jax.random.normal(ks[0], (K_PATCH, EMBED),
                                             jnp.float32)).astype(jnp.bfloat16)
    p["patch_b"] = jnp.zeros((1, EMBED), jnp.float32)
    p["cls_token"] = 0.02 * jax.random.normal(ks[1], (1, EMBED), jnp.float32)

    pos = 0.02 * jax.random.normal(ks[2], (SEQ, EMBED), jnp.float32)
    p["pos_embed_pad"] = jnp.pad(pos, ((0, SEQ_PAD - SEQ), (0, 0)))

    p["norm_g"] = jnp.ones((1, EMBED), jnp.float32)
    p["norm_b"] = jnp.zeros((1, EMBED), jnp.float32)

    hw = 0.02 * jax.random.normal(ks[3], (EMBED, NUM_CLASSES), jnp.float32)
    p["head_w_pad"] = jnp.pad(
        hw, ((0, 0), (0, HEAD_PAD - NUM_CLASSES))).astype(jnp.bfloat16)
    p["head_b_pad"] = jnp.zeros((1, HEAD_PAD), jnp.float32)

    # per-layer weights, stacked along a leading DEPTH axis, bf16 for the MXU
    lks = jax.random.split(ks[4], DEPTH)
    wqkv, wo, w1, w2 = [], [], [], []
    for d in range(DEPTH):
        k0, k1, k2, k3 = jax.random.split(lks[d], 4)
        wqkv.append(0.02 * jax.random.normal(k0, (EMBED, 3 * EMBED), jnp.float32))
        wo.append(0.02 * jax.random.normal(k1, (EMBED, EMBED), jnp.float32))
        w1.append(0.02 * jax.random.normal(k2, (EMBED, FF), jnp.float32))
        w2.append(0.02 * jax.random.normal(k3, (FF, EMBED), jnp.float32))
    p["wqkv"] = jnp.stack(wqkv).astype(jnp.bfloat16)          # (D, E, 3E)
    p["wo"] = jnp.stack(wo).astype(jnp.bfloat16)              # (D, E, E)
    p["w1"] = jnp.stack(w1).astype(jnp.bfloat16)              # (D, E, FF)
    p["w2"] = jnp.stack(w2).astype(jnp.bfloat16)              # (D, FF, E)
    p["bqkv"] = jnp.zeros((DEPTH, 3 * EMBED), jnp.float32)
    p["bo"] = jnp.zeros((DEPTH, EMBED), jnp.float32)
    p["b1"] = jnp.zeros((DEPTH, FF), jnp.float32)
    p["b2"] = jnp.zeros((DEPTH, EMBED), jnp.float32)
    p["ln1_g"] = jnp.ones((DEPTH, EMBED), jnp.float32)
    p["ln1_b"] = jnp.zeros((DEPTH, EMBED), jnp.float32)
    p["ln2_g"] = jnp.ones((DEPTH, EMBED), jnp.float32)
    p["ln2_b"] = jnp.zeros((DEPTH, EMBED), jnp.float32)
    return p


# ----------------------------------- main ---------------------------------------
if __name__ == "__main__":
    key = jax.random.PRNGKey(0)
    pkey, xkey = jax.random.split(key)
    params = init_params(pkey)

    B = 2
    x = jax.random.normal(xkey, (B, IN_CH, IMG, IMG), jnp.float32)

    logits = jax.jit(vit_forward)(x, params)
    logits = jax.block_until_ready(logits)

    assert logits.shape == (B, NUM_CLASSES), logits.shape
    assert bool(jnp.all(jnp.isfinite(logits)))
    print("KERNEL_OK")
</pallas_src>

<mosaic_0001>
module attributes {stable_mosaic.version = 11 : i64} {
  func.func @vit_fused_kernel(%arg0: memref<32x48xf32, #tpu.memory_space<vmem>>, %arg1: memref<1x128xf32, #tpu.memory_space<vmem>>, %arg2: memref<24x128xf32, #tpu.memory_space<vmem>>, %arg3: memref<48x128xbf16, #tpu.memory_space<vmem>>, %arg4: memref<1x128xf32, #tpu.memory_space<vmem>>, %arg5: memref<2x128x384xbf16, #tpu.memory_space<vmem>>, %arg6: memref<2x384xf32, #tpu.memory_space<vmem>>, %arg7: memref<2x128x128xbf16, #tpu.memory_space<vmem>>, %arg8: memref<2x128xf32, #tpu.memory_space<vmem>>, %arg9: memref<2x128xf32, #tpu.memory_space<vmem>>, %arg10: memref<2x128xf32, #tpu.memory_space<vmem>>, %arg11: memref<2x128x256xbf16, #tpu.memory_space<vmem>>, %arg12: memref<2x256xf32, #tpu.memory_space<vmem>>, %arg13: memref<2x256x128xbf16, #tpu.memory_space<vmem>>, %arg14: memref<2x128xf32, #tpu.memory_space<vmem>>, %arg15: memref<2x128xf32, #tpu.memory_space<vmem>>, %arg16: memref<2x128xf32, #tpu.memory_space<vmem>>, %arg17: memref<1x128xf32, #tpu.memory_space<vmem>>, %arg18: memref<1x128xf32, #tpu.memory_space<vmem>>, %arg19: memref<128x128xbf16, #tpu.memory_space<vmem>>, %arg20: memref<1x128xf32, #tpu.memory_space<vmem>>, %arg21: memref<2x128xf32, #tpu.memory_space<vmem>>) attributes {dimension_semantics = [], scalar_prefetch = 0 : i64, scratch_operands = 0 : i64, tpu.core_type = #tpu.core_type<tc>} {
    %c0 = arith.constant 0 : index
    %c0_0 = arith.constant 0 : index
    %0 = vector.load %arg0[%c0, %c0_0] : memref<32x48xf32, #tpu.memory_space<vmem>>, vector<32x48xf32>
    %1 = arith.truncf %0 : vector<32x48xf32> to vector<32x48xbf16>
    %c0_1 = arith.constant 0 : index
    %c0_2 = arith.constant 0 : index
    %2 = vector.load %arg3[%c0_1, %c0_2] : memref<48x128xbf16, #tpu.memory_space<vmem>>, vector<48x128xbf16>
    %cst = arith.constant dense<0.000000e+00> : vector<32x128xf32>
    %3 = tpu.matmul %1, %2, %cst {dimension_numbers = #tpu.dot_dimension_numbers<[1], [0], [0], [1], [0, 0, 1, 1], [], []>} : vector<32x48xbf16>, vector<48x128xbf16>, vector<32x128xf32> -> vector<32x128xf32>
    %c0_3 = arith.constant 0 : index
    %c0_4 = arith.constant 0 : index
    %4 = vector.load %arg4[%c0_3, %c0_4] : memref<1x128xf32, #tpu.memory_space<vmem>>, vector<1x128xf32>
    %5 = vector.shape_cast %4 : vector<1x128xf32> to vector<128xf32>
    %6 = vector.shape_cast %5 : vector<128xf32> to vector<1x128xf32>
    %7 = vector.broadcast %6 : vector<1x128xf32> to vector<32x128xf32>
    %8 = arith.addf %3, %7 : vector<32x128xf32>
    %c0_5 = arith.constant 0 : index
    %c0_6 = arith.constant 0 : index
    %9 = vector.load %arg1[%c0_5, %c0_6] : memref<1x128xf32, #tpu.memory_space<vmem>>, vector<1x128xf32>
    %c0_7 = arith.constant 0 : index
    %c0_8 = arith.constant 0 : index
    %10 = vector.load %arg2[%c0_7, %c0_8] : memref<24x128xf32, #tpu.memory_space<vmem>>, vector<24x128xf32>
    %cst_9 = arith.constant 0.000000e+00 : f32
    %11 = vector.broadcast %cst_9 : f32 to vector<7x128xf32>
    %12 = vector.extract_strided_slice %8 {offsets = [0, 0], sizes = [16, 128], strides = [1, 1]} : vector<32x128xf32> to vector<16x128xf32>
    %13 = tpu.concatenate %9, %12, %11 in 0 : vector<1x128xf32>, vector<16x128xf32>, vector<7x128xf32> -> vector<24x128xf32>
    %14 = arith.addf %13, %10 : vector<24x128xf32>
    %15 = vector.extract_strided_slice %8 {offsets = [16, 0], sizes = [16, 128], strides = [1, 1]} : vector<32x128xf32> to vector<16x128xf32>
    %16 = tpu.concatenate %9, %15, %11 in 0 : vector<1x128xf32>, vector<16x128xf32>, vector<7x128xf32> -> vector<24x128xf32>
    %17 = arith.addf %16, %10 : vector<24x128xf32>
    %18 = tpu.concatenate %14, %17 in 0 : vector<24x128xf32>, vector<24x128xf32> -> vector<48x128xf32>
    %19 = tpu.iota {dimensions = array<i32: 1>} : vector<24x24xi32>
    %c17_i32 = arith.constant 17 : i32
    %20 = vector.broadcast %c17_i32 : i32 to vector<24x24xi32>
    %21 = arith.cmpi slt, %19, %20 : vector<24x24xi32>
    %cst_10 = arith.constant 0.000000e+00 : f32
    %cst_11 = arith.constant -1.000000e+30 : f32
    %22 = vector.broadcast %cst_10 : f32 to vector<24x24xf32>
    %23 = vector.broadcast %cst_11 : f32 to vector<24x24xf32>
    %24 = arith.select %21, %22, %23 : vector<24x24xi1>, vector<24x24xf32>
    %c0_12 = arith.constant 0 : index
    %c0_13 = arith.constant 0 : index
    %c0_14 = arith.constant 0 : index
    %25 = vector.load %arg5[%c0_12, %c0_13, %c0_14] : memref<2x128x384xbf16, #tpu.memory_space<vmem>>, vector<1x128x384xbf16>
    %26 = vector.shape_cast %25 : vector<1x128x384xbf16> to vector<128x384xbf16>
    %c0_15 = arith.constant 0 : index
    %c0_16 = arith.constant 0 : index
    %c0_17 = arith.constant 0 : index
    %27 = vector.load %arg7[%c0_15, %c0_16, %c0_17] : memref<2x128x128xbf16, #tpu.memory_space<vmem>>, vector<1x128x128xbf16>
    %28 = vector.shape_cast %27 : vector<1x128x128xbf16> to vector<128x128xbf16>
    %29 = arith.truncf %18 : vector<48x128xf32> to vector<48x128xbf16>
    %cst_18 = arith.constant dense<0.000000e+00> : vector<48x384xf32>
    %30 = tpu.matmul %29, %26, %cst_18 {dimension_numbers = #tpu.dot_dimension_numbers<[1], [0], [0], [1], [0, 0, 1, 1], [], []>} : vector<48x128xbf16>, vector<128x384xbf16>, vector<48x384xf32> -> vector<48x384xf32>
    %c0_19 = arith.constant 0 : index
    %c0_20 = arith.constant 0 : index
    %31 = vector.load %arg6[%c0_19, %c0_20] : memref<2x384xf32, #tpu.memory_space<vmem>>, vector<1x384xf32>
    %32 = vector.shape_cast %31 : vector<1x384xf32> to vector<384xf32>
    %33 = vector.shape_cast %32 : vector<384xf32> to vector<1x384xf32>
    %34 = vector.broadcast %33 : vector<1x384xf32> to vector<48x384xf32>
    %35 = arith.addf %30, %34 : vector<48x384xf32>
    %36 = vector.extract_strided_slice %35 {offsets = [0, 0], sizes = [24, 384], strides = [1, 1]} : vector<48x384xf32> to vector<24x384xf32>
    %cst_21 = arith.constant 0.000000e+00 : f32
    %37 = vector.broadcast %cst_21 : f32 to vector<24x128xf32>
    %38 = vector.extract_strided_slice %36 {offsets = [0, 0], sizes = [24, 32], strides = [1, 1]} : vector<24x384xf32> to vector<24x32xf32>
    %39 = vector.extract_strided_slice %36 {offsets = [0, 128], sizes = [24, 32], strides = [1, 1]} : vector<24x384xf32> to vector<24x32xf32>
    %40 = vector.extract_strided_slice %36 {offsets = [0, 256], sizes = [24, 32], strides = [1, 1]} : vector<24x384xf32> to vector<24x32xf32>
    %41 = arith.truncf %38 : vector<24x32xf32> to vector<24x32xbf16>
    %42 = arith.truncf %39 : vector<24x32xf32> to vector<24x32xbf16>
    %43 = tpu.transpose %42, [1, 0] : vector<24x32xbf16> -> vector<32x24xbf16>
    %cst_22 = arith.constant dense<0.000000e+00> : vector<24x24xf32>
    %44 = tpu.matmul %41, %43, %cst_22 {dimension_numbers = #tpu.dot_dimension_numbers<[1], [0], [0], [1], [0, 0, 1, 1], [], []>} : vector<24x32xbf16>, vector<32x24xbf16>, vector<24x24xf32> -> vector<24x24xf32>
    %cst_23 = arith.constant 0.176776692 : f32
    %45 = vector.broadcast %cst_23 : f32 to vector<24x24xf32>
    %46 = arith.mulf %44, %45 : vector<24x24xf32>
    %47 = arith.addf %46, %24 : vector<24x24xf32>
    %cst_24 = arith.constant dense<0xFF800000> : vector<24xf32>
    %48 = vector.multi_reduction <maximumf>, %47, %cst_24 [1] : vector<24x24xf32> to vector<24xf32>
    %49 = vector.shape_cast %48 : vector<24xf32> to vector<24x1xf32>
    %50 = vector.broadcast %49 : vector<24x1xf32> to vector<24x24xf32>
    %51 = arith.subf %47, %50 : vector<24x24xf32>
    %52 = math.exp %51 : vector<24x24xf32>
    %cst_25 = arith.constant dense<0.000000e+00> : vector<24xf32>
    %53 = vector.multi_reduction <add>, %52, %cst_25 [1] : vector<24x24xf32> to vector<24xf32>
    %54 = vector.shape_cast %53 : vector<24xf32> to vector<24x1xf32>
    %55 = tpu.reciprocal %54 {approx = true} : vector<24x1xf32> -> vector<24x1xf32>
    %56 = vector.broadcast %55 : vector<24x1xf32> to vector<24x24xf32>
    %57 = arith.mulf %52, %56 : vector<24x24xf32>
    %58 = arith.truncf %57 : vector<24x24xf32> to vector<24x24xbf16>
    %59 = arith.truncf %40 : vector<24x32xf32> to vector<24x32xbf16>
    %cst_26 = arith.constant dense<0.000000e+00> : vector<24x32xf32>
    %60 = tpu.matmul %58, %59, %cst_26 {dimension_numbers = #tpu.dot_dimension_numbers<[1], [0], [0], [1], [0, 0, 1, 1], [], []>} : vector<24x24xbf16>, vector<24x32xbf16>, vector<24x32xf32> -> vector<24x32xf32>
    %61 = arith.truncf %60 : vector<24x32xf32> to vector<24x32xbf16>
    %62 = vector.extract_strided_slice %28 {offsets = [0, 0], sizes = [32, 128], strides = [1, 1]} : vector<128x128xbf16> to vector<32x128xbf16>
    %cst_27 = arith.constant dense<0.000000e+00> : vector<24x128xf32>
    %63 = tpu.matmul %61, %62, %cst_27 {dimension_numbers = #tpu.dot_dimension_numbers<[1], [0], [0], [1], [0, 0, 1, 1], [], []>} : vector<24x32xbf16>, vector<32x128xbf16>, vector<24x128xf32> -> vector<24x128xf32>
    %64 = arith.addf %37, %63 : vector<24x128xf32>
    %65 = vector.extract_strided_slice %36 {offsets = [0, 32], sizes = [24, 32], strides = [1, 1]} : vector<24x384xf32> to vector<24x32xf32>
    %66 = vector.extract_strided_slice %36 {offsets = [0, 160], sizes = [24, 32], strides = [1, 1]} : vector<24x384xf32> to vector<24x32xf32>
    %67 = vector.extract_strided_slice %36 {offsets = [0, 288], sizes = [24, 32], strides = [1, 1]} : vector<24x384xf32> to vector<24x32xf32>
    %68 = arith.truncf %65 : vector<24x32xf32> to vector<24x32xbf16>
    %69 = arith.truncf %66 : vector<24x32xf32> to vector<24x32xbf16>
    %70 = tpu.transpose %69, [1, 0] : vector<24x32xbf16> -> vector<32x24xbf16>
    %cst_28 = arith.constant dense<0.000000e+00> : vector<24x24xf32>
    %71 = tpu.matmul %68, %70, %cst_28 {dimension_numbers = #tpu.dot_dimension_numbers<[1], [0], [0], [1], [0, 0, 1, 1], [], []>} : vector<24x32xbf16>, vector<32x24xbf16>, vector<24x24xf32> -> vector<24x24xf32>
    %cst_29 = arith.constant 0.176776692 : f32
    %72 = vector.broadcast %cst_29 : f32 to vector<24x24xf32>
    %73 = arith.mulf %71, %72 : vector<24x24xf32>
    %74 = arith.addf %73, %24 : vector<24x24xf32>
    %cst_30 = arith.constant dense<0xFF800000> : vector<24xf32>
    %75 = vector.multi_reduction <maximumf>, %74, %cst_30 [1] : vector<24x24xf32> to vector<24xf32>
    %76 = vector.shape_cast %75 : vector<24xf32> to vector<24x1xf32>
    %77 = vector.broadcast %76 : vector<24x1xf32> to vector<24x24xf32>
    %78 = arith.subf %74, %77 : vector<24x24xf32>
    %79 = math.exp %78 : vector<24x24xf32>
    %cst_31 = arith.constant dense<0.000000e+00> : vector<24xf32>
    %80 = vector.multi_reduction <add>, %79, %cst_31 [1] : vector<24x24xf32> to vector<24xf32>
    %81 = vector.shape_cast %80 : vector<24xf32> to vector<24x1xf32>
    %82 = tpu.reciprocal %81 {approx = true} : vector<24x1xf32> -> vector<24x1xf32>
    %83 = vector.broadcast %82 : vector<24x1xf32> to vector<24x24xf32>
    %84 = arith.mulf %79, %83 : vector<24x24xf32>
    %85 = arith.truncf %84 : vector<24x24xf32> to vector<24x24xbf16>
    %86 = arith.truncf %67 : vector<24x32xf32> to vector<24x32xbf16>
    %cst_32 = arith.constant dense<0.000000e+00> : vector<24x32xf32>
    %87 = tpu.matmul %85, %86, %cst_32 {dimension_numbers = #tpu.dot_dimension_numbers<[1], [0], [0], [1], [0, 0, 1, 1], [], []>} : vector<24x24xbf16>, vector<24x32xbf16>, vector<24x32xf32> -> vector<24x32xf32>
    %88 = arith.truncf %87 : vector<24x32xf32> to vector<24x32xbf16>
    %89 = vector.extract_strided_slice %28 {offsets = [32, 0], sizes = [32, 128], strides = [1, 1]} : vector<128x128xbf16> to vector<32x128xbf16>
    %cst_33 = arith.constant dense<0.000000e+00> : vector<24x128xf32>
    %90 = tpu.matmul %88, %89, %cst_33 {dimension_numbers = #tpu.dot_dimension_numbers<[1], [0], [0], [1], [0, 0, 1, 1], [], []>} : vector<24x32xbf16>, vector<32x128xbf16>, vector<24x128xf32> -> vector<24x128xf32>
    %91 = arith.addf %64, %90 : vector<24x128xf32>
    %92 = vector.extract_strided_slice %36 {offsets = [0, 64], sizes = [24, 32], strides = [1, 1]} : vector<24x384xf32> to vector<24x32xf32>
    %93 = vector.extract_strided_slice %36 {offsets = [0, 192], sizes = [24, 32], strides = [1, 1]} : vector<24x384xf32> to vector<24x32xf32>
    %94 = vector.extract_strided_slice %36 {offsets = [0, 320], sizes = [24, 32], strides = [1, 1]} : vector<24x384xf32> to vector<24x32xf32>
    %95 = arith.truncf %92 : vector<24x32xf32> to vector<24x32xbf16>
    %96 = arith.truncf %93 : vector<24x32xf32> to vector<24x32xbf16>
    %97 = tpu.transpose %96, [1, 0] : vector<24x32xbf16> -> vector<32x24xbf16>
    %cst_34 = arith.constant dense<0.000000e+00> : vector<24x24xf32>
    %98 = tpu.matmul %95, %97, %cst_34 {dimension_numbers = #tpu.dot_dimension_numbers<[1], [0], [0], [1], [0, 0, 1, 1], [], []>} : vector<24x32xbf16>, vector<32x24xbf16>, vector<24x24xf32> -> vector<24x24xf32>
    %cst_35 = arith.constant 0.176776692 : f32
    %99 = vector.broadcast %cst_35 : f32 to vector<24x24xf32>
    %100 = arith.mulf %98, %99 : vector<24x24xf32>
    %101 = arith.addf %100, %24 : vector<24x24xf32>
    %cst_36 = arith.constant dense<0xFF800000> : vector<24xf32>
    %102 = vector.multi_reduction <maximumf>, %101, %cst_36 [1] : vector<24x24xf32> to vector<24xf32>
    %103 = vector.shape_cast %102 : vector<24xf32> to vector<24x1xf32>
    %104 = vector.broadcast %103 : vector<24x1xf32> to vector<24x24xf32>
    %105 = arith.subf %101, %104 : vector<24x24xf32>
    %106 = math.exp %105 : vector<24x24xf32>
    %cst_37 = arith.constant dense<0.000000e+00> : vector<24xf32>
    %107 = vector.multi_reduction <add>, %106, %cst_37 [1] : vector<24x24xf32> to vector<24xf32>
    %108 = vector.shape_cast %107 : vector<24xf32> to vector<24x1xf32>
    %109 = tpu.reciprocal %108 {approx = true} : vector<24x1xf32> -> vector<24x1xf32>
    %110 = vector.broadcast %109 : vector<24x1xf32> to vector<24x24xf32>
    %111 = arith.mulf %106, %110 : vector<24x24xf32>
    %112 = arith.truncf %111 : vector<24x24xf32> to vector<24x24xbf16>
    %113 = arith.truncf %94 : vector<24x32xf32> to vector<24x32xbf16>
    %cst_38 = arith.constant dense<0.000000e+00> : vector<24x32xf32>
    %114 = tpu.matmul %112, %113, %cst_38 {dimension_numbers = #tpu.dot_dimension_numbers<[1], [0], [0], [1], [0, 0, 1, 1], [], []>} : vector<24x24xbf16>, vector<24x32xbf16>, vector<24x32xf32> -> vector<24x32xf32>
    %115 = arith.truncf %114 : vector<24x32xf32> to vector<24x32xbf16>
    %116 = vector.extract_strided_slice %28 {offsets = [64, 0], sizes = [32, 128], strides = [1, 1]} : vector<128x128xbf16> to vector<32x128xbf16>
    %cst_39 = arith.constant dense<0.000000e+00> : vector<24x128xf32>
    %117 = tpu.matmul %115, %116, %cst_39 {dimension_numbers = #tpu.dot_dimension_numbers<[1], [0], [0], [1], [0, 0, 1, 1], [], []>} : vector<24x32xbf16>, vector<32x128xbf16>, vector<24x128xf32> -> vector<24x128xf32>
    %118 = arith.addf %91, %117 : vector<24x128xf32>
    %119 = vector.extract_strided_slice %36 {offsets = [0, 96], sizes = [24, 32], strides = [1, 1]} : vector<24x384xf32> to vector<24x32xf32>
    %120 = vector.extract_strided_slice %36 {offsets = [0, 224], sizes = [24, 32], strides = [1, 1]} : vector<24x384xf32> to vector<24x32xf32>
    %121 = vector.extract_strided_slice %36 {offsets = [0, 352], sizes = [24, 32], strides = [1, 1]} : vector<24x384xf32> to vector<24x32xf32>
    %122 = arith.truncf %119 : vector<24x32xf32> to vector<24x32xbf16>
    %123 = arith.truncf %120 : vector<24x32xf32> to vector<24x32xbf16>
    %124 = tpu.transpose %123, [1, 0] : vector<24x32xbf16> -> vector<32x24xbf16>
    %cst_40 = arith.constant dense<0.000000e+00> : vector<24x24xf32>
    %125 = tpu.matmul %122, %124, %cst_40 {dimension_numbers = #tpu.dot_dimension_numbers<[1], [0], [0], [1], [0, 0, 1, 1], [], []>} : vector<24x32xbf16>, vector<32x24xbf16>, vector<24x24xf32> -> vector<24x24xf32>
    %cst_41 = arith.constant 0.176776692 : f32
    %126 = vector.broadcast %cst_41 : f32 to vector<24x24xf32>
    %127 = arith.mulf %125, %126 : vector<24x24xf32>
    %128 = arith.addf %127, %24 : vector<24x24xf32>
    %cst_42 = arith.constant dense<0xFF800000> : vector<24xf32>
    %129 = vector.multi_reduction <maximumf>, %128, %cst_42 [1] : vector<24x24xf32> to vector<24xf32>
    %130 = vector.shape_cast %129 : vector<24xf32> to vector<24x1xf32>
    %131 = vector.broadcast %130 : vector<24x1xf32> to vector<24x24xf32>
    %132 = arith.subf %128, %131 : vector<24x24xf32>
    %133 = math.exp %132 : vector<24x24xf32>
    %cst_43 = arith.constant dense<0.000000e+00> : vector<24xf32>
    %134 = vector.multi_reduction <add>, %133, %cst_43 [1] : vector<24x24xf32> to vector<24xf32>
    %135 = vector.shape_cast %134 : vector<24xf32> to vector<24x1xf32>
    %136 = tpu.reciprocal %135 {approx = true} : vector<24x1xf32> -> vector<24x1xf32>
    %137 = vector.broadcast %136 : vector<24x1xf32> to vector<24x24xf32>
    %138 = arith.mulf %133, %137 : vector<24x24xf32>
    %139 = arith.truncf %138 : vector<24x24xf32> to vector<24x24xbf16>
    %140 = arith.truncf %121 : vector<24x32xf32> to vector<24x32xbf16>
    %cst_44 = arith.constant dense<0.000000e+00> : vector<24x32xf32>
    %141 = tpu.matmul %139, %140, %cst_44 {dimension_numbers = #tpu.dot_dimension_numbers<[1], [0], [0], [1], [0, 0, 1, 1], [], []>} : vector<24x24xbf16>, vector<24x32xbf16>, vector<24x32xf32> -> vector<24x32xf32>
    %142 = arith.truncf %141 : vector<24x32xf32> to vector<24x32xbf16>
    %143 = vector.extract_strided_slice %28 {offsets = [96, 0], sizes = [32, 128], strides = [1, 1]} : vector<128x128xbf16> to vector<32x128xbf16>
    %cst_45 = arith.constant dense<0.000000e+00> : vector<24x128xf32>
    %144 = tpu.matmul %142, %143, %cst_45 {dimension_numbers = #tpu.dot_dimension_numbers<[1], [0], [0], [1], [0, 0, 1, 1], [], []>} : vector<24x32xbf16>, vector<32x128xbf16>, vector<24x128xf32> -> vector<24x128xf32>
    %145 = arith.addf %118, %144 : vector<24x128xf32>
    %146 = vector.extract_strided_slice %35 {offsets = [24, 0], sizes = [24, 384], strides = [1, 1]} : vector<48x384xf32> to vector<24x384xf32>
    %cst_46 = arith.constant 0.000000e+00 : f32
    %147 = vector.broadcast %cst_46 : f32 to vector<24x128xf32>
    %148 = vector.extract_strided_slice %146 {offsets = [0, 0], sizes = [24, 32], strides = [1, 1]} : vector<24x384xf32> to vector<24x32xf32>
    %149 = vector.extract_strided_slice %146 {offsets = [0, 128], sizes = [24, 32], strides = [1, 1]} : vector<24x384xf32> to vector<24x32xf32>
    %150 = vector.extract_strided_slice %146 {offsets = [0, 256], sizes = [24, 32], strides = [1, 1]} : vector<24x384xf32> to vector<24x32xf32>
    %151 = arith.truncf %148 : vector<24x32xf32> to vector<24x32xbf16>
    %152 = arith.truncf %149 : vector<24x32xf32> to vector<24x32xbf16>
    %153 = tpu.transpose %152, [1, 0] : vector<24x32xbf16> -> vector<32x24xbf16>
    %cst_47 = arith.constant dense<0.000000e+00> : vector<24x24xf32>
    %154 = tpu.matmul %151, %153, %cst_47 {dimension_numbers = #tpu.dot_dimension_numbers<[1], [0], [0], [1], [0, 0, 1, 1], [], []>} : vector<24x32xbf16>, vector<32x24xbf16>, vector<24x24xf32> -> vector<24x24xf32>
    %cst_48 = arith.constant 0.176776692 : f32
    %155 = vector.broadcast %cst_48 : f32 to vector<24x24xf32>
    %156 = arith.mulf %154, %155 : vector<24x24xf32>
    %157 = arith.addf %156, %24 : vector<24x24xf32>
    %cst_49 = arith.constant dense<0xFF800000> : vector<24xf32>
    %158 = vector.multi_reduction <maximumf>, %157, %cst_49 [1] : vector<24x24xf32> to vector<24xf32>
    %159 = vector.shape_cast %158 : vector<24xf32> to vector<24x1xf32>
    %160 = vector.broadcast %159 : vector<24x1xf32> to vector<24x24xf32>
    %161 = arith.subf %157, %160 : vector<24x24xf32>
    %162 = math.exp %161 : vector<24x24xf32>
    %cst_50 = arith.constant dense<0.000000e+00> : vector<24xf32>
    %163 = vector.multi_reduction <add>, %162, %cst_50 [1] : vector<24x24xf32> to vector<24xf32>
    %164 = vector.shape_cast %163 : vector<24xf32> to vector<24x1xf32>
    %165 = tpu.reciprocal %164 {approx = true} : vector<24x1xf32> -> vector<24x1xf32>
    %166 = vector.broadcast %165 : vector<24x1xf32> to vector<24x24xf32>
    %167 = arith.mulf %162, %166 : vector<24x24xf32>
    %168 = arith.truncf %167 : vector<24x24xf32> to vector<24x24xbf16>
    %169 = arith.truncf %150 : vector<24x32xf32> to vector<24x32xbf16>
    %cst_51 = arith.constant dense<0.000000e+00> : vector<24x32xf32>
    %170 = tpu.matmul %168, %169, %cst_51 {dimension_numbers = #tpu.dot_dimension_numbers<[1], [0], [0], [1], [0, 0, 1, 1], [], []>} : vector<24x24xbf16>, vector<24x32xbf16>, vector<24x32xf32> -> vector<24x32xf32>
    %171 = arith.truncf %170 : vector<24x32xf32> to vector<24x32xbf16>
    %172 = vector.extract_strided_slice %28 {offsets = [0, 0], sizes = [32, 128], strides = [1, 1]} : vector<128x128xbf16> to vector<32x128xbf16>
    %cst_52 = arith.constant dense<0.000000e+00> : vector<24x128xf32>
    %173 = tpu.matmul %171, %172, %cst_52 {dimension_numbers = #tpu.dot_dimension_numbers<[1], [0], [0], [1], [0, 0, 1, 1], [], []>} : vector<24x32xbf16>, vector<32x128xbf16>, vector<24x128xf32> -> vector<24x128xf32>
    %174 = arith.addf %147, %173 : vector<24x128xf32>
    %175 = vector.extract_strided_slice %146 {offsets = [0, 32], sizes = [24, 32], strides = [1, 1]} : vector<24x384xf32> to vector<24x32xf32>
    %176 = vector.extract_strided_slice %146 {offsets = [0, 160], sizes = [24, 32], strides = [1, 1]} : vector<24x384xf32> to vector<24x32xf32>
    %177 = vector.extract_strided_slice %146 {offsets = [0, 288], sizes = [24, 32], strides = [1, 1]} : vector<24x384xf32> to vector<24x32xf32>
    %178 = arith.truncf %175 : vector<24x32xf32> to vector<24x32xbf16>
    %179 = arith.truncf %176 : vector<24x32xf32> to vector<24x32xbf16>
    %180 = tpu.transpose %179, [1, 0] : vector<24x32xbf16> -> vector<32x24xbf16>
    %cst_53 = arith.constant dense<0.000000e+00> : vector<24x24xf32>
    %181 = tpu.matmul %178, %180, %cst_53 {dimension_numbers = #tpu.dot_dimension_numbers<[1], [0], [0], [1], [0, 0, 1, 1], [], []>} : vector<24x32xbf16>, vector<32x24xbf16>, vector<24x24xf32> -> vector<24x24xf32>
    %cst_54 = arith.constant 0.176776692 : f32
    %182 = vector.broadcast %cst_54 : f32 to vector<24x24xf32>
    %183 = arith.mulf %181, %182 : vector<24x24xf32>
    %184 = arith.addf %183, %24 : vector<24x24xf32>
    %cst_55 = arith.constant dense<0xFF800000> : vector<24xf32>
    %185 = vector.multi_reduction <maximumf>, %184, %cst_55 [1] : vector<24x24xf32> to vector<24xf32>
    %186 = vector.shape_cast %185 : vector<24xf32> to vector<24x1xf32>
    %187 = vector.broadcast %186 : vector<24x1xf32> to vector<24x24xf32>
    %188 = arith.subf %184, %187 : vector<24x24xf32>
    %189 = math.exp %188 : vector<24x24xf32>
    %cst_56 = arith.constant dense<0.000000e+00> : vector<24xf32>
    %190 = vector.multi_reduction <add>, %189, %cst_56 [1] : vector<24x24xf32> to vector<24xf32>
    %191 = vector.shape_cast %190 : vector<24xf32> to vector<24x1xf32>
    %192 = tpu.reciprocal %191 {approx = true} : vector<24x1xf32> -> vector<24x1xf32>
    %193 = vector.broadcast %192 : vector<24x1xf32> to vector<24x24xf32>
    %194 = arith.mulf %189, %193 : vector<24x24xf32>
    %195 = arith.truncf %194 : vector<24x24xf32> to vector<24x24xbf16>
    %196 = arith.truncf %177 : vector<24x32xf32> to vector<24x32xbf16>
    %cst_57 = arith.constant dense<0.000000e+00> : vector<24x32xf32>
    %197 = tpu.matmul %195, %196, %cst_57 {dimension_numbers = #tpu.dot_dimension_numbers<[1], [0], [0], [1], [0, 0, 1, 1], [], []>} : vector<24x24xbf16>, vector<24x32xbf16>, vector<24x32xf32> -> vector<24x32xf32>
    %198 = arith.truncf %197 : vector<24x32xf32> to vector<24x32xbf16>
    %199 = vector.extract_strided_slice %28 {offsets = [32, 0], sizes = [32, 128], strides = [1, 1]} : vector<128x128xbf16> to vector<32x128xbf16>
    %cst_58 = arith.constant dense<0.000000e+00> : vector<24x128xf32>
    %200 = tpu.matmul %198, %199, %cst_58 {dimension_numbers = #tpu.dot_dimension_numbers<[1], [0], [0], [1], [0, 0, 1, 1], [], []>} : vector<24x32xbf16>, vector<32x128xbf16>, vector<24x128xf32> -> vector<24x128xf32>
    %201 = arith.addf %174, %200 : vector<24x128xf32>
    %202 = vector.extract_strided_slice %146 {offsets = [0, 64], sizes = [24, 32], strides = [1, 1]} : vector<24x384xf32> to vector<24x32xf32>
    %203 = vector.extract_strided_slice %146 {offsets = [0, 192], sizes = [24, 32], strides = [1, 1]} : vector<24x384xf32> to vector<24x32xf32>
    %204 = vector.extract_strided_slice %146 {offsets = [0, 320], sizes = [24, 32], strides = [1, 1]} : vector<24x384xf32> to vector<24x32xf32>
    %205 = arith.truncf %202 : vector<24x32xf32> to vector<24x32xbf16>
    %206 = arith.truncf %203 : vector<24x32xf32> to vector<24x32xbf16>
    %207 = tpu.transpose %206, [1, 0] : vector<24x32xbf16> -> vector<32x24xbf16>
    %cst_59 = arith.constant dense<0.000000e+00> : vector<24x24xf32>
    %208 = tpu.matmul %205, %207, %cst_59 {dimension_numbers = #tpu.dot_dimension_numbers<[1], [0], [0], [1], [0, 0, 1, 1], [], []>} : vector<24x32xbf16>, vector<32x24xbf16>, vector<24x24xf32> -> vector<24x24xf32>
    %cst_60 = arith.constant 0.176776692 : f32
    %209 = vector.broadcast %cst_60 : f32 to vector<24x24xf32>
    %210 = arith.mulf %208, %209 : vector<24x24xf32>
    %211 = arith.addf %210, %24 : vector<24x24xf32>
    %cst_61 = arith.constant dense<0xFF800000> : vector<24xf32>
    %212 = vector.multi_reduction <maximumf>, %211, %cst_61 [1] : vector<24x24xf32> to vector<24xf32>
    %213 = vector.shape_cast %212 : vector<24xf32> to vector<24x1xf32>
    %214 = vector.broadcast %213 : vector<24x1xf32> to vector<24x24xf32>
    %215 = arith.subf %211, %214 : vector<24x24xf32>
    %216 = math.exp %215 : vector<24x24xf32>
    %cst_62 = arith.constant dense<0.000000e+00> : vector<24xf32>
    %217 = vector.multi_reduction <add>, %216, %cst_62 [1] : vector<24x24xf32> to vector<24xf32>
    %218 = vector.shape_cast %217 : vector<24xf32> to vector<24x1xf32>
    %219 = tpu.reciprocal %218 {approx = true} : vector<24x1xf32> -> vector<24x1xf32>
    %220 = vector.broadcast %219 : vector<24x1xf32> to vector<24x24xf32>
    %221 = arith.mulf %216, %220 : vector<24x24xf32>
    %222 = arith.truncf %221 : vector<24x24xf32> to vector<24x24xbf16>
    %223 = arith.truncf %204 : vector<24x32xf32> to vector<24x32xbf16>
    %cst_63 = arith.constant dense<0.000000e+00> : vector<24x32xf32>
    %224 = tpu.matmul %222, %223, %cst_63 {dimension_numbers = #tpu.dot_dimension_numbers<[1], [0], [0], [1], [0, 0, 1, 1], [], []>} : vector<24x24xbf16>, vector<24x32xbf16>, vector<24x32xf32> -> vector<24x32xf32>
    %225 = arith.truncf %224 : vector<24x32xf32> to vector<24x32xbf16>
    %226 = vector.extract_strided_slice %28 {offsets = [64, 0], sizes = [32, 128], strides = [1, 1]} : vector<128x128xbf16> to vector<32x128xbf16>
    %cst_64 = arith.constant dense<0.000000e+00> : vector<24x128xf32>
    %227 = tpu.matmul %225, %226, %cst_64 {dimension_numbers = #tpu.dot_dimension_numbers<[1], [0], [0], [1], [0, 0, 1, 1], [], []>} : vector<24x32xbf16>, vector<32x128xbf16>, vector<24x128xf32> -> vector<24x128xf32>
    %228 = arith.addf %201, %227 : vector<24x128xf32>
    %229 = vector.extract_strided_slice %146 {offsets = [0, 96], sizes = [24, 32], strides = [1, 1]} : vector<24x384xf32> to vector<24x32xf32>
    %230 = vector.extract_strided_slice %146 {offsets = [0, 224], sizes = [24, 32], strides = [1, 1]} : vector<24x384xf32> to vector<24x32xf32>
    %231 = vector.extract_strided_slice %146 {offsets = [0, 352], sizes = [24, 32], strides = [1, 1]} : vector<24x384xf32> to vector<24x32xf32>
    %232 = arith.truncf %229 : vector<24x32xf32> to vector<24x32xbf16>
    %233 = arith.truncf %230 : vector<24x32xf32> to vector<24x32xbf16>
    %234 = tpu.transpose %233, [1, 0] : vector<24x32xbf16> -> vector<32x24xbf16>
    %cst_65 = arith.constant dense<0.000000e+00> : vector<24x24xf32>
    %235 = tpu.matmul %232, %234, %cst_65 {dimension_numbers = #tpu.dot_dimension_numbers<[1], [0], [0], [1], [0, 0, 1, 1], [], []>} : vector<24x32xbf16>, vector<32x24xbf16>, vector<24x24xf32> -> vector<24x24xf32>
    %cst_66 = arith.constant 0.176776692 : f32
    %236 = vector.broadcast %cst_66 : f32 to vector<24x24xf32>
    %237 = arith.mulf %235, %236 : vector<24x24xf32>
    %238 = arith.addf %237, %24 : vector<24x24xf32>
    %cst_67 = arith.constant dense<0xFF800000> : vector<24xf32>
    %239 = vector.multi_reduction <maximumf>, %238, %cst_67 [1] : vector<24x24xf32> to vector<24xf32>
    %240 = vector.shape_cast %239 : vector<24xf32> to vector<24x1xf32>
    %241 = vector.broadcast %240 : vector<24x1xf32> to vector<24x24xf32>
    %242 = arith.subf %238, %241 : vector<24x24xf32>
    %243 = math.exp %242 : vector<24x24xf32>
    %cst_68 = arith.constant dense<0.000000e+00> : vector<24xf32>
    %244 = vector.multi_reduction <add>, %243, %cst_68 [1] : vector<24x24xf32> to vector<24xf32>
    %245 = vector.shape_cast %244 : vector<24xf32> to vector<24x1xf32>
    %246 = tpu.reciprocal %245 {approx = true} : vector<24x1xf32> -> vector<24x1xf32>
    %247 = vector.broadcast %246 : vector<24x1xf32> to vector<24x24xf32>
    %248 = arith.mulf %243, %247 : vector<24x24xf32>
    %249 = arith.truncf %248 : vector<24x24xf32> to vector<24x24xbf16>
    %250 = arith.truncf %231 : vector<24x32xf32> to vector<24x32xbf16>
    %cst_69 = arith.constant dense<0.000000e+00> : vector<24x32xf32>
    %251 = tpu.matmul %249, %250, %cst_69 {dimension_numbers = #tpu.dot_dimension_numbers<[1], [0], [0], [1], [0, 0, 1, 1], [], []>} : vector<24x24xbf16>, vector<24x32xbf16>, vector<24x32xf32> -> vector<24x32xf32>
    %252 = arith.truncf %251 : vector<24x32xf32> to vector<24x32xbf16>
    %253 = vector.extract_strided_slice %28 {offsets = [96, 0], sizes = [32, 128], strides = [1, 1]} : vector<128x128xbf16> to vector<32x128xbf16>
    %cst_70 = arith.constant dense<0.000000e+00> : vector<24x128xf32>
    %254 = tpu.matmul %252, %253, %cst_70 {dimension_numbers = #tpu.dot_dimension_numbers<[1], [0], [0], [1], [0, 0, 1, 1], [], []>} : vector<24x32xbf16>, vector<32x128xbf16>, vector<24x128xf32> -> vector<24x128xf32>
    %255 = arith.addf %228, %254 : vector<24x128xf32>
    %256 = tpu.concatenate %145, %255 in 0 : vector<24x128xf32>, vector<24x128xf32> -> vector<48x128xf32>
    %c0_71 = arith.constant 0 : index
    %c0_72 = arith.constant 0 : index
    %257 = vector.load %arg8[%c0_71, %c0_72] : memref<2x128xf32, #tpu.memory_space<vmem>>, vector<1x128xf32>
    %258 = vector.shape_cast %257 : vector<1x128xf32> to vector<128xf32>
    %259 = vector.shape_cast %258 : vector<128xf32> to vector<1x128xf32>
    %260 = vector.broadcast %259 : vector<1x128xf32> to vector<48x128xf32>
    %261 = arith.addf %256, %260 : vector<48x128xf32>
    %262 = arith.addf %18, %261 : vector<48x128xf32>
    %c0_73 = arith.constant 0 : index
    %c0_74 = arith.constant 0 : index
    %263 = vector.load %arg9[%c0_73, %c0_74] : memref<2x128xf32, #tpu.memory_space<vmem>>, vector<1x128xf32>
    %264 = vector.shape_cast %263 : vector<1x128xf32> to vector<128xf32>
    %c0_75 = arith.constant 0 : index
    %c0_76 = arith.constant 0 : index
    %265 = vector.load %arg10[%c0_75, %c0_76] : memref<2x128xf32, #tpu.memory_space<vmem>>, vector<1x128xf32>
    %266 = vector.shape_cast %265 : vector<1x128xf32> to vector<128xf32>
    %cst_77 = arith.constant dense<0.000000e+00> : vector<48xf32>
    %267 = vector.multi_reduction <add>, %262, %cst_77 [1] : vector<48x128xf32> to vector<48xf32>
    %268 = vector.shape_cast %267 : vector<48xf32> to vector<48x1xf32>
    %cst_78 = arith.constant 1.280000e+02 : f32
    %269 = vector.broadcast %cst_78 : f32 to vector<48x1xf32>
    %270 = arith.divf %268, %269 : vector<48x1xf32>
    %271 = vector.broadcast %270 : vector<48x1xf32> to vector<48x128xf32>
    %272 = arith.subf %262, %271 : vector<48x128xf32>
    %273 = vector.broadcast %270 : vector<48x1xf32> to vector<48x128xf32>
    %274 = arith.subf %262, %273 : vector<48x128xf32>
    %275 = arith.mulf %272, %274 : vector<48x128xf32>
    %cst_79 = arith.constant dense<0.000000e+00> : vector<48xf32>
    %276 = vector.multi_reduction <add>, %275, %cst_79 [1] : vector<48x128xf32> to vector<48xf32>
    %277 = vector.shape_cast %276 : vector<48xf32> to vector<48x1xf32>
    %cst_80 = arith.constant 1.280000e+02 : f32
    %278 = vector.broadcast %cst_80 : f32 to vector<48x1xf32>
    %279 = arith.divf %277, %278 : vector<48x1xf32>
    %280 = vector.broadcast %270 : vector<48x1xf32> to vector<48x128xf32>
    %281 = arith.subf %262, %280 : vector<48x128xf32>
    %cst_81 = arith.constant 9.99999974E-6 : f32
    %282 = vector.broadcast %cst_81 : f32 to vector<48x1xf32>
    %283 = arith.addf %279, %282 : vector<48x1xf32>
    %284 = math.rsqrt %283 : vector<48x1xf32>
    %285 = vector.broadcast %284 : vector<48x1xf32> to vector<48x128xf32>
    %286 = arith.mulf %281, %285 : vector<48x128xf32>
    %287 = vector.shape_cast %264 : vector<128xf32> to vector<1x128xf32>
    %288 = vector.broadcast %287 : vector<1x128xf32> to vector<48x128xf32>
    %289 = arith.mulf %286, %288 : vector<48x128xf32>
    %290 = vector.shape_cast %266 : vector<128xf32> to vector<1x128xf32>
    %291 = vector.broadcast %290 : vector<1x128xf32> to vector<48x128xf32>
    %292 = arith.addf %289, %291 : vector<48x128xf32>
    %293 = arith.truncf %292 : vector<48x128xf32> to vector<48x128xbf16>
    %c0_82 = arith.constant 0 : index
    %c0_83 = arith.constant 0 : index
    %c0_84 = arith.constant 0 : index
    %294 = vector.load %arg11[%c0_82, %c0_83, %c0_84] : memref<2x128x256xbf16, #tpu.memory_space<vmem>>, vector<1x128x256xbf16>
    %295 = vector.shape_cast %294 : vector<1x128x256xbf16> to vector<128x256xbf16>
    %cst_85 = arith.constant dense<0.000000e+00> : vector<48x256xf32>
    %296 = tpu.matmul %293, %295, %cst_85 {dimension_numbers = #tpu.dot_dimension_numbers<[1], [0], [0], [1], [0, 0, 1, 1], [], []>} : vector<48x128xbf16>, vector<128x256xbf16>, vector<48x256xf32> -> vector<48x256xf32>
    %c0_86 = arith.constant 0 : index
    %c0_87 = arith.constant 0 : index
    %297 = vector.load %arg12[%c0_86, %c0_87] : memref<2x256xf32, #tpu.memory_space<vmem>>, vector<1x256xf32>
    %298 = vector.shape_cast %297 : vector<1x256xf32> to vector<256xf32>
    %299 = vector.shape_cast %298 : vector<256xf32> to vector<1x256xf32>
    %300 = vector.broadcast %299 : vector<1x256xf32> to vector<48x256xf32>
    %301 = arith.addf %296, %300 : vector<48x256xf32>
    %cst_88 = arith.constant 0.000000e+00 : f32
    %302 = vector.broadcast %cst_88 : f32 to vector<48x256xf32>
    %303 = arith.maximumf %301, %302 : vector<48x256xf32>
    %304 = arith.truncf %303 : vector<48x256xf32> to vector<48x256xbf16>
    %c0_89 = arith.constant 0 : index
    %c0_90 = arith.constant 0 : index
    %c0_91 = arith.constant 0 : index
    %305 = vector.load %arg13[%c0_89, %c0_90, %c0_91] : memref<2x256x128xbf16, #tpu.memory_space<vmem>>, vector<1x256x128xbf16>
    %306 = vector.shape_cast %305 : vector<1x256x128xbf16> to vector<256x128xbf16>
    %cst_92 = arith.constant dense<0.000000e+00> : vector<48x128xf32>
    %307 = tpu.matmul %304, %306, %cst_92 {dimension_numbers = #tpu.dot_dimension_numbers<[1], [0], [0], [1], [0, 0, 1, 1], [], []>} : vector<48x256xbf16>, vector<256x128xbf16>, vector<48x128xf32> -> vector<48x128xf32>
    %c0_93 = arith.constant 0 : index
    %c0_94 = arith.constant 0 : index
    %308 = vector.load %arg14[%c0_93, %c0_94] : memref<2x128xf32, #tpu.memory_space<vmem>>, vector<1x128xf32>
    %309 = vector.shape_cast %308 : vector<1x128xf32> to vector<128xf32>
    %310 = vector.shape_cast %309 : vector<128xf32> to vector<1x128xf32>
    %311 = vector.broadcast %310 : vector<1x128xf32> to vector<48x128xf32>
    %312 = arith.addf %307, %311 : vector<48x128xf32>
    %313 = arith.addf %292, %312 : vector<48x128xf32>
    %c0_95 = arith.constant 0 : index
    %c0_96 = arith.constant 0 : index
    %314 = vector.load %arg15[%c0_95, %c0_96] : memref<2x128xf32, #tpu.memory_space<vmem>>, vector<1x128xf32>
    %315 = vector.shape_cast %314 : vector<1x128xf32> to vector<128xf32>
    %c0_97 = arith.constant 0 : index
    %c0_98 = arith.constant 0 : index
    %316 = vector.load %arg16[%c0_97, %c0_98] : memref<2x128xf32, #tpu.memory_space<vmem>>, vector<1x128xf32>
    %317 = vector.shape_cast %316 : vector<1x128xf32> to vector<128xf32>
    %cst_99 = arith.constant dense<0.000000e+00> : vector<48xf32>
    %318 = vector.multi_reduction <add>, %313, %cst_99 [1] : vector<48x128xf32> to vector<48xf32>
    %319 = vector.shape_cast %318 : vector<48xf32> to vector<48x1xf32>
    %cst_100 = arith.constant 1.280000e+02 : f32
    %320 = vector.broadcast %cst_100 : f32 to vector<48x1xf32>
    %321 = arith.divf %319, %320 : vector<48x1xf32>
    %322 = vector.broadcast %321 : vector<48x1xf32> to vector<48x128xf32>
    %323 = arith.subf %313, %322 : vector<48x128xf32>
    %324 = vector.broadcast %321 : vector<48x1xf32> to vector<48x128xf32>
    %325 = arith.subf %313, %324 : vector<48x128xf32>
    %326 = arith.mulf %323, %325 : vector<48x128xf32>
    %cst_101 = arith.constant dense<0.000000e+00> : vector<48xf32>
    %327 = vector.multi_reduction <add>, %326, %cst_101 [1] : vector<48x128xf32> to vector<48xf32>
    %328 = vector.shape_cast %327 : vector<48xf32> to vector<48x1xf32>
    %cst_102 = arith.constant 1.280000e+02 : f32
    %329 = vector.broadcast %cst_102 : f32 to vector<48x1xf32>
    %330 = arith.divf %328, %329 : vector<48x1xf32>
    %331 = vector.broadcast %321 : vector<48x1xf32> to vector<48x128xf32>
    %332 = arith.subf %313, %331 : vector<48x128xf32>
    %cst_103 = arith.constant 9.99999974E-6 : f32
    %333 = vector.broadcast %cst_103 : f32 to vector<48x1xf32>
    %334 = arith.addf %330, %333 : vector<48x1xf32>
    %335 = math.rsqrt %334 : vector<48x1xf32>
    %336 = vector.broadcast %335 : vector<48x1xf32> to vector<48x128xf32>
    %337 = arith.mulf %332, %336 : vector<48x128xf32>
    %338 = vector.shape_cast %315 : vector<128xf32> to vector<1x128xf32>
    %339 = vector.broadcast %338 : vector<1x128xf32> to vector<48x128xf32>
    %340 = arith.mulf %337, %339 : vector<48x128xf32>
    %341 = vector.shape_cast %317 : vector<128xf32> to vector<1x128xf32>
    %342 = vector.broadcast %341 : vector<1x128xf32> to vector<48x128xf32>
    %343 = arith.addf %340, %342 : vector<48x128xf32>
    %c1 = arith.constant 1 : index
    %c0_104 = arith.constant 0 : index
    %c0_105 = arith.constant 0 : index
    %344 = vector.load %arg5[%c1, %c0_104, %c0_105] : memref<2x128x384xbf16, #tpu.memory_space<vmem>>, vector<1x128x384xbf16>
    %345 = vector.shape_cast %344 : vector<1x128x384xbf16> to vector<128x384xbf16>
    %c1_106 = arith.constant 1 : index
    %c0_107 = arith.constant 0 : index
    %c0_108 = arith.constant 0 : index
    %346 = vector.load %arg7[%c1_106, %c0_107, %c0_108] : memref<2x128x128xbf16, #tpu.memory_space<vmem>>, vector<1x128x128xbf16>
    %347 = vector.shape_cast %346 : vector<1x128x128xbf16> to vector<128x128xbf16>
    %348 = arith.truncf %343 : vector<48x128xf32> to vector<48x128xbf16>
    %cst_109 = arith.constant dense<0.000000e+00> : vector<48x384xf32>
    %349 = tpu.matmul %348, %345, %cst_109 {dimension_numbers = #tpu.dot_dimension_numbers<[1], [0], [0], [1], [0, 0, 1, 1], [], []>} : vector<48x128xbf16>, vector<128x384xbf16>, vector<48x384xf32> -> vector<48x384xf32>
    %c1_110 = arith.constant 1 : index
    %c0_111 = arith.constant 0 : index
    %350 = vector.load %arg6[%c1_110, %c0_111] : memref<2x384xf32, #tpu.memory_space<vmem>>, vector<1x384xf32>
    %351 = vector.shape_cast %350 : vector<1x384xf32> to vector<384xf32>
    %352 = vector.shape_cast %351 : vector<384xf32> to vector<1x384xf32>
    %353 = vector.broadcast %352 : vector<1x384xf32> to vector<48x384xf32>
    %354 = arith.addf %349, %353 : vector<48x384xf32>
    %355 = vector.extract_strided_slice %354 {offsets = [0, 0], sizes = [24, 384], strides = [1, 1]} : vector<48x384xf32> to vector<24x384xf32>
    %cst_112 = arith.constant 0.000000e+00 : f32
    %356 = vector.broadcast %cst_112 : f32 to vector<24x128xf32>
    %357 = vector.extract_strided_slice %355 {offsets = [0, 0], sizes = [24, 32], strides = [1, 1]} : vector<24x384xf32> to vector<24x32xf32>
    %358 = vector.extract_strided_slice %355 {offsets = [0, 128], sizes = [24, 32], strides = [1, 1]} : vector<24x384xf32> to vector<24x32xf32>
    %359 = vector.extract_strided_slice %355 {offsets = [0, 256], sizes = [24, 32], strides = [1, 1]} : vector<24x384xf32> to vector<24x32xf32>
    %360 = arith.truncf %357 : vector<24x32xf32> to vector<24x32xbf16>
    %361 = arith.truncf %358 : vector<24x32xf32> to vector<24x32xbf16>
    %362 = tpu.transpose %361, [1, 0] : vector<24x32xbf16> -> vector<32x24xbf16>
    %cst_113 = arith.constant dense<0.000000e+00> : vector<24x24xf32>
    %363 = tpu.matmul %360, %362, %cst_113 {dimension_numbers = #tpu.dot_dimension_numbers<[1], [0], [0], [1], [0, 0, 1, 1], [], []>} : vector<24x32xbf16>, vector<32x24xbf16>, vector<24x24xf32> -> vector<24x24xf32>
    %cst_114 = arith.constant 0.176776692 : f32
    %364 = vector.broadcast %cst_114 : f32 to vector<24x24xf32>
    %365 = arith.mulf %363, %364 : vector<24x24xf32>
    %366 = arith.addf %365, %24 : vector<24x24xf32>
    %cst_115 = arith.constant dense<0xFF800000> : vector<24xf32>
    %367 = vector.multi_reduction <maximumf>, %366, %cst_115 [1] : vector<24x24xf32> to vector<24xf32>
    %368 = vector.shape_cast %367 : vector<24xf32> to vector<24x1xf32>
    %369 = vector.broadcast %368 : vector<24x1xf32> to vector<24x24xf32>
    %370 = arith.subf %366, %369 : vector<24x24xf32>
    %371 = math.exp %370 : vector<24x24xf32>
    %cst_116 = arith.constant dense<0.000000e+00> : vector<24xf32>
    %372 = vector.multi_reduction <add>, %371, %cst_116 [1] : vector<24x24xf32> to vector<24xf32>
    %373 = vector.shape_cast %372 : vector<24xf32> to vector<24x1xf32>
    %374 = tpu.reciprocal %373 {approx = true} : vector<24x1xf32> -> vector<24x1xf32>
    %375 = vector.broadcast %374 : vector<24x1xf32> to vector<24x24xf32>
    %376 = arith.mulf %371, %375 : vector<24x24xf32>
    %377 = arith.truncf %376 : vector<24x24xf32> to vector<24x24xbf16>
    %378 = arith.truncf %359 : vector<24x32xf32> to vector<24x32xbf16>
    %cst_117 = arith.constant dense<0.000000e+00> : vector<24x32xf32>
    %379 = tpu.matmul %377, %378, %cst_117 {dimension_numbers = #tpu.dot_dimension_numbers<[1], [0], [0], [1], [0, 0, 1, 1], [], []>} : vector<24x24xbf16>, vector<24x32xbf16>, vector<24x32xf32> -> vector<24x32xf32>
    %380 = arith.truncf %379 : vector<24x32xf32> to vector<24x32xbf16>
    %381 = vector.extract_strided_slice %347 {offsets = [0, 0], sizes = [32, 128], strides = [1, 1]} : vector<128x128xbf16> to vector<32x128xbf16>
    %cst_118 = arith.constant dense<0.000000e+00> : vector<24x128xf32>
    %382 = tpu.matmul %380, %381, %cst_118 {dimension_numbers = #tpu.dot_dimension_numbers<[1], [0], [0], [1], [0, 0, 1, 1], [], []>} : vector<24x32xbf16>, vector<32x128xbf16>, vector<24x128xf32> -> vector<24x128xf32>
    %383 = arith.addf %356, %382 : vector<24x128xf32>
    %384 = vector.extract_strided_slice %355 {offsets = [0, 32], sizes = [24, 32], strides = [1, 1]} : vector<24x384xf32> to vector<24x32xf32>
    %385 = vector.extract_strided_slice %355 {offsets = [0, 160], sizes = [24, 32], strides = [1, 1]} : vector<24x384xf32> to vector<24x32xf32>
    %386 = vector.extract_strided_slice %355 {offsets = [0, 288], sizes = [24, 32], strides = [1, 1]} : vector<24x384xf32> to vector<24x32xf32>
    %387 = arith.truncf %384 : vector<24x32xf32> to vector<24x32xbf16>
    %388 = arith.truncf %385 : vector<24x32xf32> to vector<24x32xbf16>
    %389 = tpu.transpose %388, [1, 0] : vector<24x32xbf16> -> vector<32x24xbf16>
    %cst_119 = arith.constant dense<0.000000e+00> : vector<24x24xf32>
    %390 = tpu.matmul %387, %389, %cst_119 {dimension_numbers = #tpu.dot_dimension_numbers<[1], [0], [0], [1], [0, 0, 1, 1], [], []>} : vector<24x32xbf16>, vector<32x24xbf16>, vector<24x24xf32> -> vector<24x24xf32>
    %cst_120 = arith.constant 0.176776692 : f32
    %391 = vector.broadcast %cst_120 : f32 to vector<24x24xf32>
    %392 = arith.mulf %390, %391 : vector<24x24xf32>
    %393 = arith.addf %392, %24 : vector<24x24xf32>
    %cst_121 = arith.constant dense<0xFF800000> : vector<24xf32>
    %394 = vector.multi_reduction <maximumf>, %393, %cst_121 [1] : vector<24x24xf32> to vector<24xf32>
    %395 = vector.shape_cast %394 : vector<24xf32> to vector<24x1xf32>
    %396 = vector.broadcast %395 : vector<24x1xf32> to vector<24x24xf32>
    %397 = arith.subf %393, %396 : vector<24x24xf32>
    %398 = math.exp %397 : vector<24x24xf32>
    %cst_122 = arith.constant dense<0.000000e+00> : vector<24xf32>
    %399 = vector.multi_reduction <add>, %398, %cst_122 [1] : vector<24x24xf32> to vector<24xf32>
    %400 = vector.shape_cast %399 : vector<24xf32> to vector<24x1xf32>
    %401 = tpu.reciprocal %400 {approx = true} : vector<24x1xf32> -> vector<24x1xf32>
    %402 = vector.broadcast %401 : vector<24x1xf32> to vector<24x24xf32>
    %403 = arith.mulf %398, %402 : vector<24x24xf32>
    %404 = arith.truncf %403 : vector<24x24xf32> to vector<24x24xbf16>
    %405 = arith.truncf %386 : vector<24x32xf32> to vector<24x32xbf16>
    %cst_123 = arith.constant dense<0.000000e+00> : vector<24x32xf32>
    %406 = tpu.matmul %404, %405, %cst_123 {dimension_numbers = #tpu.dot_dimension_numbers<[1], [0], [0], [1], [0, 0, 1, 1], [], []>} : vector<24x24xbf16>, vector<24x32xbf16>, vector<24x32xf32> -> vector<24x32xf32>
    %407 = arith.truncf %406 : vector<24x32xf32> to vector<24x32xbf16>
    %408 = vector.extract_strided_slice %347 {offsets = [32, 0], sizes = [32, 128], strides = [1, 1]} : vector<128x128xbf16> to vector<32x128xbf16>
    %cst_124 = arith.constant dense<0.000000e+00> : vector<24x128xf32>
    %409 = tpu.matmul %407, %408, %cst_124 {dimension_numbers = #tpu.dot_dimension_numbers<[1], [0], [0], [1], [0, 0, 1, 1], [], []>} : vector<24x32xbf16>, vector<32x128xbf16>, vector<24x128xf32> -> vector<24x128xf32>
    %410 = arith.addf %383, %409 : vector<24x128xf32>
    %411 = vector.extract_strided_slice %355 {offsets = [0, 64], sizes = [24, 32], strides = [1, 1]} : vector<24x384xf32> to vector<24x32xf32>
    %412 = vector.extract_strided_slice %355 {offsets = [0, 192], sizes = [24, 32], strides = [1, 1]} : vector<24x384xf32> to vector<24x32xf32>
    %413 = vector.extract_strided_slice %355 {offsets = [0, 320], sizes = [24, 32], strides = [1, 1]} : vector<24x384xf32> to vector<24x32xf32>
    %414 = arith.truncf %411 : vector<24x32xf32> to vector<24x32xbf16>
    %415 = arith.truncf %412 : vector<24x32xf32> to vector<24x32xbf16>
    %416 = tpu.transpose %415, [1, 0] : vector<24x32xbf16> -> vector<32x24xbf16>
    %cst_125 = arith.constant dense<0.000000e+00> : vector<24x24xf32>
    %417 = tpu.matmul %414, %416, %cst_125 {dimension_numbers = #tpu.dot_dimension_numbers<[1], [0], [0], [1], [0, 0, 1, 1], [], []>} : vector<24x32xbf16>, vector<32x24xbf16>, vector<24x24xf32> -> vector<24x24xf32>
    %cst_126 = arith.constant 0.176776692 : f32
    %418 = vector.broadcast %cst_126 : f32 to vector<24x24xf32>
    %419 = arith.mulf %417, %418 : vector<24x24xf32>
    %420 = arith.addf %419, %24 : vector<24x24xf32>
    %cst_127 = arith.constant dense<0xFF800000> : vector<24xf32>
    %421 = vector.multi_reduction <maximumf>, %420, %cst_127 [1] : vector<24x24xf32> to vector<24xf32>
    %422 = vector.shape_cast %421 : vector<24xf32> to vector<24x1xf32>
    %423 = vector.broadcast %422 : vector<24x1xf32> to vector<24x24xf32>
    %424 = arith.subf %420, %423 : vector<24x24xf32>
    %425 = math.exp %424 : vector<24x24xf32>
    %cst_128 = arith.constant dense<0.000000e+00> : vector<24xf32>
    %426 = vector.multi_reduction <add>, %425, %cst_128 [1] : vector<24x24xf32> to vector<24xf32>
    %427 = vector.shape_cast %426 : vector<24xf32> to vector<24x1xf32>
    %428 = tpu.reciprocal %427 {approx = true} : vector<24x1xf32> -> vector<24x1xf32>
    %429 = vector.broadcast %428 : vector<24x1xf32> to vector<24x24xf32>
    %430 = arith.mulf %425, %429 : vector<24x24xf32>
    %431 = arith.truncf %430 : vector<24x24xf32> to vector<24x24xbf16>
    %432 = arith.truncf %413 : vector<24x32xf32> to vector<24x32xbf16>
    %cst_129 = arith.constant dense<0.000000e+00> : vector<24x32xf32>
    %433 = tpu.matmul %431, %432, %cst_129 {dimension_numbers = #tpu.dot_dimension_numbers<[1], [0], [0], [1], [0, 0, 1, 1], [], []>} : vector<24x24xbf16>, vector<24x32xbf16>, vector<24x32xf32> -> vector<24x32xf32>
    %434 = arith.truncf %433 : vector<24x32xf32> to vector<24x32xbf16>
    %435 = vector.extract_strided_slice %347 {offsets = [64, 0], sizes = [32, 128], strides = [1, 1]} : vector<128x128xbf16> to vector<32x128xbf16>
    %cst_130 = arith.constant dense<0.000000e+00> : vector<24x128xf32>
    %436 = tpu.matmul %434, %435, %cst_130 {dimension_numbers = #tpu.dot_dimension_numbers<[1], [0], [0], [1], [0, 0, 1, 1], [], []>} : vector<24x32xbf16>, vector<32x128xbf16>, vector<24x128xf32> -> vector<24x128xf32>
    %437 = arith.addf %410, %436 : vector<24x128xf32>
    %438 = vector.extract_strided_slice %355 {offsets = [0, 96], sizes = [24, 32], strides = [1, 1]} : vector<24x384xf32> to vector<24x32xf32>
    %439 = vector.extract_strided_slice %355 {offsets = [0, 224], sizes = [24, 32], strides = [1, 1]} : vector<24x384xf32> to vector<24x32xf32>
    %440 = vector.extract_strided_slice %355 {offsets = [0, 352], sizes = [24, 32], strides = [1, 1]} : vector<24x384xf32> to vector<24x32xf32>
    %441 = arith.truncf %438 : vector<24x32xf32> to vector<24x32xbf16>
    %442 = arith.truncf %439 : vector<24x32xf32> to vector<24x32xbf16>
    %443 = tpu.transpose %442, [1, 0] : vector<24x32xbf16> -> vector<32x24xbf16>
    %cst_131 = arith.constant dense<0.000000e+00> : vector<24x24xf32>
    %444 = tpu.matmul %441, %443, %cst_131 {dimension_numbers = #tpu.dot_dimension_numbers<[1], [0], [0], [1], [0, 0, 1, 1], [], []>} : vector<24x32xbf16>, vector<32x24xbf16>, vector<24x24xf32> -> vector<24x24xf32>
    %cst_132 = arith.constant 0.176776692 : f32
    %445 = vector.broadcast %cst_132 : f32 to vector<24x24xf32>
    %446 = arith.mulf %444, %445 : vector<24x24xf32>
    %447 = arith.addf %446, %24 : vector<24x24xf32>
    %cst_133 = arith.constant dense<0xFF800000> : vector<24xf32>
    %448 = vector.multi_reduction <maximumf>, %447, %cst_133 [1] : vector<24x24xf32> to vector<24xf32>
    %449 = vector.shape_cast %448 : vector<24xf32> to vector<24x1xf32>
    %450 = vector.broadcast %449 : vector<24x1xf32> to vector<24x24xf32>
    %451 = arith.subf %447, %450 : vector<24x24xf32>
    %452 = math.exp %451 : vector<24x24xf32>
    %cst_134 = arith.constant dense<0.000000e+00> : vector<24xf32>
    %453 = vector.multi_reduction <add>, %452, %cst_134 [1] : vector<24x24xf32> to vector<24xf32>
    %454 = vector.shape_cast %453 : vector<24xf32> to vector<24x1xf32>
    %455 = tpu.reciprocal %454 {approx = true} : vector<24x1xf32> -> vector<24x1xf32>
    %456 = vector.broadcast %455 : vector<24x1xf32> to vector<24x24xf32>
    %457 = arith.mulf %452, %456 : vector<24x24xf32>
    %458 = arith.truncf %457 : vector<24x24xf32> to vector<24x24xbf16>
    %459 = arith.truncf %440 : vector<24x32xf32> to vector<24x32xbf16>
    %cst_135 = arith.constant dense<0.000000e+00> : vector<24x32xf32>
    %460 = tpu.matmul %458, %459, %cst_135 {dimension_numbers = #tpu.dot_dimension_numbers<[1], [0], [0], [1], [0, 0, 1, 1], [], []>} : vector<24x24xbf16>, vector<24x32xbf16>, vector<24x32xf32> -> vector<24x32xf32>
    %461 = arith.truncf %460 : vector<24x32xf32> to vector<24x32xbf16>
    %462 = vector.extract_strided_slice %347 {offsets = [96, 0], sizes = [32, 128], strides = [1, 1]} : vector<128x128xbf16> to vector<32x128xbf16>
    %cst_136 = arith.constant dense<0.000000e+00> : vector<24x128xf32>
    %463 = tpu.matmul %461, %462, %cst_136 {dimension_numbers = #tpu.dot_dimension_numbers<[1], [0], [0], [1], [0, 0, 1, 1], [], []>} : vector<24x32xbf16>, vector<32x128xbf16>, vector<24x128xf32> -> vector<24x128xf32>
    %464 = arith.addf %437, %463 : vector<24x128xf32>
    %465 = vector.extract_strided_slice %354 {offsets = [24, 0], sizes = [24, 384], strides = [1, 1]} : vector<48x384xf32> to vector<24x384xf32>
    %cst_137 = arith.constant 0.000000e+00 : f32
    %466 = vector.broadcast %cst_137 : f32 to vector<24x128xf32>
    %467 = vector.extract_strided_slice %465 {offsets = [0, 0], sizes = [24, 32], strides = [1, 1]} : vector<24x384xf32> to vector<24x32xf32>
    %468 = vector.extract_strided_slice %465 {offsets = [0, 128], sizes = [24, 32], strides = [1, 1]} : vector<24x384xf32> to vector<24x32xf32>
    %469 = vector.extract_strided_slice %465 {offsets = [0, 256], sizes = [24, 32], strides = [1, 1]} : vector<24x384xf32> to vector<24x32xf32>
    %470 = arith.truncf %467 : vector<24x32xf32> to vector<24x32xbf16>
    %471 = arith.truncf %468 : vector<24x32xf32> to vector<24x32xbf16>
    %472 = tpu.transpose %471, [1, 0] : vector<24x32xbf16> -> vector<32x24xbf16>
    %cst_138 = arith.constant dense<0.000000e+00> : vector<24x24xf32>
    %473 = tpu.matmul %470, %472, %cst_138 {dimension_numbers = #tpu.dot_dimension_numbers<[1], [0], [0], [1], [0, 0, 1, 1], [], []>} : vector<24x32xbf16>, vector<32x24xbf16>, vector<24x24xf32> -> vector<24x24xf32>
    %cst_139 = arith.constant 0.176776692 : f32
    %474 = vector.broadcast %cst_139 : f32 to vector<24x24xf32>
    %475 = arith.mulf %473, %474 : vector<24x24xf32>
    %476 = arith.addf %475, %24 : vector<24x24xf32>
    %cst_140 = arith.constant dense<0xFF800000> : vector<24xf32>
    %477 = vector.multi_reduction <maximumf>, %476, %cst_140 [1] : vector<24x24xf32> to vector<24xf32>
    %478 = vector.shape_cast %477 : vector<24xf32> to vector<24x1xf32>
    %479 = vector.broadcast %478 : vector<24x1xf32> to vector<24x24xf32>
    %480 = arith.subf %476, %479 : vector<24x24xf32>
    %481 = math.exp %480 : vector<24x24xf32>
    %cst_141 = arith.constant dense<0.000000e+00> : vector<24xf32>
    %482 = vector.multi_reduction <add>, %481, %cst_141 [1] : vector<24x24xf32> to vector<24xf32>
    %483 = vector.shape_cast %482 : vector<24xf32> to vector<24x1xf32>
    %484 = tpu.reciprocal %483 {approx = true} : vector<24x1xf32> -> vector<24x1xf32>
    %485 = vector.broadcast %484 : vector<24x1xf32> to vector<24x24xf32>
    %486 = arith.mulf %481, %485 : vector<24x24xf32>
    %487 = arith.truncf %486 : vector<24x24xf32> to vector<24x24xbf16>
    %488 = arith.truncf %469 : vector<24x32xf32> to vector<24x32xbf16>
    %cst_142 = arith.constant dense<0.000000e+00> : vector<24x32xf32>
    %489 = tpu.matmul %487, %488, %cst_142 {dimension_numbers = #tpu.dot_dimension_numbers<[1], [0], [0], [1], [0, 0, 1, 1], [], []>} : vector<24x24xbf16>, vector<24x32xbf16>, vector<24x32xf32> -> vector<24x32xf32>
    %490 = arith.truncf %489 : vector<24x32xf32> to vector<24x32xbf16>
    %491 = vector.extract_strided_slice %347 {offsets = [0, 0], sizes = [32, 128], strides = [1, 1]} : vector<128x128xbf16> to vector<32x128xbf16>
    %cst_143 = arith.constant dense<0.000000e+00> : vector<24x128xf32>
    %492 = tpu.matmul %490, %491, %cst_143 {dimension_numbers = #tpu.dot_dimension_numbers<[1], [0], [0], [1], [0, 0, 1, 1], [], []>} : vector<24x32xbf16>, vector<32x128xbf16>, vector<24x128xf32> -> vector<24x128xf32>
    %493 = arith.addf %466, %492 : vector<24x128xf32>
    %494 = vector.extract_strided_slice %465 {offsets = [0, 32], sizes = [24, 32], strides = [1, 1]} : vector<24x384xf32> to vector<24x32xf32>
    %495 = vector.extract_strided_slice %465 {offsets = [0, 160], sizes = [24, 32], strides = [1, 1]} : vector<24x384xf32> to vector<24x32xf32>
    %496 = vector.extract_strided_slice %465 {offsets = [0, 288], sizes = [24, 32], strides = [1, 1]} : vector<24x384xf32> to vector<24x32xf32>
    %497 = arith.truncf %494 : vector<24x32xf32> to vector<24x32xbf16>
    %498 = arith.truncf %495 : vector<24x32xf32> to vector<24x32xbf16>
    %499 = tpu.transpose %498, [1, 0] : vector<24x32xbf16> -> vector<32x24xbf16>
    %cst_144 = arith.constant dense<0.000000e+00> : vector<24x24xf32>
    %500 = tpu.matmul %497, %499, %cst_144 {dimension_numbers = #tpu.dot_dimension_numbers<[1], [0], [0], [1], [0, 0, 1, 1], [], []>} : vector<24x32xbf16>, vector<32x24xbf16>, vector<24x24xf32> -> vector<24x24xf32>
    %cst_145 = arith.constant 0.176776692 : f32
    %501 = vector.broadcast %cst_145 : f32 to vector<24x24xf32>
    %502 = arith.mulf %500, %501 : vector<24x24xf32>
    %503 = arith.addf %502, %24 : vector<24x24xf32>
    %cst_146 = arith.constant dense<0xFF800000> : vector<24xf32>
    %504 = vector.multi_reduction <maximumf>, %503, %cst_146 [1] : vector<24x24xf32> to vector<24xf32>
    %505 = vector.shape_cast %504 : vector<24xf32> to vector<24x1xf32>
    %506 = vector.broadcast %505 : vector<24x1xf32> to vector<24x24xf32>
    %507 = arith.subf %503, %506 : vector<24x24xf32>
    %508 = math.exp %507 : vector<24x24xf32>
    %cst_147 = arith.constant dense<0.000000e+00> : vector<24xf32>
    %509 = vector.multi_reduction <add>, %508, %cst_147 [1] : vector<24x24xf32> to vector<24xf32>
    %510 = vector.shape_cast %509 : vector<24xf32> to vector<24x1xf32>
    %511 = tpu.reciprocal %510 {approx = true} : vector<24x1xf32> -> vector<24x1xf32>
    %512 = vector.broadcast %511 : vector<24x1xf32> to vector<24x24xf32>
    %513 = arith.mulf %508, %512 : vector<24x24xf32>
    %514 = arith.truncf %513 : vector<24x24xf32> to vector<24x24xbf16>
    %515 = arith.truncf %496 : vector<24x32xf32> to vector<24x32xbf16>
    %cst_148 = arith.constant dense<0.000000e+00> : vector<24x32xf32>
    %516 = tpu.matmul %514, %515, %cst_148 {dimension_numbers = #tpu.dot_dimension_numbers<[1], [0], [0], [1], [0, 0, 1, 1], [], []>} : vector<24x24xbf16>, vector<24x32xbf16>, vector<24x32xf32> -> vector<24x32xf32>
    %517 = arith.truncf %516 : vector<24x32xf32> to vector<24x32xbf16>
    %518 = vector.extract_strided_slice %347 {offsets = [32, 0], sizes = [32, 128], strides = [1, 1]} : vector<128x128xbf16> to vector<32x128xbf16>
    %cst_149 = arith.constant dense<0.000000e+00> : vector<24x128xf32>
    %519 = tpu.matmul %517, %518, %cst_149 {dimension_numbers = #tpu.dot_dimension_numbers<[1], [0], [0], [1], [0, 0, 1, 1], [], []>} : vector<24x32xbf16>, vector<32x128xbf16>, vector<24x128xf32> -> vector<24x128xf32>
    %520 = arith.addf %493, %519 : vector<24x128xf32>
    %521 = vector.extract_strided_slice %465 {offsets = [0, 64], sizes = [24, 32], strides = [1, 1]} : vector<24x384xf32> to vector<24x32xf32>
    %522 = vector.extract_strided_slice %465 {offsets = [0, 192], sizes = [24, 32], strides = [1, 1]} : vector<24x384xf32> to vector<24x32xf32>
    %523 = vector.extract_strided_slice %465 {offsets = [0, 320], sizes = [24, 32], strides = [1, 1]} : vector<24x384xf32> to vector<24x32xf32>
    %524 = arith.truncf %521 : vector<24x32xf32> to vector<24x32xbf16>
    %525 = arith.truncf %522 : vector<24x32xf32> to vector<24x32xbf16>
    %526 = tpu.transpose %525, [1, 0] : vector<24x32xbf16> -> vector<32x24xbf16>
    %cst_150 = arith.constant dense<0.000000e+00> : vector<24x24xf32>
    %527 = tpu.matmul %524, %526, %cst_150 {dimension_numbers = #tpu.dot_dimension_numbers<[1], [0], [0], [1], [0, 0, 1, 1], [], []>} : vector<24x32xbf16>, vector<32x24xbf16>, vector<24x24xf32> -> vector<24x24xf32>
    %cst_151 = arith.constant 0.176776692 : f32
    %528 = vector.broadcast %cst_151 : f32 to vector<24x24xf32>
    %529 = arith.mulf %527, %528 : vector<24x24xf32>
    %530 = arith.addf %529, %24 : vector<24x24xf32>
    %cst_152 = arith.constant dense<0xFF800000> : vector<24xf32>
    %531 = vector.multi_reduction <maximumf>, %530, %cst_152 [1] : vector<24x24xf32> to vector<24xf32>
    %532 = vector.shape_cast %531 : vector<24xf32> to vector<24x1xf32>
    %533 = vector.broadcast %532 : vector<24x1xf32> to vector<24x24xf32>
    %534 = arith.subf %530, %533 : vector<24x24xf32>
    %535 = math.exp %534 : vector<24x24xf32>
    %cst_153 = arith.constant dense<0.000000e+00> : vector<24xf32>
    %536 = vector.multi_reduction <add>, %535, %cst_153 [1] : vector<24x24xf32> to vector<24xf32>
    %537 = vector.shape_cast %536 : vector<24xf32> to vector<24x1xf32>
    %538 = tpu.reciprocal %537 {approx = true} : vector<24x1xf32> -> vector<24x1xf32>
    %539 = vector.broadcast %538 : vector<24x1xf32> to vector<24x24xf32>
    %540 = arith.mulf %535, %539 : vector<24x24xf32>
    %541 = arith.truncf %540 : vector<24x24xf32> to vector<24x24xbf16>
    %542 = arith.truncf %523 : vector<24x32xf32> to vector<24x32xbf16>
    %cst_154 = arith.constant dense<0.000000e+00> : vector<24x32xf32>
    %543 = tpu.matmul %541, %542, %cst_154 {dimension_numbers = #tpu.dot_dimension_numbers<[1], [0], [0], [1], [0, 0, 1, 1], [], []>} : vector<24x24xbf16>, vector<24x32xbf16>, vector<24x32xf32> -> vector<24x32xf32>
    %544 = arith.truncf %543 : vector<24x32xf32> to vector<24x32xbf16>
    %545 = vector.extract_strided_slice %347 {offsets = [64, 0], sizes = [32, 128], strides = [1, 1]} : vector<128x128xbf16> to vector<32x128xbf16>
    %cst_155 = arith.constant dense<0.000000e+00> : vector<24x128xf32>
    %546 = tpu.matmul %544, %545, %cst_155 {dimension_numbers = #tpu.dot_dimension_numbers<[1], [0], [0], [1], [0, 0, 1, 1], [], []>} : vector<24x32xbf16>, vector<32x128xbf16>, vector<24x128xf32> -> vector<24x128xf32>
    %547 = arith.addf %520, %546 : vector<24x128xf32>
    %548 = vector.extract_strided_slice %465 {offsets = [0, 96], sizes = [24, 32], strides = [1, 1]} : vector<24x384xf32> to vector<24x32xf32>
    %549 = vector.extract_strided_slice %465 {offsets = [0, 224], sizes = [24, 32], strides = [1, 1]} : vector<24x384xf32> to vector<24x32xf32>
    %550 = vector.extract_strided_slice %465 {offsets = [0, 352], sizes = [24, 32], strides = [1, 1]} : vector<24x384xf32> to vector<24x32xf32>
    %551 = arith.truncf %548 : vector<24x32xf32> to vector<24x32xbf16>
    %552 = arith.truncf %549 : vector<24x32xf32> to vector<24x32xbf16>
    %553 = tpu.transpose %552, [1, 0] : vector<24x32xbf16> -> vector<32x24xbf16>
    %cst_156 = arith.constant dense<0.000000e+00> : vector<24x24xf32>
    %554 = tpu.matmul %551, %553, %cst_156 {dimension_numbers = #tpu.dot_dimension_numbers<[1], [0], [0], [1], [0, 0, 1, 1], [], []>} : vector<24x32xbf16>, vector<32x24xbf16>, vector<24x24xf32> -> vector<24x24xf32>
    %cst_157 = arith.constant 0.176776692 : f32
    %555 = vector.broadcast %cst_157 : f32 to vector<24x24xf32>
    %556 = arith.mulf %554, %555 : vector<24x24xf32>
    %557 = arith.addf %556, %24 : vector<24x24xf32>
    %cst_158 = arith.constant dense<0xFF800000> : vector<24xf32>
    %558 = vector.multi_reduction <maximumf>, %557, %cst_158 [1] : vector<24x24xf32> to vector<24xf32>
    %559 = vector.shape_cast %558 : vector<24xf32> to vector<24x1xf32>
    %560 = vector.broadcast %559 : vector<24x1xf32> to vector<24x24xf32>
    %561 = arith.subf %557, %560 : vector<24x24xf32>
    %562 = math.exp %561 : vector<24x24xf32>
    %cst_159 = arith.constant dense<0.000000e+00> : vector<24xf32>
    %563 = vector.multi_reduction <add>, %562, %cst_159 [1] : vector<24x24xf32> to vector<24xf32>
    %564 = vector.shape_cast %563 : vector<24xf32> to vector<24x1xf32>
    %565 = tpu.reciprocal %564 {approx = true} : vector<24x1xf32> -> vector<24x1xf32>
    %566 = vector.broadcast %565 : vector<24x1xf32> to vector<24x24xf32>
    %567 = arith.mulf %562, %566 : vector<24x24xf32>
    %568 = arith.truncf %567 : vector<24x24xf32> to vector<24x24xbf16>
    %569 = arith.truncf %550 : vector<24x32xf32> to vector<24x32xbf16>
    %cst_160 = arith.constant dense<0.000000e+00> : vector<24x32xf32>
    %570 = tpu.matmul %568, %569, %cst_160 {dimension_numbers = #tpu.dot_dimension_numbers<[1], [0], [0], [1], [0, 0, 1, 1], [], []>} : vector<24x24xbf16>, vector<24x32xbf16>, vector<24x32xf32> -> vector<24x32xf32>
    %571 = arith.truncf %570 : vector<24x32xf32> to vector<24x32xbf16>
    %572 = vector.extract_strided_slice %347 {offsets = [96, 0], sizes = [32, 128], strides = [1, 1]} : vector<128x128xbf16> to vector<32x128xbf16>
    %cst_161 = arith.constant dense<0.000000e+00> : vector<24x128xf32>
    %573 = tpu.matmul %571, %572, %cst_161 {dimension_numbers = #tpu.dot_dimension_numbers<[1], [0], [0], [1], [0, 0, 1, 1], [], []>} : vector<24x32xbf16>, vector<32x128xbf16>, vector<24x128xf32> -> vector<24x128xf32>
    %574 = arith.addf %547, %573 : vector<24x128xf32>
    %575 = tpu.concatenate %464, %574 in 0 : vector<24x128xf32>, vector<24x128xf32> -> vector<48x128xf32>
    %c1_162 = arith.constant 1 : index
    %c0_163 = arith.constant 0 : index
    %576 = vector.load %arg8[%c1_162, %c0_163] : memref<2x128xf32, #tpu.memory_space<vmem>>, vector<1x128xf32>
    %577 = vector.shape_cast %576 : vector<1x128xf32> to vector<128xf32>
    %578 = vector.shape_cast %577 : vector<128xf32> to vector<1x128xf32>
    %579 = vector.broadcast %578 : vector<1x128xf32> to vector<48x128xf32>
    %580 = arith.addf %575, %579 : vector<48x128xf32>
    %581 = arith.addf %343, %580 : vector<48x128xf32>
    %c1_164 = arith.constant 1 : index
    %c0_165 = arith.constant 0 : index
    %582 = vector.load %arg9[%c1_164, %c0_165] : memref<2x128xf32, #tpu.memory_space<vmem>>, vector<1x128xf32>
    %583 = vector.shape_cast %582 : vector<1x128xf32> to vector<128xf32>
    %c1_166 = arith.constant 1 : index
    %c0_167 = arith.constant 0 : index
    %584 = vector.load %arg10[%c1_166, %c0_167] : memref<2x128xf32, #tpu.memory_space<vmem>>, vector<1x128xf32>
    %585 = vector.shape_cast %584 : vector<1x128xf32> to vector<128xf32>
    %cst_168 = arith.constant dense<0.000000e+00> : vector<48xf32>
    %586 = vector.multi_reduction <add>, %581, %cst_168 [1] : vector<48x128xf32> to vector<48xf32>
    %587 = vector.shape_cast %586 : vector<48xf32> to vector<48x1xf32>
    %cst_169 = arith.constant 1.280000e+02 : f32
    %588 = vector.broadcast %cst_169 : f32 to vector<48x1xf32>
    %589 = arith.divf %587, %588 : vector<48x1xf32>
    %590 = vector.broadcast %589 : vector<48x1xf32> to vector<48x128xf32>
    %591 = arith.subf %581, %590 : vector<48x128xf32>
    %592 = vector.broadcast %589 : vector<48x1xf32> to vector<48x128xf32>
    %593 = arith.subf %581, %592 : vector<48x128xf32>
    %594 = arith.mulf %591, %593 : vector<48x128xf32>
    %cst_170 = arith.constant dense<0.000000e+00> : vector<48xf32>
    %595 = vector.multi_reduction <add>, %594, %cst_170 [1] : vector<48x128xf32> to vector<48xf32>
    %596 = vector.shape_cast %595 : vector<48xf32> to vector<48x1xf32>
    %cst_171 = arith.constant 1.280000e+02 : f32
    %597 = vector.broadcast %cst_171 : f32 to vector<48x1xf32>
    %598 = arith.divf %596, %597 : vector<48x1xf32>
    %599 = vector.broadcast %589 : vector<48x1xf32> to vector<48x128xf32>
    %600 = arith.subf %581, %599 : vector<48x128xf32>
    %cst_172 = arith.constant 9.99999974E-6 : f32
    %601 = vector.broadcast %cst_172 : f32 to vector<48x1xf32>
    %602 = arith.addf %598, %601 : vector<48x1xf32>
    %603 = math.rsqrt %602 : vector<48x1xf32>
    %604 = vector.broadcast %603 : vector<48x1xf32> to vector<48x128xf32>
    %605 = arith.mulf %600, %604 : vector<48x128xf32>
    %606 = vector.shape_cast %583 : vector<128xf32> to vector<1x128xf32>
    %607 = vector.broadcast %606 : vector<1x128xf32> to vector<48x128xf32>
    %608 = arith.mulf %605, %607 : vector<48x128xf32>
    %609 = vector.shape_cast %585 : vector<128xf32> to vector<1x128xf32>
    %610 = vector.broadcast %609 : vector<1x128xf32> to vector<48x128xf32>
    %611 = arith.addf %608, %610 : vector<48x128xf32>
    %612 = arith.truncf %611 : vector<48x128xf32> to vector<48x128xbf16>
    %c1_173 = arith.constant 1 : index
    %c0_174 = arith.constant 0 : index
    %c0_175 = arith.constant 0 : index
    %613 = vector.load %arg11[%c1_173, %c0_174, %c0_175] : memref<2x128x256xbf16, #tpu.memory_space<vmem>>, vector<1x128x256xbf16>
    %614 = vector.shape_cast %613 : vector<1x128x256xbf16> to vector<128x256xbf16>
    %cst_176 = arith.constant dense<0.000000e+00> : vector<48x256xf32>
    %615 = tpu.matmul %612, %614, %cst_176 {dimension_numbers = #tpu.dot_dimension_numbers<[1], [0], [0], [1], [0, 0, 1, 1], [], []>} : vector<48x128xbf16>, vector<128x256xbf16>, vector<48x256xf32> -> vector<48x256xf32>
    %c1_177 = arith.constant 1 : index
    %c0_178 = arith.constant 0 : index
    %616 = vector.load %arg12[%c1_177, %c0_178] : memref<2x256xf32, #tpu.memory_space<vmem>>, vector<1x256xf32>
    %617 = vector.shape_cast %616 : vector<1x256xf32> to vector<256xf32>
    %618 = vector.shape_cast %617 : vector<256xf32> to vector<1x256xf32>
    %619 = vector.broadcast %618 : vector<1x256xf32> to vector<48x256xf32>
    %620 = arith.addf %615, %619 : vector<48x256xf32>
    %cst_179 = arith.constant 0.000000e+00 : f32
    %621 = vector.broadcast %cst_179 : f32 to vector<48x256xf32>
    %622 = arith.maximumf %620, %621 : vector<48x256xf32>
    %623 = arith.truncf %622 : vector<48x256xf32> to vector<48x256xbf16>
    %c1_180 = arith.constant 1 : index
    %c0_181 = arith.constant 0 : index
    %c0_182 = arith.constant 0 : index
    %624 = vector.load %arg13[%c1_180, %c0_181, %c0_182] : memref<2x256x128xbf16, #tpu.memory_space<vmem>>, vector<1x256x128xbf16>
    %625 = vector.shape_cast %624 : vector<1x256x128xbf16> to vector<256x128xbf16>
    %cst_183 = arith.constant dense<0.000000e+00> : vector<48x128xf32>
    %626 = tpu.matmul %623, %625, %cst_183 {dimension_numbers = #tpu.dot_dimension_numbers<[1], [0], [0], [1], [0, 0, 1, 1], [], []>} : vector<48x256xbf16>, vector<256x128xbf16>, vector<48x128xf32> -> vector<48x128xf32>
    %c1_184 = arith.constant 1 : index
    %c0_185 = arith.constant 0 : index
    %627 = vector.load %arg14[%c1_184, %c0_185] : memref<2x128xf32, #tpu.memory_space<vmem>>, vector<1x128xf32>
    %628 = vector.shape_cast %627 : vector<1x128xf32> to vector<128xf32>
    %629 = vector.shape_cast %628 : vector<128xf32> to vector<1x128xf32>
    %630 = vector.broadcast %629 : vector<1x128xf32> to vector<48x128xf32>
    %631 = arith.addf %626, %630 : vector<48x128xf32>
    %632 = arith.addf %611, %631 : vector<48x128xf32>
    %c1_186 = arith.constant 1 : index
    %c0_187 = arith.constant 0 : index
    %633 = vector.load %arg15[%c1_186, %c0_187] : memref<2x128xf32, #tpu.memory_space<vmem>>, vector<1x128xf32>
    %634 = vector.shape_cast %633 : vector<1x128xf32> to vector<128xf32>
    %c1_188 = arith.constant 1 : index
    %c0_189 = arith.constant 0 : index
    %635 = vector.load %arg16[%c1_188, %c0_189] : memref<2x128xf32, #tpu.memory_space<vmem>>, vector<1x128xf32>
    %636 = vector.shape_cast %635 : vector<1x128xf32> to vector<128xf32>
    %cst_190 = arith.constant dense<0.000000e+00> : vector<48xf32>
    %637 = vector.multi_reduction <add>, %632, %cst_190 [1] : vector<48x128xf32> to vector<48xf32>
    %638 = vector.shape_cast %637 : vector<48xf32> to vector<48x1xf32>
    %cst_191 = arith.constant 1.280000e+02 : f32
    %639 = vector.broadcast %cst_191 : f32 to vector<48x1xf32>
    %640 = arith.divf %638, %639 : vector<48x1xf32>
    %641 = vector.broadcast %640 : vector<48x1xf32> to vector<48x128xf32>
    %642 = arith.subf %632, %641 : vector<48x128xf32>
    %643 = vector.broadcast %640 : vector<48x1xf32> to vector<48x128xf32>
    %644 = arith.subf %632, %643 : vector<48x128xf32>
    %645 = arith.mulf %642, %644 : vector<48x128xf32>
    %cst_192 = arith.constant dense<0.000000e+00> : vector<48xf32>
    %646 = vector.multi_reduction <add>, %645, %cst_192 [1] : vector<48x128xf32> to vector<48xf32>
    %647 = vector.shape_cast %646 : vector<48xf32> to vector<48x1xf32>
    %cst_193 = arith.constant 1.280000e+02 : f32
    %648 = vector.broadcast %cst_193 : f32 to vector<48x1xf32>
    %649 = arith.divf %647, %648 : vector<48x1xf32>
    %650 = vector.broadcast %640 : vector<48x1xf32> to vector<48x128xf32>
    %651 = arith.subf %632, %650 : vector<48x128xf32>
    %cst_194 = arith.constant 9.99999974E-6 : f32
    %652 = vector.broadcast %cst_194 : f32 to vector<48x1xf32>
    %653 = arith.addf %649, %652 : vector<48x1xf32>
    %654 = math.rsqrt %653 : vector<48x1xf32>
    %655 = vector.broadcast %654 : vector<48x1xf32> to vector<48x128xf32>
    %656 = arith.mulf %651, %655 : vector<48x128xf32>
    %657 = vector.shape_cast %634 : vector<128xf32> to vector<1x128xf32>
    %658 = vector.broadcast %657 : vector<1x128xf32> to vector<48x128xf32>
    %659 = arith.mulf %656, %658 : vector<48x128xf32>
    %660 = vector.shape_cast %636 : vector<128xf32> to vector<1x128xf32>
    %661 = vector.broadcast %660 : vector<1x128xf32> to vector<48x128xf32>
    %662 = arith.addf %659, %661 : vector<48x128xf32>
    %663 = vector.extract_strided_slice %662 {offsets = [0, 0], sizes = [1, 128], strides = [1, 1]} : vector<48x128xf32> to vector<1x128xf32>
    %664 = vector.extract_strided_slice %662 {offsets = [24, 0], sizes = [1, 128], strides = [1, 1]} : vector<48x128xf32> to vector<1x128xf32>
    %665 = tpu.concatenate %663, %664 in 0 : vector<1x128xf32>, vector<1x128xf32> -> vector<2x128xf32>
    %c0_195 = arith.constant 0 : index
    %c0_196 = arith.constant 0 : index
    %666 = vector.load %arg17[%c0_195, %c0_196] : memref<1x128xf32, #tpu.memory_space<vmem>>, vector<1x128xf32>
    %667 = vector.shape_cast %666 : vector<1x128xf32> to vector<128xf32>
    %c0_197 = arith.constant 0 : index
    %c0_198 = arith.constant 0 : index
    %668 = vector.load %arg18[%c0_197, %c0_198] : memref<1x128xf32, #tpu.memory_space<vmem>>, vector<1x128xf32>
    %669 = vector.shape_cast %668 : vector<1x128xf32> to vector<128xf32>
    %cst_199 = arith.constant dense<0.000000e+00> : vector<2xf32>
    %670 = vector.multi_reduction <add>, %665, %cst_199 [1] : vector<2x128xf32> to vector<2xf32>
    %671 = vector.shape_cast %670 : vector<2xf32> to vector<2x1xf32>
    %cst_200 = arith.constant 1.280000e+02 : f32
    %672 = vector.broadcast %cst_200 : f32 to vector<2x1xf32>
    %673 = arith.divf %671, %672 : vector<2x1xf32>
    %674 = vector.broadcast %673 : vector<2x1xf32> to vector<2x128xf32>
    %675 = arith.subf %665, %674 : vector<2x128xf32>
    %676 = vector.broadcast %673 : vector<2x1xf32> to vector<2x128xf32>
    %677 = arith.subf %665, %676 : vector<2x128xf32>
    %678 = arith.mulf %675, %677 : vector<2x128xf32>
    %cst_201 = arith.constant dense<0.000000e+00> : vector<2xf32>
    %679 = vector.multi_reduction <add>, %678, %cst_201 [1] : vector<2x128xf32> to vector<2xf32>
    %680 = vector.shape_cast %679 : vector<2xf32> to vector<2x1xf32>
    %cst_202 = arith.constant 1.280000e+02 : f32
    %681 = vector.broadcast %cst_202 : f32 to vector<2x1xf32>
    %682 = arith.divf %680, %681 : vector<2x1xf32>
    %683 = vector.broadcast %673 : vector<2x1xf32> to vector<2x128xf32>
    %684 = arith.subf %665, %683 : vector<2x128xf32>
    %cst_203 = arith.constant 9.99999974E-6 : f32
    %685 = vector.broadcast %cst_203 : f32 to vector<2x1xf32>
    %686 = arith.addf %682, %685 : vector<2x1xf32>
    %687 = math.rsqrt %686 : vector<2x1xf32>
    %688 = vector.broadcast %687 : vector<2x1xf32> to vector<2x128xf32>
    %689 = arith.mulf %684, %688 : vector<2x128xf32>
    %690 = vector.shape_cast %667 : vector<128xf32> to vector<1x128xf32>
    %691 = vector.broadcast %690 : vector<1x128xf32> to vector<2x128xf32>
    %692 = arith.mulf %689, %691 : vector<2x128xf32>
    %693 = vector.shape_cast %669 : vector<128xf32> to vector<1x128xf32>
    %694 = vector.broadcast %693 : vector<1x128xf32> to vector<2x128xf32>
    %695 = arith.addf %692, %694 : vector<2x128xf32>
    %696 = arith.truncf %695 : vector<2x128xf32> to vector<2x128xbf16>
    %c0_204 = arith.constant 0 : index
    %c0_205 = arith.constant 0 : index
    %697 = vector.load %arg19[%c0_204, %c0_205] : memref<128x128xbf16, #tpu.memory_space<vmem>>, vector<128x128xbf16>
    %cst_206 = arith.constant dense<0.000000e+00> : vector<2x128xf32>
    %698 = tpu.matmul %696, %697, %cst_206 {dimension_numbers = #tpu.dot_dimension_numbers<[1], [0], [0], [1], [0, 0, 1, 1], [], []>} : vector<2x128xbf16>, vector<128x128xbf16>, vector<2x128xf32> -> vector<2x128xf32>
    %c0_207 = arith.constant 0 : index
    %c0_208 = arith.constant 0 : index
    %699 = vector.load %arg20[%c0_207, %c0_208] : memref<1x128xf32, #tpu.memory_space<vmem>>, vector<1x128xf32>
    %700 = vector.shape_cast %699 : vector<1x128xf32> to vector<128xf32>
    %701 = vector.shape_cast %700 : vector<128xf32> to vector<1x128xf32>
    %702 = vector.broadcast %701 : vector<1x128xf32> to vector<2x128xf32>
    %703 = arith.addf %698, %702 : vector<2x128xf32>
    %c0_209 = arith.constant 0 : index
    %c0_210 = arith.constant 0 : index
    %704 = vector.load %arg21[%c0_209, %c0_210] : memref<2x128xf32, #tpu.memory_space<vmem>>, vector<2x128xf32>
    tpu.vector_store %arg21[%c0_209, %c0_210], %703 {strides = array<i32>} : memref<2x128xf32, #tpu.memory_space<vmem>>, vector<2x128xf32>,
    return
  }
}

</mosaic_0001>

<bundles_post_ra>
// kernel: vit_forward.1
= control target key start
LH: loop header
LB: loop body
LE: loop exit
PB: predicated region body
PF: predicated region fallthrough
CT: control target
= control target key end

     0   :  { %s9239_s0 = inlined_call_operand.vmem [shape: f32[32,48], index: 0, kind: input, shape index: {}]   ;;  %s9240_s1 = inlined_call_operand.vmem [shape: f32[1,128], index: 1, kind: input, shape index: {}]   ;;  %s9241_s2 = inlined_call_operand.vmem [shape: f32[24,128], index: 2, kind: input, shape index: {}]   ;;  %s9242_s3 = inlined_call_operand.vmem [shape: bf16[48,128], index: 3, kind: input, shape index: {}]   ;;  %s9243_s4 = inlined_call_operand.vmem [shape: f32[1,128], index: 4, kind: input, shape index: {}]   ;;  %s9244_s5 = inlined_call_operand.vmem [shape: bf16[2,128,384], index: 5, kind: input, shape index: {}]   ;;  %s9245_s6 = inlined_call_operand.vmem [shape: f32[2,384], index: 6, kind: input, shape index: {}]   ;;  %s9246_s7 = inlined_call_operand.vmem [shape: bf16[2,128,128], index: 7, kind: input, shape index: {}]   ;;  %s9247_s8 = inlined_call_operand.vmem [shape: f32[2,128], index: 8, kind: input, shape index: {}]   ;;  %s9248_s9 = inlined_call_operand.vmem [shape: f32[2,128], index: 9, kind: input, shape index: {}]   ;;  %s9249_s10 = inlined_call_operand.vmem [shape: f32[2,128], index: 10, kind: input, shape index: {}]   ;;  %s9250_s11 = inlined_call_operand.vmem [shape: bf16[2,128,256], index: 11, kind: input, shape index: {}]   ;;  %s9251_s12 = inlined_call_operand.vmem [shape: f32[2,256], index: 12, kind: input, shape index: {}]   ;;  %s9252_s13 = inlined_call_operand.vmem [shape: bf16[2,256,128], index: 13, kind: input, shape index: {}]   ;;  %s9253_s14 = inlined_call_operand.vmem [shape: f32[2,128], index: 14, kind: input, shape index: {}]   ;;  %s9254_s15 = inlined_call_operand.vmem [shape: f32[2,128], index: 15, kind: input, shape index: {}]   ;;  %s9255_s16 = inlined_call_operand.vmem [shape: f32[2,128], index: 16, kind: input, shape index: {}]   ;;  %s9256_s17 = inlined_call_operand.vmem [shape: f32[1,128], index: 17, kind: input, shape index: {}]   ;;  %s9257_s18 = inlined_call_operand.vmem [shape: f32[1,128], index: 18, kind: input, shape index: {}]   ;;  %s9258_s19 = inlined_call_operand.vmem [shape: bf16[128,128], index: 19, kind: input, shape index: {}]   ;;  %s9259_s20 = inlined_call_operand.vmem [shape: f32[1,128], index: 20, kind: input, shape index: {}]   ;;  %s9260_s21 = inlined_call_operand.hbm [shape: f32[2,128], index: 21, kind: output, shape index: {}]  }
   0x1   :  { %9265 = sst [smem:[#allocation5_spill]] %s9239_s0 }
   0x2   :  { %9266 = sst [smem:[#allocation6_spill]] %s9240_s1 }
   0x3   :  { %9267 = sst [smem:[#allocation7_spill]] %s9241_s2 }
   0x4   :  { %9268 = sst [smem:[#allocation8_spill]] %s9242_s3 }
   0x5   :  { %9269 = sst [smem:[#allocation9_spill]] %s9243_s4 }
   0x6   :  { %9270 = sst [smem:[#allocation10_spill]] %s9244_s5 }
   0x7   :  { %s9271_s26 = sld [smem:[#allocation8_spill]]  ;;  %vm107_vm0 = vcmask 392192   ;;  %v7451_v15 = vmov 0.0  }
   0x8   :  { %s9272_s0 = sld [smem:[#allocation5_spill]] }
   0x9   :  { %s9273_s24 = sld [smem:[#allocation10_spill]] }
   0xd   :  { %v7024_v0 = vld [vmem:[%s9271_s26 + $0x10] sm:$0xff]   ;;  %v7025_v1 = vld [vmem:[%s9271_s26 + $0x8] sm:$0xff]   ;;  %v7026_v4 = vld [vmem:[%s9271_s26] sm:$0xff]  }
   0xe   :  { %6498 = vmatprep.subr.bf16.mxu0 %v7024_v0  ;;  %v70_v2 = vld [vmem:[%s9272_s0] sm:$0xff]  ;;  %v71_v3 = vld [vmem:[%s9272_s0 + $0x8] sm:$0xff]  ;;  %v72_v8 = vld [vmem:[%s9272_s0 + $0x10] sm:$0xff] }
   0xf   :  { %6499 = vmatpush3.bf16.msra.mxu0 %v7024_v0  ;;  %v74_v5 = vpack.c.bf16 %v71_v3, %v70_v2  ;;  %v7027_v6 = vld [vmem:[%s9273_s24 + $0xac] ss:$12 sps:$4 sm:$0xff]   ;;  %v7029_v7 = vld [vmem:[%s9273_s24 + $0xa8] ss:$12 sps:$4 sm:$0xff]   ;;  %v7033_v11 = vld [vmem:[%s9273_s24 + $0x90] ss:$12 sps:$4 sm:$0xff]  }
  0x10   :  { %6500 = vmatprep.subr.bf16.mxu0 %v7025_v1  ;;  %v73_v9 = vld [vmem:[%s9272_s0 + $0x18] sm:$0xff]  ;;  %394 = vmatprep.subr.bf16.mxu1 %v7027_v6  ;;  %v7031_v10 = vld [vmem:[%s9273_s24 + $0x94] ss:$12 sps:$4 sm:$0xff]   ;;  %v7039_v18 = vld [vmem:[%s9273_s24 + $0x64] ss:$12 sps:$4 sm:$0xff]  }
  0x11   :  { %6504 = vmatprep.mubr.msk.bf16.mxu0 %vm107_vm0, %v74_v5  ;;  %395 = vmatpush1.bf16.msra.mxu1 %v7029_v7  ;;  %v7035_v12 = vld [vmem:[%s9273_s24 + $0x7c] ss:$12 sps:$4 sm:$0xff]   ;;  %v75_v13 = vpack.c.bf16 %v73_v9, %v72_v8  ;;  %v7037_v16 = vld [vmem:[%s9273_s24 + $0x78] ss:$12 sps:$4 sm:$0xff]   ;;  %v7041_v19 = vld [vmem:[%s9273_s24 + $0x60] ss:$12 sps:$4 sm:$0xff]  }
  0x12   :  { %396 = vmatprep.subr.bf16.mxu1 %v7031_v10  ;;  %v7030_v14 = vld [vmem:[%s9273_s24 + $0xb0] ss:$12 sps:$4 sm:$0xff]   ;;  %v7034_v17 = vld [vmem:[%s9273_s24 + $0x98] ss:$12 sps:$4 sm:$0xff]   ;;  %v7038_v20 = vld [vmem:[%s9273_s24 + $0x80] ss:$12 sps:$4 sm:$0xff]  }
  0x13   :  { %6501 = vmatpush3.bf16.msra.mxu0 %v7025_v1  ;;  %v7042_v21 = vld [vmem:[%s9273_s24 + $0x68] ss:$12 sps:$4 sm:$0xff]   ;;  %v7043_v22 = vld [vmem:[%s9273_s24 + $0x4c] ss:$12 sps:$4 sm:$0xff]   ;;  %v7046_v24 = vld [vmem:[%s9273_s24 + $0x50] ss:$12 sps:$4 sm:$0xff]  }
  0x14   :  { %6502 = vmatprep.subr.bf16.mxu0 %v7026_v4  ;;  %v7045_v23 = vld [vmem:[%s9273_s24 + $0x48] ss:$12 sps:$4 sm:$0xff]  }
  0x15   :  { %397 = vmatpush1.bf16.msra.mxu1 %v7033_v11 }
  0x16   :  { %398 = vmatprep.subr.bf16.mxu1 %v7035_v12 }
  0x17   :  { %6503 = vmatpush3.bf16.msra.mxu0 %v7026_v4 }
  0x18   :  { %6508 = vmatprep.subr.bf16.mxu0 %v7451_v15 }
  0x19   :  { %399 = vmatpush1.bf16.msra.mxu1 %v7037_v16 }
  0x1a   :  { %6505 = vmatmul.mubr.msk.bf16.vlgmr.msra.gmra.mxu0 %vm107_vm0, %v75_v13  ;;  %400 = vmatprep.subr.bf16.mxu1 %v7039_v18 }
  0x1b   :  { %6509 = vmatpush3.bf16.msra.mxu0 %v7030_v14 }
  0x1c   :  { %6510 = vmatprep.subr.bf16.mxu0 %v7451_v15 }
  0x1d   :  { %401 = vmatpush1.bf16.msra.mxu1 %v7041_v19 }
  0x1e   :  { %402 = vmatprep.subr.bf16.mxu1 %v7043_v22 }
  0x1f   :  { %6511 = vmatpush3.bf16.msra.mxu0 %v7034_v17 }
  0x20   :  { %6512 = vmatprep.subr.bf16.mxu0 %v7451_v15 }
  0x21   :  { %403 = vmatpush1.bf16.msra.mxu1 %v7045_v23 }
  0x23   :  { %6513 = vmatpush3.bf16.msra.mxu0 %v7038_v20 }
  0x24   :  { %6514 = vmatprep.subr.bf16.mxu0 %v7451_v15 }
  0x27   :  { %6515 = vmatpush3.bf16.msra.mxu0 %v7042_v21 }
  0x28   :  { %6516 = vmatprep.subr.bf16.mxu0 %v7451_v15 }
  0x2b   :  { %6517 = vmatpush3.bf16.msra.mxu0 %v7046_v24 }
  0x2c   :  { %26 = vsyncpa [#allocation3], 0  ;;  %v7047_v25 = vld [vmem:[%s9273_s24 + $0x34] ss:$12 sps:$4 sm:$0xff]   ;;  %6518 = vmatprep.subr.bf16.mxu0 %v7451_v15  ;;  %v7049_v26 = vld [vmem:[%s9273_s24 + $0x30] ss:$12 sps:$4 sm:$0xff]   ;;  %v194_v3 = vlaneseq }
  0x2d   :  { %v7050_v27 = vld [vmem:[%s9273_s24 + $0x38] ss:$12 sps:$4 sm:$0xff]   ;;  %404 = vmatprep.subr.bf16.mxu1 %v7047_v25  ;;  %v7051_v28 = vld [vmem:[%s9273_s24 + $0x1c] ss:$12 sps:$4 sm:$0xff]   ;;  %v7054_v30 = vld [vmem:[%s9273_s24 + $0x20] ss:$12 sps:$4 sm:$0xff]  }
  0x2e   :  { %405 = vmatpush1.bf16.msra.mxu1 %v7049_v26  ;;  %v7053_v29 = vld [vmem:[%s9273_s24 + $0x18] ss:$12 sps:$4 sm:$0xff]   ;;  %v7057_v32 = vld [vmem:[%s9273_s24] ss:$12 sps:$4 sm:$0xff]   ;;  %v7058_v33 = vld [vmem:[%s9273_s24 + $0x8] ss:$12 sps:$4 sm:$0xff]  }
  0x2f   :  { %6519 = vmatpush3.bf16.msra.mxu0 %v7050_v27  ;;  %406 = vmatprep.subr.bf16.mxu1 %v7051_v28  ;;  %v7055_v31 = vld [vmem:[%s9273_s24 + $0x4] ss:$12 sps:$4 sm:$0xff]   ;;  %v7452_v34 = vmov 0   ;;  %vm7453_vm1 = vmmov 0   ;;  %s9274_s22 = sld [smem:[#allocation9_spill]]  ;;  %vm169_vm2 = vcmask 1040384  }
  0x30   :  { %6520 = vmatprep.subr.bf16.mxu0 %v7451_v15  ;;  %426 = vmatprep.mubr.bf16.mxu1 %v7452_v34  ;;  %s9275_s0 = sld [smem:[#allocation6_spill]]  ;;  %v7721_v4 = vshrl.u32 %v194_v3, 7  ;;  %v249_v6 = vld [vmem:[%s9245_s6] ss:$2 sm:$0x7]  ;;  %vm518_vm3 = vcmask 261120  }
  0x31   :  { %6524 = vmatprep.mubr.msk.bf16.mxu0 %vm7453_vm1, %v7451_v15  ;;  %s9276_s27 = sld [smem:[#allocation7_spill]]  ;;  %s7454_s5 = smov 96   ;;  %vm629_vm4 = vcmask 1043456   ;;  %vm585_vm6 = vcmask 195584   ;;  %vm5696_vm7 = vcmask 1041408  }
  0x32   :  { %407 = vmatpush1.bf16.msra.mxu1 %v7053_v29  ;;  %v7724_v5 = vsub.s32 0, %v7721_v4  ;;  %v7733_v16 = vsub.s32 1, %v7721_v4  ;;  %v261_v20 = vsub.s32 2, %v7721_v4  ;;  %s7457_s25 = smov 32   ;;  %s7458_s29 = smov [#allocation2]  }
  0x33   :  { %6521 = vmatpush3.bf16.msra.mxu0 %v7054_v30  ;;  %408 = vmatprep.subr.bf16.mxu1 %v7055_v31 }
  0x34   :  { %6522 = vmatprep.subr.bf16.mxu0 %v7451_v15  ;;  %v254_v9 = vrot.slane %v249_v6, %v7724_v5  ;;  %v7739_v24 = vrot.slane %v249_v6, %v7733_v16  ;;  %v262_v28 = vrot.slane %v249_v6, %v261_v20 }
  0x35   :  { %v5851_v36 = vld [vmem:[%s9274_s22] ss:$0 sm:$0xff]  ;;  %s7456_s22 = smov 64  }
  0x36   :  { %409 = vmatpush1.bf16.msra.mxu1 %v7057_v32  ;;  %v163_v43 = vld [vmem:[%s9275_s0] sm:$0x1] }
  0x37   :  { %6523 = vmatpush3.bf16.msra.mxu0 %v7058_v33  ;;  %v164_v48 = vld [vmem:[%s9276_s27] sm:$0xff]  ;;  %v165_v49 = vld [vmem:[%s9276_s27 + $0x8] sm:$0xff]  ;;  %v166_v57 = vld [vmem:[%s9276_s27 + $0x10] sm:$0xff] }
  0xda   :  { %v6506_v35 = vpop.f32.mrf.mxu0 }
  0xdb   :  { %v157_v44 = vadd.f32 %v6506_v35, %v5851_v36 }
  0xdc   :  { %v148_v37 = vpop.f32.mrf.mxu0 }
  0xdd   :  { %v149_v38 = vadd.f32 %v5851_v36, %v148_v37  ;;  %v183_v52 = vrot.slane %v157_v44, 7 }
  0xde   :  { %v6507_v39 = vpop.f32.mrf.mxu0 }
  0xdf   :  { %v170_v40 = vrot.slane %v149_v38, 7  ;;  %v160_v54 = vadd.f32 %v6507_v39, %v5851_v36  ;;  %v189_v56 = vsel %vm169_vm2, %v163_v43, %v183_v52 }
  0xe0   :  { %v151_v41 = vpop.f32.mrf.mxu0  ;;  %v7705_v60 = vadd.f32 %v189_v56, %v164_v48 }
  0xe1   :  { %v152_v42 = vadd.f32 %v5851_v36, %v151_v41  ;;  %v176_v45 = vsel %vm169_vm2, %v163_v43, %v170_v40  ;;  %v184_v59 = vrot.slane %v160_v54, 7 }
  0xe2   :  { %v7689_v50 = vadd.f32 %v176_v45, %v164_v48 }
  0xe3   :  { %v171_v46 = vrot.slane %v152_v42, 7  ;;  %v185_v62 = vsel %vm169_vm2, %v183_v52, %v184_v59  ;;  %v190_v63 = vsel %vm169_vm2, %v184_v59, 0.0 }
  0xe4   :  { %v7714_v0 = vadd.f32 %v190_v63, %v166_v57  ;;  %v7716_v1 = vadd.f32 %v185_v62, %v165_v49 }
  0xe5   :  { %v172_v47 = vsel %vm169_vm2, %v170_v40, %v171_v46  ;;  %v177_v55 = vsel %vm169_vm2, %v171_v46, 0.0 }
  0xe6   :  { %v7691_v51 = vadd.f32 %v172_v47, %v165_v49  ;;  %v7703_v58 = vadd.f32 %v177_v55, %v166_v57  ;;  %v248_v2 = vpack.c.bf16 %v7714_v0, %v7716_v1 }
  0xe8   :  { %v246_v53 = vpack.c.bf16 %v7691_v51, %v7689_v50  ;;  %v247_v61 = vpack.c.bf16 %v7705_v60, %v7703_v58 }
  0xea   :  { %427 = vmatmul.mubr.bf16.vlgmr.msra.gmra.mxu1 %v246_v53  ;;  %6525 = vmatmul.mubr.bf16.vlgmr.msra.gmra.mxu0 %v246_v53 }
  0xeb   :  { %436 = vmatprep.mubr.bf16.mxu1 %v7452_v34  ;;  %6528 = vmatprep.mubr.msk.bf16.mxu0 %vm7453_vm1, %v7451_v15 }
  0xf2   :  { %437 = vmatmul.mubr.bf16.gmra.mxu1 %v247_v61  ;;  %6529 = vmatmul.mubr.bf16.gmra.mxu0 %v247_v61 }
  0xf3   :  { %446 = vmatprep.mubr.bf16.mxu1 %v7452_v34  ;;  %6532 = vmatprep.mubr.msk.bf16.mxu0 %vm7453_vm1, %v7451_v15 }
  0xfa   :  { %447 = vmatmul.mubr.bf16.gmra.mxu1 %v248_v2  ;;  %6533 = vmatmul.mubr.bf16.gmra.mxu0 %v248_v2 }
 0x1aa   :  { %v428_v7 = vpop.f32.mrf.mxu1  ;;  %v7729_v8 = vpop.f32.mrf.mxu0 }
 0x1ab   :  { %v429_v14 = vadd.f32 %v428_v7, %v254_v9 }
 0x1ac   :  { %v430_v10 = vpop.f32.mrf.mxu1  ;;  %v6526_v11 = vpop.f32.mrf.mxu0 }
 0x1ad   :  { %v431_v35 = vadd.f32 %v430_v10, %v7739_v24  ;;  %v492_v10 = vadd.f32 %v7729_v8, %v262_v28 }
 0x1ae   :  { %v432_v12 = vpop.f32.mrf.mxu1  ;;  %v494_v13 = vpop.f32.mrf.mxu0 }
 0x1af   :  { %v433_v17 = vadd.f32 %v432_v12, %v254_v9  ;;  %v495_v7 = vadd.f32 %v494_v13, %v262_v28 }
 0x1b0   :  { %v434_v18 = vpop.f32.mrf.mxu1  ;;  %v6527_v19 = vpop.f32.mrf.mxu0 }
 0x1b1   :  { %v7736_v21 = vpack.c.bf16 %v433_v17, %v429_v14  ;;  %v435_v29 = vadd.f32 %v434_v18, %v7739_v24  ;;  %v7787_v11 = vpack.c.bf16 %v495_v7, %v492_v10 }
 0x1b2   :  { %v438_v22 = vpop.f32.mrf.mxu1  ;;  %v499_v23 = vpop.f32.mrf.mxu0 }
 0x1b3   :  { %v439_v25 = vadd.f32 %v438_v22, %v254_v9  ;;  %685 = vrot.lane.b32.xlu1 %v7736_v21, %s7454_s5  ;;  %6540 = vmatprep.mubr.msk.bf16.mxu1 %vm518_vm3, %v7736_v21  ;;  %v7756_v41 = vpack.c.bf16 %v435_v29, %v431_v35  ;;  %v500_v47 = vadd.f32 %v499_v23, %v262_v28 }
 0x1b4   :  { %v440_v26 = vpop.f32.mrf.mxu1  ;;  %v6530_v27 = vpop.f32.mrf.mxu0 }
 0x1b5   :  { %v7748_v30 = vpack.c.bf16 %v439_v25, %v439_v25  ;;  %v441_v31 = vadd.f32 %v440_v26, %v7739_v24  ;;  %v7780_v2 = vpack.c.bf16 %v500_v47, %v500_v47  ;;  %v526_v6 = vsel %vm518_vm3, %v7756_v41, 0 }
 0x1b6   :  { %v442_v32 = vpop.f32.mrf.mxu1  ;;  %v502_v33 = vpop.f32.mrf.mxu0  ;;  %v195_v26 = vand.u32 127, %v194_v3 }
 0x1b7   :  { %v7752_v36 = vpack.c.bf16 %v441_v31, %v441_v31  ;;  %v443_v37 = vadd.f32 %v442_v32, %v254_v9  ;;  %v503_v38 = vadd.f32 %v502_v33, %v262_v28  ;;  %687 = vrot.lane.b32.xlu1 %v7748_v30, %s7454_s5  ;;  %v7455_v32 = vmov -1e+30  }
 0x1b8   :  { %v444_v39 = vpop.f32.mrf.mxu1  ;;  %v6531_v40 = vpop.f32.mrf.mxu0  ;;  %vm196_vm5 = vcmp.lt.s32.totalorder %v195_v26, 17 }
 0x1b9   :  { %693 = vrot.lane.b32.xlu0 %v7752_v36, %s7454_s5  ;;  %6968 = vmatprep.subr.msk.bf16.mxu1 %vm518_vm3, %v7752_v36  ;;  %v529_v42 = vsel %vm518_vm3, %v7752_v36, 0  ;;  %v445_v52 = vadd.f32 %v444_v39, %v7739_v24  ;;  %v7804_v33 = vsel %vm196_vm5, 0.0, %v7455_v32 }
 0x1ba   :  { %v448_v43 = vpop.f32.mrf.mxu1  ;;  %v507_v44 = vpop.f32.mrf.mxu0  ;;  %6537 = vmatpush3.bf16.xpose.msra.mxu1 %v529_v42 }
 0x1bb   :  { %v449_v45 = vadd.f32 %v448_v43, %v254_v9  ;;  %v508_v46 = vadd.f32 %v507_v44, %v262_v28  ;;  %6969 = vmatprep.subr.msk.bf16.mxu1 %vm518_vm3, %v7756_v41 }
 0x1bc   :  { %v450_v48 = vpop.f32.mrf.mxu1  ;;  %v6534_v49 = vpop.f32.mrf.mxu0 }
 0x1bd   :  { %v7767_v53 = vpack.c.bf16 %v449_v45, %v443_v37  ;;  %v7769_v54 = vpack.c.bf16 %v508_v46, %v503_v38  ;;  %v451_v55 = vadd.f32 %v450_v48, %v7739_v24  ;;  %691 = vrot.lane.b32.xlu0 %v7756_v41, %s7454_s5 }
 0x1be   :  { %v452_v56 = vpop.f32.mrf.mxu1  ;;  %v510_v57 = vpop.f32.mrf.mxu0 }
 0x1bf   :  { %v7774_v59 = vpack.c.bf16 %v451_v55, %v445_v52  ;;  %v7776_v61 = vadd.f32 %v452_v56, %v254_v9  ;;  %v7778_v62 = vadd.f32 %v510_v57, %v262_v28  ;;  %v631_v9 = vsel %vm629_vm4, %v7780_v2, 0 }
 0x1c0   :  { %v6535_v63 = vpop.f32.mrf.mxu0  ;;  %v7801_v19 = vpop.f32.mrf.mxu1 }
 0x1c2   :  { %6539 = vmatpush3.bf16.xpose.msra.mxu1 %v526_v6 }
 0x1c3   :  { %6970 = vmatprep.subr.msk.bf16.mxu1 %vm629_vm4, %v7780_v2 }
 0x1c9   :  { %6541 = vmatmul.mubr.msk.bf16.vlgmr.msra.gmra.mxu1 %vm518_vm3, %v7748_v30 }
 0x1ca   :  { %6545 = vmatpush3.bf16.msra.mxu1 %v631_v9 }
 0x1cb   :  { %6546 = vmatprep.subr.bf16.mxu1 %v7787_v11 }
 0x1ce   :  { %6547 = vmatpush3.bf16.msra.mxu1 %v7787_v11 }
 0x225   :  { %v686_v12 = vpop.permute.xlu1 %685 }
 0x226   :  { %6556 = vmatprep.mubr.msk.bf16.mxu0 %vm518_vm3, %v686_v12 }
 0x229   :  { %v688_v18 = vpop.permute.xlu1 %687 }
 0x22b   :  { %v694_v14 = vpop.permute.xlu0 %693 }
 0x22c   :  { %6971 = vmatprep.subr.msk.bf16.mxu0 %vm518_vm3, %v694_v14  ;;  %v705_v8 = vsel %vm518_vm3, %v694_v14, 0 }
 0x22d   :  { %6553 = vmatpush3.bf16.xpose.msra.mxu0 %v705_v8 }
 0x22f   :  { %v692_v13 = vpop.permute.xlu0 %691 }
 0x230   :  { %6972 = vmatprep.subr.msk.bf16.mxu0 %vm518_vm3, %v692_v13  ;;  %v702_v17 = vsel %vm518_vm3, %v692_v13, 0 }
 0x235   :  { %6555 = vmatpush3.bf16.xpose.msra.mxu0 %v702_v17 }
 0x23c   :  { %6557 = vmatmul.mubr.msk.bf16.vlgmr.msra.gmra.mxu0 %vm518_vm3, %v688_v18 }
 0x289   :  { %v6542_v22 = vpop.f32.mrf.mxu1 }
 0x28a   :  { %v581_v13 = vmul.f32 0.17677669, %v6542_v22 }
 0x28b   :  { %v565_v23 = vpop.f32.mrf.mxu1 }
 0x28c   :  { %v579_v14 = vmul.f32 0.17677669, %v565_v23  ;;  %v584_v26 = vadd.f32 %v581_v13, %v7804_v33 }
 0x28d   :  { %v6543_v25 = vpop.f32.mrf.mxu1 }
 0x28e   :  { %v582_v17 = vadd.f32 %v579_v14, %v7804_v33 }
 0x28f   :  { %v568_v8 = vpop.f32.mrf.mxu1 }
 0x290   :  { %v580_v18 = vmul.f32 0.17677669, %v568_v8  ;;  %v586_v25 = vsel %vm585_vm6, %v582_v17, -inf }
 0x2fc   :  { %v6558_v27 = vpop.f32.mrf.mxu0 }
 0x2fd   :  { %v757_v29 = vmul.f32 0.17677669, %v6558_v27  ;;  %v583_v27 = vadd.f32 %v580_v18, %v7804_v33 }
 0x2fe   :  { %v741_v28 = vpop.f32.mrf.mxu0 }
 0x2ff   :  { %v755_v31 = vmul.f32 0.17677669, %v741_v28  ;;  %v760_v42 = vadd.f32 %v757_v29, %v7804_v33  ;;  %v592_v28 = vsel %vm585_vm6, %v584_v26, -inf  ;;  %v589_v29 = vsel %vm585_vm6, %v583_v27, -inf }
 0x300   :  { %v6559_v35 = vpop.f32.mrf.mxu0 }
 0x301   :  { %v758_v37 = vadd.f32 %v755_v31, %v7804_v33  ;;  %v767_v43 = vsel %vm585_vm6, %v760_v42, -inf }
 0x302   :  { %v744_v38 = vpop.f32.mrf.mxu0 }
 0x303   :  { %v756_v39 = vmul.f32 0.17677669, %v744_v38  ;;  %v761_v40 = vsel %vm585_vm6, %v758_v37, -inf  ;;  %v7838_v38 = vld [vmem:[%s9246_s7 + $0x18] sm:$0xff]  }
 0x304   :  { %762 = vmax.xlane.f32.xlu0 %v761_v40 }
 0x305   :  { %v759_v3 = vadd.f32 %v756_v39, %v7804_v33 }
 0x307   :  { %v764_v44 = vsel %vm585_vm6, %v759_v3, -inf }
 0x308   :  { %768 = vmax.xlane.f32.xlu0 %v767_v43  ;;  %765 = vmax.xlane.f32.xlu1 %v764_v44 }
 0x38d   :  { %v763_v45 = vpop.xlane.xlu0 %762 }
 0x38e   :  { %v770_v46 = vsub.f32 %v758_v37, %v763_v45 }
 0x390   :  { %v773_v55 = vmul.f32 1.442695, %v770_v46 }
 0x391   :  { %v769_v47 = vpop.xlane.xlu0 %768  ;;  %v766_v48 = vpop.xlane.xlu1 %765 }
 0x392   :  { %v772_v49 = vsub.f32 %v760_v42, %v769_v47  ;;  %v771_v52 = vsub.f32 %v759_v3, %v766_v48  ;;  %v7844_v47 = vld [vmem:[%s9246_s7 + $0x10] sm:$0xff]  }
 0x394   :  { %v777_v56 = vmul.f32 1.442695, %v772_v49  ;;  %v775_v57 = vmul.f32 1.442695, %v771_v52 }
 0x396   :  { %7195 = vpow2.f32 %v777_v56 }
 0x397   :  { %7197 = vpow2.f32 %v775_v57 }
 0x398   :  { %7199 = vpow2.f32 %v773_v55 }
 0x3a3   :  { %v7196_v63 = vpop.eup %7195 }
 0x3a4   :  { %v7198_v6 = vpop.eup %7197  ;;  %v785_v7 = vsel %vm585_vm6, %v7196_v63, 0.0 }
 0x3a5   :  { %v7200_v10 = vpop.eup %7199  ;;  %786 = vadd.xlane.f32.xlu0 %v785_v7  ;;  %v782_v9 = vsel %vm585_vm6, %v7198_v6, 0.0 }
 0x3a6   :  { %783 = vadd.xlane.f32.xlu1 %v782_v9  ;;  %v779_v12 = vsel %vm585_vm6, %v7200_v10, 0.0 }
 0x3a9   :  { %780 = vadd.xlane.f32.xlu0 %v779_v12 }
 0x3b7   :  { %800 = vrot.lane.b32.xlu1 %v7780_v2, %s7454_s5 }
 0x3bb   :  { %1000 = vrot.lane.b32.xlu1 %v7752_v36, %s7456_s22 }
 0x3bf   :  { %998 = vrot.lane.b32.xlu1 %v7756_v41, %s7456_s22  ;;  %798 = vrot.lane.b32.xlu0 %v7787_v11, %s7454_s5 }
 0x3c3   :  { %996 = vrot.lane.b32.xlu1 %v7748_v30, %s7456_s22  ;;  %994 = vrot.lane.b32.xlu0 %v7736_v21, %s7456_s22 }
 0x3e2   :  { %587 = vmax.xlane.f32.xlu0 %v586_v25 }
 0x3e6   :  { %593 = vmax.xlane.f32.xlu0 %v592_v28 }
 0x3e7   :  { %590 = vmax.xlane.f32.xlu1 %v589_v29 }
 0x42e   :  { %v787_v31 = vpop.xlane.xlu0 %786 }
 0x42f   :  { %v784_v23 = vpop.xlane.xlu1 %783  ;;  %7201 = vrcp.f32 %v787_v31 }
 0x430   :  { %7203 = vrcp.f32 %v784_v23 }
 0x432   :  { %v781_v22 = vpop.xlane.xlu0 %780 }
 0x433   :  { %7205 = vrcp.f32 %v781_v22  ;;  %v801_v32 = vpop.permute.xlu1 %800 }
 0x434   :  { %6973 = vmatprep.subr.msk.bf16.mxu0 %vm629_vm4, %v801_v32  ;;  %v810_v35 = vsel %vm629_vm4, %v801_v32, 0 }
 0x435   :  { %6561 = vmatpush3.bf16.msra.mxu0 %v810_v35 }
 0x436   :  { %v799_v37 = vpop.permute.xlu0 %798 }
 0x437   :  { %6562 = vmatprep.subr.bf16.mxu0 %v799_v37  ;;  %v1001_v48 = vpop.permute.xlu1 %1000 }
 0x439   :  { %6563 = vmatpush3.bf16.msra.mxu0 %v799_v37 }
 0x43a   :  { %6568 = vmatprep.subr.bf16.mxu0 %v7838_v38  ;;  %v995_v52 = vpop.permute.xlu0 %994 }
 0x43b   :  { %v999_v49 = vpop.permute.xlu1 %998 }
 0x43c   :  { %v7202_v39 = vpop.eup %7201 }
 0x43d   :  { %v7204_v40 = vpop.eup %7203  ;;  %v793_v3 = vmul.f32 %v7202_v39, %v7196_v63 }
 0x43e   :  { %v792_v44 = vmul.f32 %v7204_v40, %v7198_v6 }
 0x43f   :  { %v795_v46 = vpack.c.bf16 %v793_v3, %v793_v3  ;;  %v997_v56 = vpop.permute.xlu1 %996 }
 0x440   :  { %v7206_v42 = vpop.eup %7205 }
 0x441   :  { %v791_v43 = vmul.f32 %v7206_v42, %v7200_v10 }
 0x443   :  { %v794_v45 = vpack.c.bf16 %v792_v44, %v791_v43 }
 0x445   :  { %6564 = vmatprep.mubr.msk.bf16.mxu0 %vm585_vm6, %v794_v45 }
 0x446   :  { %6565 = vmatmul.mubr.msk.bf16.vlgmr.msra.gmra.mxu0 %vm585_vm6, %v795_v46 }
 0x447   :  { %6569 = vmatpush3.bf16.msra.mxu0 %v7838_v38 }
 0x448   :  { %6570 = vmatprep.subr.bf16.mxu0 %v7844_v47 }
 0x44b   :  { %6571 = vmatpush3.bf16.msra.mxu0 %v7844_v47 }
 0x44c   :  { %6974 = vmatprep.subr.msk.bf16.mxu0 %vm518_vm3, %v1001_v48 }
 0x46b   :  { %v588_v55 = vpop.xlane.xlu0 %587 }
 0x46c   :  { %v595_v57 = vsub.f32 %v582_v17, %v588_v55 }
 0x46e   :  { %v598_v63 = vmul.f32 1.442695, %v595_v57 }
 0x46f   :  { %v594_v6 = vpop.xlane.xlu0 %593 }
 0x470   :  { %7207 = vpow2.f32 %v598_v63  ;;  %v597_v7 = vsub.f32 %v584_v26, %v594_v6  ;;  %v591_v10 = vpop.xlane.xlu1 %590  ;;  %v7901_v6 = vld [vmem:[%s9246_s7 + $0x8] sm:$0xff]  }
 0x471   :  { %v596_v9 = vsub.f32 %v583_v27, %v591_v10  ;;  %6576 = vmatprep.subr.bf16.mxu1 %v7901_v6 }
 0x472   :  { %v602_v12 = vmul.f32 1.442695, %v597_v7  ;;  %v7908_v7 = vld [vmem:[%s9246_s7] sm:$0xff]  }
 0x473   :  { %v600_v14 = vmul.f32 1.442695, %v596_v9 }
 0x474   :  { %7209 = vpow2.f32 %v602_v12 }
 0x475   :  { %7211 = vpow2.f32 %v600_v14 }
 0x47d   :  { %v7208_v8 = vpop.eup %7207 }
 0x47e   :  { %v604_v13 = vsel %vm585_vm6, %v7208_v8, 0.0 }
 0x47f   :  { %605 = vadd.xlane.f32.xlu0 %v604_v13 }
 0x481   :  { %v7210_v18 = vpop.eup %7209 }
 0x482   :  { %v7212_v25 = vpop.eup %7211  ;;  %v610_v28 = vsel %vm585_vm6, %v7210_v18, 0.0 }
 0x483   :  { %611 = vadd.xlane.f32.xlu0 %v610_v28  ;;  %v607_v17 = vsel %vm585_vm6, %v7212_v25, 0.0 }
 0x484   :  { %608 = vadd.xlane.f32.xlu1 %v607_v17 }
 0x495   :  { %1242 = vrot.lane.b32.xlu1 %v7752_v36, %s7457_s25 }
 0x499   :  { %1236 = vrot.lane.b32.xlu1 %v7736_v21, %s7457_s25  ;;  %1240 = vrot.lane.b32.xlu0 %v7756_v41, %s7457_s25  ;;  %v1012_v21 = vsel %vm518_vm3, %v1001_v48, 0 }
 0x49d   :  { %1238 = vrot.lane.b32.xlu1 %v7748_v30, %s7457_s25  ;;  %v1009_v30 = vsel %vm518_vm3, %v999_v49, 0 }
 0x506   :  { %v6566_v26 = vpop.f32.mrf.mxu0 }
 0x507   :  { %v861_v36 = vpack.c.bf16 %v6566_v26, %v6566_v26 }
 0x508   :  { %v846_v27 = vpop.f32.mrf.mxu0  ;;  %v606_v29 = vpop.xlane.xlu0 %605 }
 0x509   :  { %7213 = vrcp.f32 %v606_v29 }
 0x50a   :  { %v6567_v31 = vpop.f32.mrf.mxu0 }
 0x50c   :  { %v849_v23 = vpop.f32.mrf.mxu0  ;;  %v612_v22 = vpop.xlane.xlu0 %611 }
 0x50d   :  { %v860_v32 = vpack.c.bf16 %v849_v23, %v846_v27  ;;  %7215 = vrcp.f32 %v612_v22  ;;  %v609_v35 = vpop.xlane.xlu1 %608 }
 0x50e   :  { %7217 = vrcp.f32 %v609_v35 }
 0x50f   :  { %6572 = vmatprep.mubr.msk.bf16.mxu0 %vm518_vm3, %v860_v32 }
 0x510   :  { %6573 = vmatmul.mubr.msk.bf16.vlgmr.msra.gmra.mxu0 %vm518_vm3, %v861_v36  ;;  %v1241_v48 = vpop.permute.xlu0 %1240 }
 0x511   :  { %6585 = vmatpush3.bf16.xpose.msra.mxu0 %v1012_v21  ;;  %6588 = vmatprep.mubr.msk.bf16.mxu0 %vm518_vm3, %v995_v52  ;;  %v1243_v37 = vpop.permute.xlu1 %1242  ;;  %v455_v52 = vadd.f32 %v7801_v19, %v7739_v24  ;;  %v1251_v57 = vsel %vm518_vm3, %v1241_v48, 0  ;;  %v1489_v24 = vsel %vm518_vm3, %v7774_v59, 0  ;;  %v7894_v19 = vpack.c.bf16 %v7776_v61, %v7776_v61 }
 0x512   :  { %6975 = vmatprep.subr.msk.bf16.mxu0 %vm518_vm3, %v999_v49  ;;  %v1254_v46 = vsel %vm518_vm3, %v1243_v37, 0 }
 0x513   :  { %v7878_v55 = vpack.c.bf16 %v455_v52, %v455_v52 }
 0x515   :  { %v1237_v49 = vpop.permute.xlu1 %1236  ;;  %v1492_v63 = vsel %vm518_vm3, %v7878_v55, 0 }
 0x516   :  { %v7214_v41 = vpop.eup %7213 }
 0x517   :  { %v616_v3 = vmul.f32 %v7214_v41, %v7208_v8 }
 0x519   :  { %6587 = vmatpush3.bf16.xpose.msra.mxu0 %v1009_v30 }
 0x51a   :  { %v7216_v39 = vpop.eup %7215  ;;  %6977 = vmatprep.subr.msk.bf16.mxu0 %vm518_vm3, %v1243_v37 }
 0x51b   :  { %v7218_v40 = vpop.eup %7217  ;;  %v618_v42 = vmul.f32 %v7216_v39, %v7210_v18 }
 0x51c   :  { %v617_v43 = vmul.f32 %v7218_v40, %v7212_v25 }
 0x51d   :  { %v620_v44 = vpack.c.bf16 %v618_v42, %v618_v42 }
 0x51e   :  { %v619_v45 = vpack.c.bf16 %v617_v43, %v616_v3 }
 0x520   :  { %6548 = vmatprep.mubr.msk.bf16.mxu1 %vm585_vm6, %v619_v45  ;;  %6589 = vmatmul.mubr.msk.bf16.vlgmr.msra.gmra.mxu0 %vm518_vm3, %v997_v56  ;;  %v1239_v56 = vpop.permute.xlu1 %1238 }
 0x521   :  { %6549 = vmatmul.mubr.msk.bf16.vlgmr.msra.gmra.mxu1 %vm585_vm6, %v620_v44  ;;  %6609 = vmatpush3.bf16.xpose.msra.mxu0 %v1254_v46 }
 0x522   :  { %6612 = vmatprep.mubr.msk.bf16.mxu0 %vm518_vm3, %v1237_v49  ;;  %6978 = vmatprep.subr.msk.bf16.mxu0 %vm518_vm3, %v1241_v48 }
 0x523   :  { %6577 = vmatpush3.bf16.msra.mxu1 %v7901_v6 }
 0x524   :  { %6578 = vmatprep.subr.bf16.mxu1 %v7908_v7 }
 0x527   :  { %6579 = vmatpush3.bf16.msra.mxu1 %v7908_v7 }
 0x529   :  { %6611 = vmatpush3.bf16.xpose.msra.mxu0 %v1251_v57 }
 0x52a   :  { %6980 = vmatprep.subr.msk.bf16.mxu0 %vm518_vm3, %v7878_v55 }
 0x530   :  { %6613 = vmatmul.mubr.msk.bf16.vlgmr.msra.gmra.mxu0 %vm518_vm3, %v1239_v56 }
 0x531   :  { %6633 = vmatpush3.bf16.xpose.msra.mxu0 %v1492_v63  ;;  %6636 = vmatprep.mubr.msk.bf16.mxu0 %vm518_vm3, %v7767_v53 }
 0x532   :  { %6981 = vmatprep.subr.msk.bf16.mxu0 %vm518_vm3, %v7774_v59 }
 0x539   :  { %6635 = vmatpush3.bf16.xpose.msra.mxu0 %v1489_v24 }
 0x540   :  { %6637 = vmatmul.mubr.msk.bf16.vlgmr.msra.gmra.mxu0 %vm518_vm3, %v7894_v19 }
 0x5d0   :  { %v7912_v61 = vpop.f32.mrf.mxu0 }
 0x5d2   :  { %v7914_v10 = vpop.f32.mrf.mxu0 }
 0x5d4   :  { %v6575_v9 = vpop.f32.mrf.mxu0 }
 0x5d6   :  { %v7916_v12 = vpop.f32.mrf.mxu0 }
 0x5e0   :  { %v6590_v14 = vpop.f32.mrf.mxu0 }
 0x5e1   :  { %v6550_v8 = vpop.f32.mrf.mxu1  ;;  %v1064_v18 = vmul.f32 0.17677669, %v6590_v14 }
 0x5e2   :  { %v1048_v13 = vpop.f32.mrf.mxu0  ;;  %v682_v36 = vpack.c.bf16 %v6550_v8, %v6550_v8 }
 0x5e3   :  { %v1062_v25 = vmul.f32 0.17677669, %v1048_v13  ;;  %v667_v28 = vpop.f32.mrf.mxu1  ;;  %v1067_v32 = vadd.f32 %v1064_v18, %v7804_v33 }
 0x5e4   :  { %v6591_v17 = vpop.f32.mrf.mxu0 }
 0x5e5   :  { %v6551_v26 = vpop.f32.mrf.mxu1  ;;  %v1065_v27 = vadd.f32 %v1062_v25, %v7804_v33  ;;  %v1074_v30 = vsel %vm585_vm6, %v1067_v32, -inf }
 0x5e6   :  { %v1051_v29 = vpop.f32.mrf.mxu0 }
 0x5e7   :  { %v1063_v31 = vmul.f32 0.17677669, %v1051_v29  ;;  %v670_v23 = vpop.f32.mrf.mxu1  ;;  %v1068_v22 = vsel %vm585_vm6, %v1065_v27, -inf }
 0x5e8   :  { %v681_v35 = vpack.c.bf16 %v670_v23, %v667_v28  ;;  %1069 = vmax.xlane.f32.xlu0 %v1068_v22 }
 0x5e9   :  { %v1066_v21 = vadd.f32 %v1063_v31, %v7804_v33 }
 0x5ea   :  { %6580 = vmatprep.mubr.msk.bf16.mxu1 %vm518_vm3, %v681_v35 }
 0x5eb   :  { %6581 = vmatmul.mubr.msk.bf16.vlgmr.msra.gmra.mxu1 %vm518_vm3, %v682_v36  ;;  %v1071_v41 = vsel %vm585_vm6, %v1066_v21, -inf }
 0x5ec   :  { %1075 = vmax.xlane.f32.xlu0 %v1074_v30  ;;  %1072 = vmax.xlane.f32.xlu1 %v1071_v41 }
 0x5f0   :  { %v6614_v37 = vpop.f32.mrf.mxu0 }
 0x5f1   :  { %v1306_v31 = vmul.f32 0.17677669, %v6614_v37 }
 0x5f2   :  { %v1290_v39 = vpop.f32.mrf.mxu0 }
 0x5f3   :  { %v1309_v35 = vadd.f32 %v1306_v31, %v7804_v33 }
 0x5f4   :  { %v6615_v40 = vpop.f32.mrf.mxu0 }
 0x5f6   :  { %v1293_v42 = vpop.f32.mrf.mxu0 }
 0x5f7   :  { %v1305_v29 = vmul.f32 0.17677669, %v1293_v42 }
 0x5f9   :  { %v1308_v22 = vadd.f32 %v1305_v29, %v7804_v33 }
 0x5fb   :  { %v1313_v36 = vsel %vm585_vm6, %v1308_v22, -inf }
 0x600   :  { %v7926_v3 = vpop.f32.mrf.mxu0 }
 0x602   :  { %v7928_v43 = vpop.f32.mrf.mxu0 }
 0x604   :  { %v6639_v44 = vpop.f32.mrf.mxu0 }
 0x605   :  { %v7952_v44 = vld [vmem:[%s9246_s7 + $0x28] sm:$0xff]  }
 0x671   :  { %v1070_v45 = vpop.xlane.xlu0 %1069 }
 0x672   :  { %v1077_v46 = vsub.f32 %v1065_v27, %v1070_v45  ;;  %v1304_v27 = vmul.f32 0.17677669, %v1290_v39 }
 0x674   :  { %v1080_v56 = vmul.f32 1.442695, %v1077_v46  ;;  %v1307_v23 = vadd.f32 %v1304_v27, %v7804_v33 }
 0x675   :  { %v1076_v48 = vpop.xlane.xlu0 %1075  ;;  %v1073_v49 = vpop.xlane.xlu1 %1072 }
 0x676   :  { %v1079_v52 = vsub.f32 %v1067_v32, %v1076_v48  ;;  %v1078_v57 = vsub.f32 %v1066_v21, %v1073_v49  ;;  %v1310_v32 = vsel %vm585_vm6, %v1307_v23, -inf  ;;  %v1316_v21 = vsel %vm585_vm6, %v1309_v35, -inf }
 0x678   :  { %v1084_v63 = vmul.f32 1.442695, %v1079_v52  ;;  %v1082_v24 = vmul.f32 1.442695, %v1078_v57 }
 0x67a   :  { %7219 = vpow2.f32 %v1084_v63 }
 0x67b   :  { %7221 = vpow2.f32 %v1082_v24 }
 0x67c   :  { %7223 = vpow2.f32 %v1080_v56 }
 0x687   :  { %v7220_v9 = vpop.eup %7219 }
 0x688   :  { %v7222_v14 = vpop.eup %7221  ;;  %v1092_v8 = vsel %vm585_vm6, %v7220_v9, 0.0 }
 0x689   :  { %v7224_v13 = vpop.eup %7223  ;;  %1093 = vadd.xlane.f32.xlu0 %v1092_v8  ;;  %v1089_v18 = vsel %vm585_vm6, %v7222_v14, 0.0 }
 0x68a   :  { %1090 = vadd.xlane.f32.xlu1 %v1089_v18  ;;  %v1086_v25 = vsel %vm585_vm6, %v7224_v13, 0.0 }
 0x68d   :  { %1087 = vadd.xlane.f32.xlu0 %v1086_v25 }
 0x69b   :  { %1105 = vrot.lane.b32.xlu1 %v7780_v2, %s7456_s22 }
 0x6a3   :  { %1103 = vrot.lane.b32.xlu0 %v7787_v11, %s7456_s22 }
 0x6ab   :  { %v7937_v28 = vpop.f32.mrf.mxu1 }
 0x6ad   :  { %v7939_v17 = vpop.f32.mrf.mxu1 }
 0x6af   :  { %v6583_v26 = vpop.f32.mrf.mxu1 }
 0x6bf   :  { %1311 = vmax.xlane.f32.xlu1 %v1310_v32 }
 0x6c2   :  { %1314 = vmax.xlane.f32.xlu0 %v1313_v36 }
 0x6c3   :  { %1317 = vmax.xlane.f32.xlu1 %v1316_v21 }
 0x712   :  { %v1094_v30 = vpop.xlane.xlu0 %1093 }
 0x713   :  { %v1091_v41 = vpop.xlane.xlu1 %1090  ;;  %7225 = vrcp.f32 %v1094_v30  ;;  %v1531_v30 = vpop.f32.mrf.mxu0 }
 0x714   :  { %7227 = vrcp.f32 %v1091_v41  ;;  %v1544_v41 = vmul.f32 0.17677669, %v7926_v3 }
 0x716   :  { %v1088_v37 = vpop.xlane.xlu0 %1087 }
 0x717   :  { %7229 = vrcp.f32 %v1088_v37  ;;  %v1106_v39 = vpop.permute.xlu1 %1105 }
 0x718   :  { %6976 = vmatprep.subr.msk.bf16.mxu1 %vm629_vm4, %v1106_v39  ;;  %v1115_v40 = vsel %vm629_vm4, %v1106_v39, 0  ;;  %v1543_v39 = vmul.f32 0.17677669, %v1531_v30  ;;  %v7995_v30 = vld [vmem:[%s9246_s7 + $0x30] sm:$0xff]  }
 0x719   :  { %6593 = vmatpush3.bf16.msra.mxu1 %v1115_v40 }
 0x71a   :  { %v1104_v42 = vpop.permute.xlu0 %1103 }
 0x71b   :  { %6594 = vmatprep.subr.bf16.mxu1 %v1104_v42 }
 0x71d   :  { %6595 = vmatpush3.bf16.msra.mxu1 %v1104_v42  ;;  %v1547_v42 = vadd.f32 %v1544_v41, %v7804_v33 }
 0x71e   :  { %6600 = vmatprep.subr.bf16.mxu1 %v7952_v44 }
 0x720   :  { %v7226_v45 = vpop.eup %7225 }
 0x721   :  { %v7228_v46 = vpop.eup %7227  ;;  %v1100_v49 = vmul.f32 %v7226_v45, %v7220_v9  ;;  %v1546_v45 = vadd.f32 %v1543_v39, %v7804_v33 }
 0x722   :  { %v1099_v57 = vmul.f32 %v7228_v46, %v7222_v14 }
 0x723   :  { %v1102_v63 = vpack.c.bf16 %v1100_v49, %v1100_v49 }
 0x724   :  { %v7230_v48 = vpop.eup %7229 }
 0x725   :  { %v1098_v52 = vmul.f32 %v7230_v48, %v7224_v13 }
 0x727   :  { %v1101_v56 = vpack.c.bf16 %v1099_v57, %v1098_v52 }
 0x729   :  { %6596 = vmatprep.mubr.msk.bf16.mxu1 %vm585_vm6, %v1101_v56 }
 0x72a   :  { %6597 = vmatmul.mubr.msk.bf16.vlgmr.msra.gmra.mxu1 %vm585_vm6, %v1102_v63 }
 0x72b   :  { %6601 = vmatpush3.bf16.msra.mxu1 %v7952_v44 }
 0x748   :  { %v1312_v24 = vpop.xlane.xlu1 %1311 }
 0x749   :  { %v1319_v8 = vsub.f32 %v1307_v23, %v1312_v24 }
 0x74b   :  { %v1315_v18 = vpop.xlane.xlu0 %1314  ;;  %v1322_v31 = vmul.f32 1.442695, %v1319_v8 }
 0x74c   :  { %v1320_v25 = vsub.f32 %v1308_v22, %v1315_v18  ;;  %v1318_v26 = vpop.xlane.xlu1 %1317  ;;  %v7964_v22 = vld [vmem:[%s9246_s7 + $0x20] sm:$0xff]  }
 0x74d   :  { %v1321_v27 = vsub.f32 %v1309_v35, %v1318_v26  ;;  %6602 = vmatprep.subr.bf16.mxu1 %v7964_v22  ;;  %v1542_v35 = vmul.f32 0.17677669, %v7928_v43  ;;  %v7980_v43 = vpop.f32.mrf.mxu1  ;;  %v7989_v26 = vld [vmem:[%s9246_s7 + $0x38] sm:$0xff]  }
 0x74e   :  { %v1324_v29 = vmul.f32 1.442695, %v1320_v25  ;;  %6603 = vmatpush3.bf16.msra.mxu1 %v7964_v22 }
 0x74f   :  { %v1326_v32 = vmul.f32 1.442695, %v1321_v27  ;;  %v1545_v37 = vadd.f32 %v1542_v35, %v7804_v33 }
 0x750   :  { %7231 = vpow2.f32 %v1324_v29 }
 0x751   :  { %7233 = vpow2.f32 %v1326_v32  ;;  %v1548_v40 = vsel %vm585_vm6, %v1545_v37, -inf }
 0x752   :  { %7235 = vpow2.f32 %v1322_v31 }
 0x75d   :  { %v7232_v9 = vpop.eup %7231 }
 0x75e   :  { %v7234_v14 = vpop.eup %7233  ;;  %v1331_v13 = vsel %vm585_vm6, %v7232_v9, 0.0 }
 0x75f   :  { %1332 = vadd.xlane.f32.xlu1 %v1331_v13  ;;  %v1334_v36 = vsel %vm585_vm6, %v7234_v14, 0.0  ;;  %v7236_v21 = vpop.eup %7235 }
 0x760   :  { %1335 = vadd.xlane.f32.xlu0 %v1334_v36  ;;  %v1328_v23 = vsel %vm585_vm6, %v7236_v21, 0.0 }
 0x764   :  { %1329 = vadd.xlane.f32.xlu0 %v1328_v23 }
 0x770   :  { %1347 = vrot.lane.b32.xlu1 %v7780_v2, %s7457_s25  ;;  %v1554_v2 = vsel %vm585_vm6, %v1547_v42, -inf }
 0x77a   :  { %1345 = vrot.lane.b32.xlu0 %v7787_v11, %s7457_s25  ;;  %v1551_v11 = vsel %vm585_vm6, %v1546_v45, -inf }
 0x794   :  { %1549 = vmax.xlane.f32.xlu1 %v1548_v40 }
 0x798   :  { %1555 = vmax.xlane.f32.xlu1 %v1554_v2 }
 0x799   :  { %1552 = vmax.xlane.f32.xlu0 %v1551_v11 }
 0x7e8   :  { %v1333_v46 = vpop.xlane.xlu1 %1332 }
 0x7e9   :  { %v1336_v3 = vpop.xlane.xlu0 %1335 }
 0x7ea   :  { %v6598_v48 = vpop.f32.mrf.mxu1  ;;  %7237 = vrcp.f32 %v1336_v3 }
 0x7eb   :  { %7239 = vrcp.f32 %v1333_v46  ;;  %v1166_v8 = vpack.c.bf16 %v6598_v48, %v6598_v48 }
 0x7ec   :  { %v1151_v49 = vpop.f32.mrf.mxu1  ;;  %v1348_v52 = vpop.permute.xlu1 %1347 }
 0x7ed   :  { %v1330_v57 = vpop.xlane.xlu0 %1329  ;;  %6979 = vmatprep.subr.msk.bf16.mxu1 %vm629_vm4, %v1348_v52  ;;  %v1357_v18 = vsel %vm629_vm4, %v1348_v52, 0 }
 0x7ee   :  { %7241 = vrcp.f32 %v1330_v57  ;;  %v6599_v56 = vpop.f32.mrf.mxu1 }
 0x7ef   :  { %v981_v56 = vadd.f32 %v7939_v17, %v7914_v10 }
 0x7f0   :  { %v1154_v63 = vpop.f32.mrf.mxu1 }
 0x7f1   :  { %v1165_v24 = vpack.c.bf16 %v1154_v63, %v1151_v49  ;;  %v1346_v25 = vpop.permute.xlu0 %1345 }
 0x7f3   :  { %6604 = vmatprep.mubr.msk.bf16.mxu1 %vm518_vm3, %v1165_v24 }
 0x7f4   :  { %6605 = vmatmul.mubr.msk.bf16.vlgmr.msra.gmra.mxu1 %vm518_vm3, %v1166_v8 }
 0x7f5   :  { %6617 = vmatpush3.bf16.msra.mxu1 %v1357_v18 }
 0x7f6   :  { %6618 = vmatprep.subr.bf16.mxu1 %v1346_v25 }
 0x7f7   :  { %v7238_v27 = vpop.eup %7237 }
 0x7f8   :  { %v7240_v29 = vpop.eup %7239  ;;  %v1342_v32 = vmul.f32 %v7238_v27, %v7234_v14  ;;  %v8003_v14 = vpack.c.bf16 %v7778_v62, %v7778_v62 }
 0x7f9   :  { %6619 = vmatpush3.bf16.msra.mxu1 %v1346_v25  ;;  %v1341_v36 = vmul.f32 %v7240_v29, %v7232_v9 }
 0x7fa   :  { %6624 = vmatprep.subr.bf16.mxu1 %v7989_v26  ;;  %v1344_v35 = vpack.c.bf16 %v1342_v32, %v1342_v32  ;;  %v1592_v17 = vsel %vm629_vm4, %v8003_v14, 0 }
 0x7fb   :  { %v7242_v31 = vpop.eup %7241 }
 0x7fc   :  { %v1340_v13 = vmul.f32 %v7242_v31, %v7236_v21 }
 0x7fe   :  { %v1343_v23 = vpack.c.bf16 %v1341_v36, %v1340_v13 }
 0x800   :  { %6620 = vmatprep.mubr.msk.bf16.mxu1 %vm585_vm6, %v1343_v23 }
 0x801   :  { %6621 = vmatmul.mubr.msk.bf16.vlgmr.msra.gmra.mxu1 %vm585_vm6, %v1344_v35 }
 0x802   :  { %6625 = vmatpush3.bf16.msra.mxu1 %v7989_v26 }
 0x803   :  { %6626 = vmatprep.subr.bf16.mxu1 %v7995_v30 }
 0x806   :  { %6627 = vmatpush3.bf16.msra.mxu1 %v7995_v30 }
 0x807   :  { %6982 = vmatprep.subr.msk.bf16.mxu1 %vm629_vm4, %v8003_v14 }
 0x81d   :  { %v1550_v9 = vpop.xlane.xlu1 %1549 }
 0x81e   :  { %v1557_v21 = vsub.f32 %v1545_v37, %v1550_v9 }
 0x820   :  { %v1560_v41 = vmul.f32 1.442695, %v1557_v21 }
 0x821   :  { %v1556_v39 = vpop.xlane.xlu1 %1555 }
 0x822   :  { %7243 = vpow2.f32 %v1560_v41  ;;  %v1553_v40 = vpop.xlane.xlu0 %1552  ;;  %v1559_v2 = vsub.f32 %v1547_v42, %v1556_v39  ;;  %v989_v42 = vadd.f32 %v7937_v28, %v7912_v61 }
 0x823   :  { %v1558_v11 = vsub.f32 %v1546_v45, %v1553_v40 }
 0x824   :  { %v1564_v46 = vmul.f32 1.442695, %v1559_v2 }
 0x825   :  { %v1562_v3 = vmul.f32 1.442695, %v1558_v11 }
 0x826   :  { %7245 = vpow2.f32 %v1564_v46 }
 0x827   :  { %7247 = vpow2.f32 %v1562_v3 }
 0x82f   :  { %v7244_v48 = vpop.eup %7243 }
 0x830   :  { %v1566_v62 = vsel %vm585_vm6, %v7244_v48, 0.0 }
 0x831   :  { %1567 = vadd.xlane.f32.xlu0 %v1566_v62 }
 0x833   :  { %v7246_v49 = vpop.eup %7245 }
 0x834   :  { %v7248_v52 = vpop.eup %7247  ;;  %v1572_v57 = vsel %vm585_vm6, %v7246_v49, 0.0 }
 0x835   :  { %v1569_v37 = vsel %vm585_vm6, %v7248_v52, 0.0  ;;  %1573 = vadd.xlane.f32.xlu0 %v1572_v57 }
 0x836   :  { %1570 = vadd.xlane.f32.xlu1 %v1569_v37 }
 0x847   :  { %1654 = vrot.lane.b32.xlu1 %v7878_v55, %s7454_s5 }
 0x84b   :  { %1646 = vrot.lane.b32.xlu1 %v7767_v53, %s7454_s5  ;;  %1652 = vrot.lane.b32.xlu0 %v7774_v59, %s7454_s5 }
 0x84f   :  { %1648 = vrot.lane.b32.xlu1 %v7894_v19, %s7454_s5 }
 0x8b4   :  { %v6606_v45 = vpop.f32.mrf.mxu1 }
 0x8b5   :  { %v1235_v63 = vadd.f32 %v6606_v45, %v989_v42 }
 0x8b6   :  { %v1219_v24 = vpop.f32.mrf.mxu1 }
 0x8b7   :  { %v1233_v8 = vadd.f32 %v1219_v24, %v981_v56 }
 0x8b8   :  { %v6607_v18 = vpop.f32.mrf.mxu1 }
 0x8ba   :  { %v1568_v25 = vpop.xlane.xlu0 %1567  ;;  %v8023_v29 = vpop.f32.mrf.mxu1 }
 0x8bb   :  { %7249 = vrcp.f32 %v1568_v25 }
 0x8be   :  { %v1574_v27 = vpop.xlane.xlu0 %1573 }
 0x8bf   :  { %7251 = vrcp.f32 %v1574_v27  ;;  %v1571_v31 = vpop.xlane.xlu1 %1570 }
 0x8c0   :  { %7253 = vrcp.f32 %v1571_v31 }
 0x8c1   :  { %v6622_v32 = vpop.f32.mrf.mxu1 }
 0x8c2   :  { %v1408_v23 = vpack.c.bf16 %v6622_v32, %v6622_v32  ;;  %v1653_v62 = vpop.permute.xlu0 %1652 }
 0x8c3   :  { %v1393_v13 = vpop.f32.mrf.mxu1  ;;  %v1655_v21 = vpop.permute.xlu1 %1654 }
 0x8c4   :  { %v1666_v3 = vsel %vm518_vm3, %v1655_v21, 0 }
 0x8c5   :  { %v6623_v36 = vpop.f32.mrf.mxu1 }
 0x8c7   :  { %v1396_v61 = vpop.f32.mrf.mxu1  ;;  %v1647_v46 = vpop.permute.xlu1 %1646 }
 0x8c8   :  { %v1407_v28 = vpack.c.bf16 %v1396_v61, %v1393_v13  ;;  %v7250_v10 = vpop.eup %7249 }
 0x8c9   :  { %v1578_v39 = vmul.f32 %v7250_v10, %v7244_v48  ;;  %v1663_v48 = vsel %vm518_vm3, %v1653_v62, 0 }
 0x8ca   :  { %6628 = vmatprep.mubr.msk.bf16.mxu1 %vm518_vm3, %v1407_v28 }
 0x8cb   :  { %6629 = vmatmul.mubr.msk.bf16.vlgmr.msra.gmra.mxu1 %vm518_vm3, %v1408_v23 }
 0x8cc   :  { %v7252_v35 = vpop.eup %7251  ;;  %6641 = vmatpush3.bf16.msra.mxu1 %v1592_v17 }
 0x8cd   :  { %v7254_v9 = vpop.eup %7253  ;;  %6642 = vmatprep.subr.bf16.mxu1 %v7769_v54  ;;  %v1580_v41 = vmul.f32 %v7252_v35, %v7246_v49  ;;  %v1649_v49 = vpop.permute.xlu1 %1648 }
 0x8ce   :  { %v1579_v40 = vmul.f32 %v7254_v9, %v7248_v52 }
 0x8cf   :  { %v1582_v2 = vpack.c.bf16 %v1580_v41, %v1580_v41 }
 0x8d0   :  { %6643 = vmatpush3.bf16.msra.mxu1 %v7769_v54  ;;  %v1581_v11 = vpack.c.bf16 %v1579_v40, %v1578_v39 }
 0x8d1   :  { %6983 = vmatprep.subr.msk.bf16.mxu1 %vm518_vm3, %v1655_v21 }
 0x8d2   :  { %6644 = vmatprep.mubr.msk.bf16.mxu1 %vm585_vm6, %v1581_v11 }
 0x8d3   :  { %6645 = vmatmul.mubr.msk.bf16.vlgmr.msra.gmra.mxu1 %vm585_vm6, %v1582_v2 }
 0x8d4   :  { %6649 = vmatpush3.bf16.xpose.msra.mxu1 %v1666_v3  ;;  %6652 = vmatprep.mubr.msk.bf16.mxu1 %vm518_vm3, %v1647_v46 }
 0x8d5   :  { %6984 = vmatprep.subr.msk.bf16.mxu1 %vm518_vm3, %v1653_v62 }
 0x8dc   :  { %6651 = vmatpush3.bf16.xpose.msra.mxu1 %v1663_v48 }
 0x8dd   :  { %6672 = vmatprep.subr.bf16.mxu1 %v7901_v6 }
 0x8e3   :  { %6653 = vmatmul.mubr.msk.bf16.vlgmr.msra.gmra.mxu1 %vm518_vm3, %v1649_v49 }
 0x8e4   :  { %6673 = vmatpush3.bf16.msra.mxu1 %v7901_v6 }
 0x8e5   :  { %6674 = vmatprep.subr.bf16.mxu1 %v7908_v7 }
 0x8e8   :  { %6675 = vmatpush3.bf16.msra.mxu1 %v7908_v7 }
 0x98b   :  { %v6630_v52 = vpop.f32.mrf.mxu1 }
 0x98c   :  { %v8043_v57 = vadd.f32 %v6630_v52, %v1235_v63 }
 0x98d   :  { %v1461_v37 = vpop.f32.mrf.mxu1 }
 0x98e   :  { %v8045_v42 = vadd.f32 %v1461_v37, %v1233_v8 }
 0x98f   :  { %v6631_v45 = vpop.f32.mrf.mxu1 }
 0x991   :  { %v8047_v56 = vpop.f32.mrf.mxu1 }
 0x993   :  { %v6646_v24 = vpop.f32.mrf.mxu1 }
 0x994   :  { %v1643_v32 = vpack.c.bf16 %v6646_v24, %v6646_v24 }
 0x995   :  { %v1628_v18 = vpop.f32.mrf.mxu1 }
 0x997   :  { %v6647_v25 = vpop.f32.mrf.mxu1 }
 0x999   :  { %v1631_v27 = vpop.f32.mrf.mxu1 }
 0x99a   :  { %v1642_v31 = vpack.c.bf16 %v1631_v27, %v1628_v18 }
 0x99c   :  { %6676 = vmatprep.mubr.msk.bf16.mxu1 %vm518_vm3, %v1642_v31 }
 0x99d   :  { %6677 = vmatmul.mubr.msk.bf16.vlgmr.msra.gmra.mxu1 %vm518_vm3, %v1643_v32 }
 0x9a3   :  { %v6654_v6 = vpop.f32.mrf.mxu1 }
 0x9a4   :  { %v1718_v63 = vmul.f32 0.17677669, %v6654_v6 }
 0x9a5   :  { %v1702_v7 = vpop.f32.mrf.mxu1 }
 0x9a6   :  { %v1716_v13 = vmul.f32 0.17677669, %v1702_v7  ;;  %v1721_v10 = vadd.f32 %v1718_v63, %v7804_v33 }
 0x9a7   :  { %v6655_v36 = vpop.f32.mrf.mxu1 }
 0x9a8   :  { %v1719_v8 = vadd.f32 %v1716_v13, %v7804_v33  ;;  %v1728_v35 = vsel %vm585_vm6, %v1721_v10, -inf }
 0x9a9   :  { %v1705_v61 = vpop.f32.mrf.mxu1 }
 0x9aa   :  { %v1717_v28 = vmul.f32 0.17677669, %v1705_v61  ;;  %v1722_v23 = vsel %vm585_vm6, %v1719_v8, -inf }
 0x9ab   :  { %1723 = vmax.xlane.f32.xlu0 %v1722_v23 }
 0x9ac   :  { %v1720_v17 = vadd.f32 %v1717_v28, %v7804_v33 }
 0x9ae   :  { %v1725_v9 = vsel %vm585_vm6, %v1720_v17, -inf }
 0x9af   :  { %1729 = vmax.xlane.f32.xlu0 %v1728_v35  ;;  %1726 = vmax.xlane.f32.xlu1 %v1725_v9 }
 0xa34   :  { %v1724_v21 = vpop.xlane.xlu0 %1723 }
 0xa35   :  { %v1731_v41 = vsub.f32 %v1719_v8, %v1724_v21 }
 0xa37   :  { %v1734_v46 = vmul.f32 1.442695, %v1731_v41 }
 0xa38   :  { %v1730_v39 = vpop.xlane.xlu0 %1729  ;;  %v1727_v40 = vpop.xlane.xlu1 %1726 }
 0xa39   :  { %v1733_v2 = vsub.f32 %v1721_v10, %v1730_v39  ;;  %v1732_v11 = vsub.f32 %v1720_v17, %v1727_v40 }
 0xa3b   :  { %v1738_v3 = vmul.f32 1.442695, %v1733_v2  ;;  %v1736_v62 = vmul.f32 1.442695, %v1732_v11 }
 0xa3d   :  { %7255 = vpow2.f32 %v1738_v3 }
 0xa3e   :  { %7257 = vpow2.f32 %v1736_v62 }
 0xa3f   :  { %7259 = vpow2.f32 %v1734_v46 }
 0xa4a   :  { %v7256_v48 = vpop.eup %7255 }
 0xa4b   :  { %v7258_v49 = vpop.eup %7257  ;;  %v1746_v52 = vsel %vm585_vm6, %v7256_v48, 0.0 }
 0xa4c   :  { %v7260_v37 = vpop.eup %7259  ;;  %1747 = vadd.xlane.f32.xlu0 %v1746_v52  ;;  %v1743_v45 = vsel %vm585_vm6, %v7258_v49, 0.0 }
 0xa4d   :  { %1744 = vadd.xlane.f32.xlu1 %v1743_v45  ;;  %v1740_v24 = vsel %vm585_vm6, %v7260_v37, 0.0 }
 0xa50   :  { %1741 = vadd.xlane.f32.xlu0 %v1740_v24 }
 0xa5d   :  { %v8060_v18 = vpop.f32.mrf.mxu1 }
 0xa5e   :  { %1761 = vrot.lane.b32.xlu1 %v8003_v14, %s7454_s5 }
 0xa5f   :  { %v8064_v25 = vpop.f32.mrf.mxu1 }
 0xa61   :  { %v6679_v27 = vpop.f32.mrf.mxu1 }
 0xa62   :  { %1937 = vrot.lane.b32.xlu1 %v7878_v55, %s7456_s22 }
 0xa66   :  { %1935 = vrot.lane.b32.xlu1 %v7774_v59, %s7456_s22  ;;  %1759 = vrot.lane.b32.xlu0 %v7769_v54, %s7454_s5 }
 0xa6a   :  { %1933 = vrot.lane.b32.xlu1 %v7894_v19, %s7456_s22  ;;  %1931 = vrot.lane.b32.xlu0 %v7767_v53, %s7456_s22 }
 0xa6e   :  { %2165 = vrot.lane.b32.xlu1 %v7774_v59, %s7457_s25  ;;  %2167 = vrot.lane.b32.xlu0 %v7878_v55, %s7457_s25 }
 0xa72   :  { %2163 = vrot.lane.b32.xlu1 %v7894_v19, %s7457_s25  ;;  %2161 = vrot.lane.b32.xlu0 %v7767_v53, %s7457_s25 }
 0xad5   :  { %v1748_v31 = vpop.xlane.xlu0 %1747 }
 0xad6   :  { %v1745_v32 = vpop.xlane.xlu1 %1744  ;;  %7261 = vrcp.f32 %v1748_v31 }
 0xad7   :  { %7263 = vrcp.f32 %v1745_v32 }
 0xad9   :  { %v1742_v6 = vpop.xlane.xlu0 %1741 }
 0xada   :  { %7265 = vrcp.f32 %v1742_v6  ;;  %v1762_v7 = vpop.permute.xlu1 %1761 }
 0xadb   :  { %6985 = vmatprep.subr.msk.bf16.mxu0 %vm629_vm4, %v1762_v7  ;;  %v1771_v59 = vsel %vm629_vm4, %v1762_v7, 0 }
 0xadc   :  { %6657 = vmatpush3.bf16.msra.mxu0 %v1771_v59 }
 0xadd   :  { %v1760_v63 = vpop.permute.xlu0 %1759 }
 0xade   :  { %6658 = vmatprep.subr.bf16.mxu0 %v1760_v63  ;;  %v1938_v23 = vpop.permute.xlu1 %1937 }
 0xae0   :  { %6659 = vmatpush3.bf16.msra.mxu0 %v1760_v63 }
 0xae1   :  { %6664 = vmatprep.subr.bf16.mxu0 %v7838_v38  ;;  %v1932_v39 = vpop.permute.xlu0 %1931 }
 0xae2   :  { %v1936_v40 = vpop.permute.xlu1 %1935 }
 0xae3   :  { %v7262_v55 = vpop.eup %7261 }
 0xae4   :  { %v7264_v19 = vpop.eup %7263  ;;  %v1754_v13 = vmul.f32 %v7262_v55, %v7256_v48 }
 0xae5   :  { %v1753_v8 = vmul.f32 %v7264_v19, %v7258_v49  ;;  %v2168_v2 = vpop.permute.xlu0 %2167 }
 0xae6   :  { %v1756_v28 = vpack.c.bf16 %v1754_v13, %v1754_v13  ;;  %v1934_v11 = vpop.permute.xlu1 %1933  ;;  %v2179_v3 = vsel %vm518_vm3, %v2168_v2, 0 }
 0xae7   :  { %v7266_v53 = vpop.eup %7265 }
 0xae8   :  { %v1752_v36 = vmul.f32 %v7266_v53, %v7260_v37 }
 0xae9   :  { %v2162_v46 = vpop.permute.xlu0 %2161 }
 0xaea   :  { %v1755_v61 = vpack.c.bf16 %v1753_v8, %v1752_v36  ;;  %v2166_v62 = vpop.permute.xlu1 %2165 }
 0xaeb   :  { %v2176_v48 = vsel %vm518_vm3, %v2166_v62, 0 }
 0xaec   :  { %6660 = vmatprep.mubr.msk.bf16.mxu0 %vm585_vm6, %v1755_v61 }
 0xaed   :  { %6661 = vmatmul.mubr.msk.bf16.vlgmr.msra.gmra.mxu0 %vm585_vm6, %v1756_v28 }
 0xaee   :  { %6665 = vmatpush3.bf16.msra.mxu0 %v7838_v38  ;;  %v1949_v38 = vsel %vm518_vm3, %v1938_v23, 0  ;;  %v2164_v49 = vpop.permute.xlu1 %2163 }
 0xaef   :  { %6666 = vmatprep.subr.bf16.mxu0 %v7844_v47 }
 0xaf2   :  { %6667 = vmatpush3.bf16.msra.mxu0 %v7844_v47  ;;  %v1946_v47 = vsel %vm518_vm3, %v1936_v40, 0 }
 0xaf3   :  { %6986 = vmatprep.subr.msk.bf16.mxu0 %vm518_vm3, %v1938_v23 }
 0xbad   :  { %v6662_v10 = vpop.f32.mrf.mxu0 }
 0xbae   :  { %v1822_v41 = vpack.c.bf16 %v6662_v10, %v6662_v10 }
 0xbaf   :  { %v1807_v17 = vpop.f32.mrf.mxu0 }
 0xbb1   :  { %v6663_v35 = vpop.f32.mrf.mxu0 }
 0xbb3   :  { %v1810_v9 = vpop.f32.mrf.mxu0 }
 0xbb4   :  { %v1821_v21 = vpack.c.bf16 %v1810_v9, %v1807_v17 }
 0xbb6   :  { %6668 = vmatprep.mubr.msk.bf16.mxu0 %vm518_vm3, %v1821_v21 }
 0xbb7   :  { %6669 = vmatmul.mubr.msk.bf16.vlgmr.msra.gmra.mxu0 %vm518_vm3, %v1822_v41 }
 0xbb8   :  { %6681 = vmatpush3.bf16.xpose.msra.mxu0 %v1949_v38  ;;  %6684 = vmatprep.mubr.msk.bf16.mxu0 %vm518_vm3, %v1932_v39 }
 0xbb9   :  { %6987 = vmatprep.subr.msk.bf16.mxu0 %vm518_vm3, %v1936_v40 }
 0xbc0   :  { %6683 = vmatpush3.bf16.xpose.msra.mxu0 %v1946_v47 }
 0xbc1   :  { %6989 = vmatprep.subr.msk.bf16.mxu0 %vm518_vm3, %v2168_v2 }
 0xbc7   :  { %6685 = vmatmul.mubr.msk.bf16.vlgmr.msra.gmra.mxu0 %vm518_vm3, %v1934_v11 }
 0xbc8   :  { %6705 = vmatpush3.bf16.xpose.msra.mxu0 %v2179_v3  ;;  %6708 = vmatprep.mubr.msk.bf16.mxu0 %vm518_vm3, %v2162_v46 }
 0xbc9   :  { %6990 = vmatprep.subr.msk.bf16.mxu0 %vm518_vm3, %v2166_v62 }
 0xbd0   :  { %6707 = vmatpush3.bf16.xpose.msra.mxu0 %v2176_v48 }
 0xbd7   :  { %6709 = vmatmul.mubr.msk.bf16.vlgmr.msra.gmra.mxu0 %vm518_vm3, %v2164_v49 }
 0xbd8   :  { %2640 = vmatprep.mubr.bf16.mxu0 %v7452_v34 }
 0xc77   :  { %v8107_v52 = vpop.f32.mrf.mxu0 }
 0xc79   :  { %v8109_v37 = vpop.f32.mrf.mxu0 }
 0xc7b   :  { %v6671_v45 = vpop.f32.mrf.mxu0 }
 0xc7d   :  { %v8111_v24 = vpop.f32.mrf.mxu0 }
 0xc87   :  { %v6686_v27 = vpop.f32.mrf.mxu0 }
 0xc88   :  { %v2001_v32 = vmul.f32 0.17677669, %v6686_v27 }
 0xc89   :  { %v1985_v31 = vpop.f32.mrf.mxu0 }
 0xc8a   :  { %v1999_v6 = vmul.f32 0.17677669, %v1985_v31  ;;  %v2004_v53 = vadd.f32 %v2001_v32, %v7804_v33 }
 0xc8b   :  { %v6687_v7 = vpop.f32.mrf.mxu0 }
 0xc8c   :  { %v2002_v59 = vadd.f32 %v1999_v6, %v7804_v33  ;;  %v2011_v36 = vsel %vm585_vm6, %v2004_v53, -inf }
 0xc8d   :  { %v1988_v63 = vpop.f32.mrf.mxu0 }
 0xc8e   :  { %v2000_v55 = vmul.f32 0.17677669, %v1988_v63  ;;  %v2005_v19 = vsel %vm585_vm6, %v2002_v59, -inf }
 0xc8f   :  { %2006 = vmax.xlane.f32.xlu0 %v2005_v19 }
 0xc90   :  { %v2003_v13 = vadd.f32 %v2000_v55, %v7804_v33 }
 0xc92   :  { %v2008_v8 = vsel %vm585_vm6, %v2003_v13, -inf }
 0xc93   :  { %2012 = vmax.xlane.f32.xlu0 %v2011_v36  ;;  %2009 = vmax.xlane.f32.xlu1 %v2008_v8 }
 0xc97   :  { %v6710_v61 = vpop.f32.mrf.mxu0 }
 0xc98   :  { %v2231_v27 = vmul.f32 0.17677669, %v6710_v61 }
 0xc99   :  { %v2215_v28 = vpop.f32.mrf.mxu0 }
 0xc9a   :  { %v2229_v48 = vmul.f32 0.17677669, %v2215_v28  ;;  %v2234_v7 = vadd.f32 %v2231_v27, %v7804_v33  ;;  %v984_v27 = vadd.f32 %v7980_v43, %v7916_v12 }
 0xc9b   :  { %v6711_v23 = vpop.f32.mrf.mxu0 }
 0xc9c   :  { %v2232_v31 = vadd.f32 %v2229_v48, %v7804_v33  ;;  %v2241_v63 = vsel %vm585_vm6, %v2234_v7, -inf }
 0xc9d   :  { %v2218_v49 = vpop.f32.mrf.mxu0 }
 0xc9e   :  { %v2230_v45 = vmul.f32 0.17677669, %v2218_v49  ;;  %v2235_v6 = vsel %vm585_vm6, %v2232_v31, -inf }
 0xca0   :  { %v2233_v32 = vadd.f32 %v2230_v45, %v7804_v33 }
 0xd18   :  { %v2007_v10 = vpop.xlane.xlu0 %2006 }
 0xd19   :  { %v2014_v17 = vsub.f32 %v2002_v59, %v2007_v10  ;;  %v2238_v59 = vsel %vm585_vm6, %v2233_v32, -inf }
 0xd1b   :  { %v2017_v39 = vmul.f32 1.442695, %v2014_v17 }
 0xd1c   :  { %v2013_v35 = vpop.xlane.xlu0 %2012  ;;  %v2010_v9 = vpop.xlane.xlu1 %2009 }
 0xd1d   :  { %v2016_v21 = vsub.f32 %v2004_v53, %v2013_v35  ;;  %v2015_v41 = vsub.f32 %v2003_v13, %v2010_v9 }
 0xd1f   :  { %v2021_v38 = vmul.f32 1.442695, %v2016_v21  ;;  %v2019_v40 = vmul.f32 1.442695, %v2015_v41 }
 0xd21   :  { %7267 = vpow2.f32 %v2021_v38 }
 0xd22   :  { %7269 = vpow2.f32 %v2019_v40 }
 0xd23   :  { %7271 = vpow2.f32 %v2017_v39 }
 0xd2e   :  { %v7268_v47 = vpop.eup %7267 }
 0xd2f   :  { %v7270_v2 = vpop.eup %7269  ;;  %v2029_v11 = vsel %vm585_vm6, %v7268_v47, 0.0 }
 0xd30   :  { %v7272_v46 = vpop.eup %7271  ;;  %2030 = vadd.xlane.f32.xlu0 %v2029_v11  ;;  %v2026_v3 = vsel %vm585_vm6, %v7270_v2, 0.0 }
 0xd31   :  { %2027 = vadd.xlane.f32.xlu1 %v2026_v3  ;;  %v2023_v62 = vsel %vm585_vm6, %v7272_v46, 0.0 }
 0xd34   :  { %2024 = vadd.xlane.f32.xlu0 %v2023_v62 }
 0xd42   :  { %2042 = vrot.lane.b32.xlu1 %v8003_v14, %s7456_s22 }
 0xd4a   :  { %2040 = vrot.lane.b32.xlu0 %v7769_v54, %s7456_s22 }
 0xd66   :  { %2236 = vmax.xlane.f32.xlu1 %v2235_v6 }
 0xd69   :  { %2239 = vmax.xlane.f32.xlu0 %v2238_v59 }
 0xd6a   :  { %2242 = vmax.xlane.f32.xlu1 %v2241_v63 }
 0xdb9   :  { %v2031_v55 = vpop.xlane.xlu0 %2030 }
 0xdba   :  { %v2028_v19 = vpop.xlane.xlu1 %2027  ;;  %7273 = vrcp.f32 %v2031_v55 }
 0xdbb   :  { %7275 = vrcp.f32 %v2028_v19 }
 0xdbd   :  { %v2025_v53 = vpop.xlane.xlu0 %2024 }
 0xdbe   :  { %7277 = vrcp.f32 %v2025_v53  ;;  %v2043_v13 = vpop.permute.xlu1 %2042 }
 0xdbf   :  { %6988 = vmatprep.subr.msk.bf16.mxu1 %vm629_vm4, %v2043_v13  ;;  %v2052_v36 = vsel %vm629_vm4, %v2043_v13, 0 }
 0xdc0   :  { %6689 = vmatpush3.bf16.msra.mxu1 %v2052_v36 }
 0xdc1   :  { %v2041_v8 = vpop.permute.xlu0 %2040 }
 0xdc2   :  { %6690 = vmatprep.subr.bf16.mxu1 %v2041_v8 }
 0xdc4   :  { %6691 = vmatpush3.bf16.msra.mxu1 %v2041_v8 }
 0xdc5   :  { %6696 = vmatprep.subr.bf16.mxu1 %v7952_v44 }
 0xdc7   :  { %v7274_v61 = vpop.eup %7273 }
 0xdc8   :  { %v7276_v28 = vpop.eup %7275  ;;  %v2037_v10 = vmul.f32 %v7274_v61, %v7268_v47 }
 0xdc9   :  { %v2036_v35 = vmul.f32 %v7276_v28, %v7270_v2 }
 0xdca   :  { %v2039_v21 = vpack.c.bf16 %v2037_v10, %v2037_v10 }
 0xdcb   :  { %v7278_v23 = vpop.eup %7277 }
 0xdcc   :  { %v2035_v17 = vmul.f32 %v7278_v23, %v7272_v46 }
 0xdce   :  { %v2038_v9 = vpack.c.bf16 %v2036_v35, %v2035_v17 }
 0xdd0   :  { %6692 = vmatprep.mubr.msk.bf16.mxu1 %vm585_vm6, %v2038_v9 }
 0xdd1   :  { %6693 = vmatmul.mubr.msk.bf16.vlgmr.msra.gmra.mxu1 %vm585_vm6, %v2039_v21 }
 0xdd2   :  { %6697 = vmatpush3.bf16.msra.mxu1 %v7952_v44 }
 0xdd3   :  { %6698 = vmatprep.subr.bf16.mxu1 %v7964_v22 }
 0xdd6   :  { %6699 = vmatpush3.bf16.msra.mxu1 %v7964_v22 }
 0xdef   :  { %v2237_v41 = vpop.xlane.xlu1 %2236 }
 0xdf0   :  { %v2244_v39 = vsub.f32 %v2232_v31, %v2237_v41  ;;  %v1234_v31 = vadd.f32 %v8023_v29, %v984_v27  ;;  %v1920_v29 = vpop.f32.mrf.mxu1 }
 0xdf2   :  { %v2240_v38 = vpop.xlane.xlu0 %2239  ;;  %v2247_v2 = vmul.f32 1.442695, %v2244_v39 }
 0xdf3   :  { %v2245_v40 = vsub.f32 %v2233_v32, %v2240_v38  ;;  %v2243_v11 = vpop.xlane.xlu1 %2242  ;;  %v8153_v32 = vld [vmem:[%s9247_s8] ss:$0 sm:$0xff] }
 0xdf4   :  { %v2246_v47 = vsub.f32 %v2234_v7, %v2243_v11  ;;  %v2396_v6 = vadd.f32 %v8153_v32, %v8045_v42  ;;  %v1476_v7 = vadd.f32 %v8047_v56, %v1234_v31 }
 0xdf5   :  { %v2249_v46 = vmul.f32 1.442695, %v2245_v40 }
 0xdf6   :  { %v2251_v3 = vmul.f32 1.442695, %v2246_v47  ;;  %v2397_v59 = vadd.f32 %v8153_v32, %v1476_v7 }
 0xdf7   :  { %7279 = vpow2.f32 %v2249_v46 }
 0xdf8   :  { %7281 = vpow2.f32 %v2251_v3  ;;  %v8164_v43 = vadd.f32 %v2397_v59, %v7691_v51 }
 0xdf9   :  { %7283 = vpow2.f32 %v2247_v2  ;;  %v1918_v2 = vadd.f32 %v8064_v25, %v8109_v37  ;;  %v7069_v25 = vld [vmem:[%s9250_s11 + $0x74] ss:$8 sps:$4 sm:$0xff]  }
 0xdfa   :  { %2608 = vmatprep.subr.bf16.mxu0 %v7069_v25 }
 0xe04   :  { %v7280_v62 = vpop.eup %7279 }
 0xe05   :  { %v7282_v48 = vpop.eup %7281  ;;  %v2256_v44 = vsel %vm585_vm6, %v7280_v62, 0.0 }
 0xe06   :  { %2257 = vadd.xlane.f32.xlu1 %v2256_v44  ;;  %v2259_v49 = vsel %vm585_vm6, %v7282_v48, 0.0  ;;  %v7284_v22 = vpop.eup %7283 }
 0xe07   :  { %2260 = vadd.xlane.f32.xlu0 %v2259_v49  ;;  %v2253_v45 = vsel %vm585_vm6, %v7284_v22, 0.0  ;;  %v1921_v49 = vadd.f32 %v1920_v29, %v8111_v24 }
 0xe0b   :  { %2254 = vadd.xlane.f32.xlu0 %v2253_v45 }
 0xe17   :  { %2272 = vrot.lane.b32.xlu1 %v8003_v14, %s7457_s25  ;;  %v2398_v14 = vadd.f32 %v8153_v32, %v8043_v57 }
 0xe19   :  { %v2404_v12 = vadd.f32 %v2398_v14, %v7703_v58 }
 0xe21   :  { %2270 = vrot.lane.b32.xlu0 %v7769_v54, %s7457_s25  ;;  %v2402_v54 = vadd.f32 %v2396_v6, %v7689_v50 }
 0xe3b   :  { %2410 = vadd.xlane.f32.xlu1 %v2402_v54 }
 0xe3f   :  { %2414 = vadd.xlane.f32.xlu1 %v2404_v12 }
 0xe40   :  { %2412 = vadd.xlane.f32.xlu0 %v8164_v43 }
 0xe8f   :  { %v2258_v42 = vpop.xlane.xlu1 %2257 }
 0xe90   :  { %v2261_v63 = vpop.xlane.xlu0 %2260 }
 0xe91   :  { %v6694_v56 = vpop.f32.mrf.mxu1  ;;  %7285 = vrcp.f32 %v2261_v63 }
 0xe92   :  { %7287 = vrcp.f32 %v2258_v42  ;;  %v2103_v51 = vpack.c.bf16 %v6694_v56, %v6694_v56 }
 0xe93   :  { %v2088_v57 = vpop.f32.mrf.mxu1  ;;  %v2273_v55 = vpop.permute.xlu1 %2272 }
 0xe94   :  { %v2255_v50 = vpop.xlane.xlu0 %2254  ;;  %6991 = vmatprep.subr.msk.bf16.mxu1 %vm629_vm4, %v2273_v55  ;;  %v2282_v13 = vsel %vm629_vm4, %v2273_v55, 0 }
 0xe95   :  { %7289 = vrcp.f32 %v2255_v50  ;;  %v6695_v19 = vpop.f32.mrf.mxu1 }
 0xe97   :  { %v2091_v58 = vpop.f32.mrf.mxu1 }
 0xe98   :  { %v2102_v53 = vpack.c.bf16 %v2091_v58, %v2088_v57  ;;  %v2271_v36 = vpop.permute.xlu0 %2270 }
 0xe9a   :  { %6700 = vmatprep.mubr.msk.bf16.mxu1 %vm518_vm3, %v2102_v53 }
 0xe9b   :  { %6701 = vmatmul.mubr.msk.bf16.vlgmr.msra.gmra.mxu1 %vm518_vm3, %v2103_v51  ;;  %v7070_v51 = vld [vmem:[%s9250_s11 + $0x60] ss:$8 sps:$4 sm:$0xff]  }
 0xe9c   :  { %6713 = vmatpush3.bf16.msra.mxu1 %v2282_v13  ;;  %v7072_v13 = vld [vmem:[%s9250_s11 + $0x64] ss:$8 sps:$4 sm:$0xff]  }
 0xe9d   :  { %6714 = vmatprep.subr.bf16.mxu1 %v2271_v36 }
 0xe9e   :  { %v7286_v8 = vpop.eup %7285 }
 0xe9f   :  { %v7288_v61 = vpop.eup %7287  ;;  %v2267_v23 = vmul.f32 %v7286_v8, %v7282_v48  ;;  %v7081_v8 = vld [vmem:[%s9250_s11 + $0x34] ss:$8 sps:$4 sm:$0xff]  }
 0xea0   :  { %6715 = vmatpush3.bf16.msra.mxu1 %v2271_v36  ;;  %v2266_v17 = vmul.f32 %v7288_v61, %v7280_v62  ;;  %v7078_v36 = vld [vmem:[%s9250_s11 + $0x44] ss:$8 sps:$4 sm:$0xff]   ;;  %v7079_v61 = vld [vmem:[%s9250_s11 + $0x30] ss:$8 sps:$4 sm:$0xff]  }
 0xea1   :  { %6720 = vmatprep.subr.bf16.mxu1 %v7989_v26  ;;  %v2269_v9 = vpack.c.bf16 %v2267_v23, %v2267_v23  ;;  %v7082_v23 = vld [vmem:[%s9250_s11 + $0x20] ss:$8 sps:$4 sm:$0xff]  }
 0xea2   :  { %v7290_v28 = vpop.eup %7289 }
 0xea3   :  { %v2265_v10 = vmul.f32 %v7290_v28, %v7284_v22  ;;  %v7084_v28 = vld [vmem:[%s9250_s11 + $0x24] ss:$8 sps:$4 sm:$0xff]  }
 0xea5   :  { %v2268_v35 = vpack.c.bf16 %v2266_v17, %v2265_v10  ;;  %v7087_v10 = vld [vmem:[%s9250_s11 + $0x14] ss:$8 sps:$4 sm:$0xff]   ;;  %v7085_v17 = vld [vmem:[%s9250_s11 + $0x10] ss:$8 sps:$4 sm:$0xff]  }
 0xea7   :  { %6716 = vmatprep.mubr.msk.bf16.mxu1 %vm585_vm6, %v2268_v35  ;;  %v7090_v35 = vld [vmem:[%s9250_s11 + $0x4] ss:$8 sps:$4 sm:$0xff]  }
 0xea8   :  { %6717 = vmatmul.mubr.msk.bf16.vlgmr.msra.gmra.mxu1 %vm585_vm6, %v2269_v9  ;;  %v7088_v9 = vld [vmem:[%s9250_s11] ss:$8 sps:$4 sm:$0xff]  }
 0xea9   :  { %6721 = vmatpush3.bf16.msra.mxu1 %v7989_v26  ;;  %v1926_v26 = vadd.f32 %v8060_v18, %v8107_v52  ;;  %v7067_v18 = vld [vmem:[%s9250_s11 + $0x70] ss:$8 sps:$4 sm:$0xff]  }
 0xeaa   :  { %6722 = vmatprep.subr.bf16.mxu1 %v7995_v30  ;;  %2609 = vmatpush1.bf16.msra.mxu0 %v7067_v18 }
 0xeab   :  { %2610 = vmatprep.subr.bf16.mxu0 %v7072_v13  ;;  %v7106_v13 = vld [vmem:[%s9252_s13] sm:$0xff]  }
 0xead   :  { %6723 = vmatpush3.bf16.msra.mxu1 %v7995_v30 }
 0xeae   :  { %2611 = vmatpush1.bf16.msra.mxu0 %v7070_v51  ;;  %v7105_v51 = vld [vmem:[%s9252_s13 + $0x40] sm:$0xff]  }
 0xec4   :  { %v2411_v21 = vpop.xlane.xlu1 %2410 }
 0xec5   :  { %v2423_v41 = vmul.f32 0.0078125, %v2411_v21 }
 0xec7   :  { %v8177_v39 = vsub.f32 %v2402_v54, %v2423_v41 }
 0xec8   :  { %v2415_v38 = vpop.xlane.xlu1 %2414 }
 0xec9   :  { %v2425_v40 = vmul.f32 0.0078125, %v2415_v38  ;;  %v2435_v11 = vmul.f32 %v8177_v39, %v8177_v39  ;;  %v2413_v52 = vpop.xlane.xlu0 %2412 }
 0xecb   :  { %2441 = vadd.xlane.f32.xlu1 %v2435_v11  ;;  %v8181_v47 = vsub.f32 %v2404_v12, %v2425_v40  ;;  %v2424_v12 = vmul.f32 0.0078125, %v2413_v52 }
 0xecd   :  { %v2437_v46 = vmul.f32 %v8181_v47, %v8181_v47  ;;  %v2430_v50 = vsub.f32 %v8164_v43, %v2424_v12  ;;  %v7076_v43 = vld [vmem:[%s9250_s11 + $0x40] ss:$8 sps:$4 sm:$0xff]   ;;  %v7094_v12 = vld [vmem:[%s9252_s13 + $0x30] sm:$0xff]  }
 0xecf   :  { %2445 = vadd.xlane.f32.xlu1 %v2437_v46  ;;  %v2436_v58 = vmul.f32 %v2430_v50, %v2430_v50 }
 0xf54   :  { %v2442_v21 = vpop.xlane.xlu1 %2441 }
 0xf55   :  { %v2453_v41 = vmul.f32 0.0078125, %v2442_v21 }
 0xf57   :  { %v2459_v38 = vadd.f32 1e-05, %v2453_v41 }
 0xf58   :  { %v8245_v40 = vpop.xlane.xlu1 %2445 }
 0xf59   :  { %7291 = vrsqrt.f32 %v2459_v38 }
 0xf5b   :  { %v6702_v30 = vpop.f32.mrf.mxu1 }
 0xf5c   :  { %v2160_v3 = vadd.f32 %v6702_v30, %v1926_v26 }
 0xf5d   :  { %v2144_v62 = vpop.f32.mrf.mxu1 }
 0xf5e   :  { %v2158_v48 = vadd.f32 %v2144_v62, %v1918_v2 }
 0xf5f   :  { %v6703_v44 = vpop.f32.mrf.mxu1 }
 0xf61   :  { %v2147_v22 = vpop.f32.mrf.mxu1 }
 0xf62   :  { %v2159_v45 = vadd.f32 %v2147_v22, %v1921_v49 }
 0xf68   :  { %v6718_v27 = vpop.f32.mrf.mxu1 }
 0xf69   :  { %v2333_v54 = vpack.c.bf16 %v6718_v27, %v6718_v27 }
 0xf6a   :  { %v2318_v31 = vpop.f32.mrf.mxu1 }
 0xf6c   :  { %v6719_v6 = vpop.f32.mrf.mxu1 }
 0xf6d   :  { %v8261_v6 = vld [vmem:[%s9248_s9] ss:$0 sm:$0xff] }
 0xf6e   :  { %v2321_v7 = vpop.f32.mrf.mxu1 }
 0xf6f   :  { %v2332_v14 = vpack.c.bf16 %v2321_v7, %v2318_v31  ;;  %v7292_v31 = vpop.eup %7291 }
 0xf71   :  { %6724 = vmatprep.mubr.msk.bf16.mxu1 %vm518_vm3, %v2332_v14 }
 0xf72   :  { %6725 = vmatmul.mubr.msk.bf16.vlgmr.msra.gmra.mxu1 %vm518_vm3, %v2333_v54 }
0x1032   :  { %v6726_v37 = vpop.f32.mrf.mxu1 }
0x1033   :  { %v2390_v24 = vadd.f32 %v6726_v37, %v2160_v3  ;;  %v7091_v37 = vld [vmem:[%s9252_s13 + $0x78] sm:$0xff]  }
0x1034   :  { %v2374_v59 = vpop.f32.mrf.mxu1  ;;  %6314 = vmatprep.subr.bf16.mxu1 %v7091_v37 }
0x1035   :  { %v2388_v29 = vadd.f32 %v2374_v59, %v2158_v48  ;;  %v2401_v3 = vadd.f32 %v8153_v32, %v2390_v24  ;;  %v7092_v24 = vld [vmem:[%s9252_s13 + $0x38] sm:$0xff]   ;;  %v7093_v59 = vld [vmem:[%s9252_s13 + $0x70] sm:$0xff]  }
0x1036   :  { %v6727_v42 = vpop.f32.mrf.mxu1  ;;  %6315 = vmatpush3.bf16.msra.mxu1 %v7092_v24 }
0x1037   :  { %v2399_v63 = vadd.f32 %v8153_v32, %v2388_v29  ;;  %6316 = vmatprep.subr.bf16.mxu1 %v7093_v59  ;;  %v7095_v29 = vld [vmem:[%s9252_s13 + $0x68] sm:$0xff]  }
0x1038   :  { %v2377_v56 = vpop.f32.mrf.mxu1  ;;  %v7096_v42 = vld [vmem:[%s9252_s13 + $0x28] sm:$0xff]  }
0x1039   :  { %v2389_v57 = vadd.f32 %v2377_v56, %v2159_v45  ;;  %v2405_v55 = vadd.f32 %v2399_v63, %v7705_v60  ;;  %v7075_v60 = vld [vmem:[%s9250_s11 + $0x54] ss:$8 sps:$4 sm:$0xff]   ;;  %v2407_v45 = vadd.f32 %v2401_v3, %v7714_v0  ;;  %v8267_v0 = vld [vmem:[%s9249_s10] ss:$0 sm:$0xff] }
0x103a   :  { %2612 = vmatprep.subr.bf16.mxu0 %v7075_v60  ;;  %6317 = vmatpush3.bf16.msra.mxu1 %v7094_v12  ;;  %v7097_v63 = vld [vmem:[%s9252_s13 + $0x60] sm:$0xff]   ;;  %v2455_v60 = vmul.f32 0.0078125, %v8245_v40 }
0x103b   :  { %v2400_v19 = vadd.f32 %v8153_v32, %v2389_v57  ;;  %2416 = vadd.xlane.f32.xlu0 %v2405_v55  ;;  %v2471_v32 = vmul.f32 %v7292_v31, %v8177_v39  ;;  %6318 = vmatprep.subr.bf16.mxu1 %v7095_v29  ;;  %v7098_v56 = vld [vmem:[%s9252_s13 + $0x20] sm:$0xff]   ;;  %v7099_v57 = vld [vmem:[%s9252_s13 + $0x58] sm:$0xff]  }
0x103d   :  { %v2406_v53 = vadd.f32 %v2400_v19, %v7716_v1  ;;  %v7073_v1 = vld [vmem:[%s9250_s11 + $0x50] ss:$8 sps:$4 sm:$0xff]   ;;  %v2481_v54 = vmul.f32 %v8261_v6, %v2471_v32 }
0x103e   :  { %2613 = vmatpush1.bf16.msra.mxu0 %v7073_v1  ;;  %6319 = vmatpush3.bf16.msra.mxu1 %v7096_v42  ;;  %v7102_v19 = vld [vmem:[%s9252_s13 + $0x10] sm:$0xff]   ;;  %v2461_v1 = vadd.f32 1e-05, %v2455_v60 }
0x103f   :  { %2443 = vadd.xlane.f32.xlu0 %v2436_v58  ;;  %2418 = vadd.xlane.f32.xlu1 %v2406_v53  ;;  %v8271_v25 = vadd.f32 %v8267_v0, %v2481_v54  ;;  %v7103_v58 = vld [vmem:[%s9252_s13 + $0x48] sm:$0xff]  }
0x1040   :  { %2614 = vmatprep.subr.bf16.mxu0 %v7078_v36  ;;  %6320 = vmatprep.subr.bf16.mxu1 %v7097_v63 }
0x1042   :  { %2615 = vmatpush1.bf16.msra.mxu0 %v7076_v43  ;;  %6321 = vmatpush3.bf16.msra.mxu1 %v7098_v56 }
0x1043   :  { %2616 = vmatprep.subr.bf16.mxu0 %v7081_v8  ;;  %6322 = vmatprep.subr.bf16.mxu1 %v7099_v57 }
0x1046   :  { %2617 = vmatpush1.bf16.msra.mxu0 %v7079_v61 }
0x1047   :  { %2618 = vmatprep.subr.bf16.mxu0 %v7084_v28 }
0x104a   :  { %2619 = vmatpush1.bf16.msra.mxu0 %v7082_v23 }
0x104b   :  { %2620 = vmatprep.subr.bf16.mxu0 %v7087_v10 }
0x104e   :  { %2621 = vmatpush1.bf16.msra.mxu0 %v7085_v17 }
0x104f   :  { %2622 = vmatprep.subr.bf16.mxu0 %v7090_v35 }
0x1052   :  { %2623 = vmatpush1.bf16.msra.mxu0 %v7088_v9 }
0x10c4   :  { %v2417_v11 = vpop.xlane.xlu0 %2416 }
0x10c5   :  { %v2426_v46 = vmul.f32 0.0078125, %v2417_v11 }
0x10c7   :  { %v8247_v26 = vsub.f32 %v2405_v55, %v2426_v46  ;;  %v7100_v55 = vld [vmem:[%s9252_s13 + $0x18] sm:$0xff]  }
0x10c8   :  { %v2444_v30 = vpop.xlane.xlu0 %2443  ;;  %v2419_v2 = vpop.xlane.xlu1 %2418  ;;  %6323 = vmatpush3.bf16.msra.mxu1 %v7100_v55 }
0x10c9   :  { %v2454_v62 = vmul.f32 0.0078125, %v2444_v30  ;;  %v2427_v48 = vmul.f32 0.0078125, %v2419_v2  ;;  %v2438_v44 = vmul.f32 %v8247_v26, %v8247_v26 }
0x10cb   :  { %v2460_v49 = vadd.f32 1e-05, %v2454_v62  ;;  %2447 = vadd.xlane.f32.xlu0 %v2438_v44  ;;  %v8252_v22 = vsub.f32 %v2406_v53, %v2427_v48  ;;  %v7104_v53 = vld [vmem:[%s9252_s13 + $0x8] sm:$0xff]  }
0x10cd   :  { %7293 = vrsqrt.f32 %v2460_v49  ;;  %v2439_v27 = vmul.f32 %v8252_v22, %v8252_v22 }
0x10ce   :  { %7295 = vrsqrt.f32 %v2461_v1 }
0x10cf   :  { %2420 = vadd.xlane.f32.xlu0 %v2407_v45  ;;  %2449 = vadd.xlane.f32.xlu1 %v2439_v27 }
0x10da   :  { %v7294_v7 = vpop.eup %7293 }
0x10db   :  { %v2472_v14 = vmul.f32 %v7294_v7, %v2430_v50  ;;  %v7101_v50 = vld [vmem:[%s9252_s13 + $0x50] sm:$0xff]   ;;  %v7296_v17 = vpop.eup %7295 }
0x10dc   :  { %6324 = vmatprep.subr.bf16.mxu1 %v7101_v50  ;;  %v2473_v35 = vmul.f32 %v7296_v17, %v8181_v47  ;;  %v2516_v47 = vld [vmem:[%s9251_s12] ss:$2 sm:$0x3] }
0x10dd   :  { %v2482_v18 = vmul.f32 %v8261_v6, %v2472_v14  ;;  %6325 = vmatpush3.bf16.msra.mxu1 %v7102_v19  ;;  %v8346_v30 = vrot.slane %v2516_v47, %v7733_v16  ;;  %v8349_v2 = vrot.slane %v2516_v47, %v7724_v5 }
0x10de   :  { %6326 = vmatprep.subr.bf16.mxu1 %v7103_v58  ;;  %v2483_v41 = vmul.f32 %v8261_v6, %v2473_v35  ;;  %v8374_v35 = vld [vmem:[%s9253_s14] ss:$0 sm:$0xff] }
0x10df   :  { %v8274_v39 = vadd.f32 %v8267_v0, %v2482_v18 }
0x10e0   :  { %v8334_v40 = vadd.f32 %v8267_v0, %v2483_v41 }
0x10e1   :  { %v2497_v52 = vpack.c.bf16 %v8274_v39, %v8271_v25  ;;  %6327 = vmatpush3.bf16.msra.mxu1 %v7104_v53 }
0x10e2   :  { %6328 = vmatprep.subr.bf16.mxu1 %v7105_v51 }
0x10e3   :  { %2641 = vmatmul.mubr.bf16.vlgmr.msra.gmra.mxu0 %v2497_v52 }
0x10e4   :  { %2650 = vmatprep.mubr.bf16.mxu0 %v7452_v34 }
0x10e5   :  { %6329 = vmatpush3.bf16.msra.mxu1 %v7106_v13 }
0x10e6   :  { %6728 = vmatprep.subr.bf16.mxu1 %v7451_v15 }
0x1154   :  { %v2448_v43 = vpop.xlane.xlu0 %2447 }
0x1155   :  { %v2456_v36 = vmul.f32 0.0078125, %v2448_v43 }
0x1157   :  { %v2462_v8 = vadd.f32 1e-05, %v2456_v36 }
0x1158   :  { %v2421_v61 = vpop.xlane.xlu0 %2420  ;;  %v2450_v52 = vpop.xlane.xlu1 %2449 }
0x1159   :  { %7297 = vrsqrt.f32 %v2462_v8  ;;  %v2428_v28 = vmul.f32 0.0078125, %v2421_v61  ;;  %v2457_v37 = vmul.f32 0.0078125, %v2450_v52 }
0x115b   :  { %v2434_v23 = vsub.f32 %v2407_v45, %v2428_v28  ;;  %v2463_v24 = vadd.f32 1e-05, %v2457_v37 }
0x115d   :  { %v2440_v10 = vmul.f32 %v2434_v23, %v2434_v23  ;;  %7299 = vrsqrt.f32 %v2463_v24 }
0x115f   :  { %2451 = vadd.xlane.f32.xlu0 %v2440_v10 }
0x1166   :  { %v7298_v9 = vpop.eup %7297 }
0x1167   :  { %v2474_v21 = vmul.f32 %v7298_v9, %v8247_v26 }
0x1169   :  { %v2484_v38 = vmul.f32 %v8261_v6, %v2474_v21 }
0x116a   :  { %v7300_v42 = vpop.eup %7299 }
0x116b   :  { %v8337_v11 = vadd.f32 %v8267_v0, %v2484_v38  ;;  %v2475_v63 = vmul.f32 %v7300_v42, %v8252_v22 }
0x116d   :  { %v2498_v46 = vpack.c.bf16 %v8337_v11, %v8334_v40  ;;  %v2485_v55 = vmul.f32 %v8261_v6, %v2475_v63 }
0x116f   :  { %2651 = vmatmul.mubr.bf16.gmra.mxu0 %v2498_v46  ;;  %v8359_v19 = vadd.f32 %v8267_v0, %v2485_v55 }
0x1170   :  { %2660 = vmatprep.mubr.bf16.mxu0 %v7452_v34 }
0x11a3   :  { %v2642_v26 = vpop.f32.mrf.mxu0 }
0x11a4   :  { %v2643_v49 = vadd.f32 %v2642_v26, %v8349_v2 }
0x11a5   :  { %v2644_v3 = vpop.f32.mrf.mxu0 }
0x11a6   :  { %v2645_v48 = vadd.f32 %v2644_v3, %v8346_v30  ;;  %v2671_v14 = vmax.f32 %v2643_v49, 0.0 }
0x11a7   :  { %v2646_v62 = vpop.f32.mrf.mxu0 }
0x11a8   :  { %v2647_v44 = vadd.f32 %v2646_v62, %v8349_v2  ;;  %v2672_v32 = vmax.f32 %v2645_v48, 0.0 }
0x11a9   :  { %v2648_v45 = vpop.f32.mrf.mxu0 }
0x11aa   :  { %v2649_v27 = vadd.f32 %v2648_v45, %v8346_v30  ;;  %v2673_v31 = vmax.f32 %v2647_v44, 0.0 }
0x11ac   :  { %v2674_v7 = vmax.f32 %v2649_v27, 0.0  ;;  %v2683_v18 = vpack.c.bf16 %v2673_v31, %v2671_v14 }
0x11ae   :  { %v2684_v54 = vpack.c.bf16 %v2674_v7, %v2672_v32 }
0x11b0   :  { %2854 = vmatprep.mubr.bf16.mxu1 %v2684_v54 }
0x11b1   :  { %2855 = vmatmul.mubr.bf16.vlgmr.msra.gmra.mxu1 %v2683_v18 }
0x11e8   :  { %v2452_v59 = vpop.xlane.xlu0 %2451 }
0x11e9   :  { %v2458_v12 = vmul.f32 0.0078125, %v2452_v59 }
0x11eb   :  { %v2464_v29 = vadd.f32 1e-05, %v2458_v12 }
0x11ed   :  { %7301 = vrsqrt.f32 %v2464_v29 }
0x11fa   :  { %v7302_v56 = vpop.eup %7301 }
0x11fb   :  { %v2476_v57 = vmul.f32 %v7302_v56, %v2434_v23 }
0x11fd   :  { %v2486_v50 = vmul.f32 %v8261_v6, %v2476_v57 }
0x11ff   :  { %v8362_v58 = vadd.f32 %v8267_v0, %v2486_v50 }
0x1201   :  { %v2499_v53 = vpack.c.bf16 %v8362_v58, %v8359_v19 }
0x1203   :  { %2661 = vmatmul.mubr.bf16.gmra.mxu0 %v2499_v53 }
0x1204   :  { %3204 = vmatprep.mubr.bf16.mxu0 %v7452_v34 }
0x122f   :  { %v2652_v51 = vpop.f32.mrf.mxu0 }
0x1230   :  { %v2653_v6 = vadd.f32 %v2652_v51, %v8349_v2 }
0x1231   :  { %v2654_v22 = vpop.f32.mrf.mxu0 }
0x1232   :  { %v2655_v60 = vadd.f32 %v2654_v22, %v8346_v30  ;;  %v2675_v28 = vmax.f32 %v2653_v6, 0.0  ;;  %v7113_v6 = vld [vmem:[%s9273_s24 + $0x154] ss:$12 sps:$4 sm:$0xff]  }
0x1233   :  { %v2656_v13 = vpop.f32.mrf.mxu0 }
0x1234   :  { %v2657_v1 = vadd.f32 %v2656_v13, %v8349_v2  ;;  %v2676_v8 = vmax.f32 %v2655_v60, 0.0  ;;  %v7109_v60 = vld [vmem:[%s9273_s24 + $0x16c] ss:$12 sps:$4 sm:$0xff]  }
0x1235   :  { %v2658_v43 = vpop.f32.mrf.mxu0  ;;  %3172 = vmatprep.subr.bf16.mxu0 %v7109_v60 }
0x1236   :  { %v2659_v36 = vadd.f32 %v2658_v43, %v8346_v30  ;;  %v2677_v0 = vmax.f32 %v2657_v1, 0.0  ;;  %v7110_v1 = vld [vmem:[%s9273_s24 + $0x170] ss:$12 sps:$4 sm:$0xff]  }
0x1237   :  { %6729 = vmatpush3.bf16.msra.mxu1 %v7110_v1  ;;  %v7111_v43 = vld [vmem:[%s9273_s24 + $0x150] ss:$12 sps:$4 sm:$0xff]  }
0x1238   :  { %v2678_v61 = vmax.f32 %v2659_v36, 0.0  ;;  %v2685_v10 = vpack.c.bf16 %v2677_v0, %v2675_v28  ;;  %6730 = vmatprep.subr.bf16.mxu1 %v7451_v15  ;;  %v7114_v36 = vld [vmem:[%s9273_s24 + $0x158] ss:$12 sps:$4 sm:$0xff]   ;;  %v7117_v0 = vld [vmem:[%s9273_s24 + $0x13c] ss:$12 sps:$4 sm:$0xff]  }
0x1239   :  { %v7121_v28 = vld [vmem:[%s9273_s24 + $0x124] ss:$12 sps:$4 sm:$0xff]  }
0x123a   :  { %v2686_v23 = vpack.c.bf16 %v2678_v61, %v2676_v8  ;;  %v7115_v8 = vld [vmem:[%s9273_s24 + $0x138] ss:$12 sps:$4 sm:$0xff]   ;;  %v7118_v61 = vld [vmem:[%s9273_s24 + $0x140] ss:$12 sps:$4 sm:$0xff]  }
0x123b   :  { %6731 = vmatpush3.bf16.msra.mxu1 %v7114_v36 }
0x123c   :  { %2862 = vmatprep.mubr.bf16.mxu1 %v2686_v23  ;;  %6732 = vmatprep.subr.bf16.mxu1 %v7451_v15  ;;  %v7119_v23 = vld [vmem:[%s9273_s24 + $0x120] ss:$12 sps:$4 sm:$0xff]  }
0x123d   :  { %2863 = vmatmul.mubr.bf16.gmra.mxu1 %v2685_v10  ;;  %v7122_v10 = vld [vmem:[%s9273_s24 + $0x128] ss:$12 sps:$4 sm:$0xff]  }
0x123f   :  { %6733 = vmatpush3.bf16.msra.mxu1 %v7118_v61 }
0x1240   :  { %6734 = vmatprep.subr.bf16.mxu1 %v7451_v15 }
0x1243   :  { %6735 = vmatpush3.bf16.msra.mxu1 %v7122_v10 }
0x1244   :  { %6736 = vmatprep.subr.bf16.mxu1 %v7451_v15 }
0x1271   :  { %v6330_v17 = vpop.f32.mrf.mxu1 }
0x1273   :  { %v6331_v9 = vpop.f32.mrf.mxu1 }
0x1274   :  { %v6332_v21 = vadd.f32 %v6331_v9, %v6330_v17  ;;  %v7125_v17 = vld [vmem:[%s9273_s24 + $0x10c] ss:$12 sps:$4 sm:$0xff]   ;;  %v7123_v9 = vld [vmem:[%s9273_s24 + $0x108] ss:$12 sps:$4 sm:$0xff]  }
0x1275   :  { %v6333_v41 = vpop.f32.mrf.mxu1 }
0x1276   :  { %v2857_v38 = vadd.f32 %v6332_v21, %v8374_v35  ;;  %v7126_v21 = vld [vmem:[%s9273_s24 + $0x110] ss:$12 sps:$4 sm:$0xff]  }
0x1277   :  { %v6334_v46 = vpop.f32.mrf.mxu1  ;;  %6737 = vmatpush3.bf16.msra.mxu1 %v7126_v21 }
0x1278   :  { %v6335_v47 = vadd.f32 %v6334_v46, %v6333_v41  ;;  %v2879_v26 = vadd.f32 %v2857_v38, %v8271_v25  ;;  %v7129_v41 = vld [vmem:[%s9273_s24 + $0xf4] ss:$12 sps:$4 sm:$0xff]   ;;  %6738 = vmatprep.subr.bf16.mxu1 %v7451_v15  ;;  %v7127_v38 = vld [vmem:[%s9273_s24 + $0xf0] ss:$12 sps:$4 sm:$0xff]   ;;  %v7130_v46 = vld [vmem:[%s9273_s24 + $0xf8] ss:$12 sps:$4 sm:$0xff]  }
0x127a   :  { %v2860_v3 = vadd.f32 %v6335_v47, %v8374_v35  ;;  %2887 = vadd.xlane.f32.xlu1 %v2879_v26  ;;  %v7133_v47 = vld [vmem:[%s9273_s24 + $0xdc] ss:$12 sps:$4 sm:$0xff]  }
0x127b   :  { %6739 = vmatpush3.bf16.msra.mxu1 %v7130_v46 }
0x127c   :  { %v2880_v62 = vadd.f32 %v2860_v3, %v8274_v39  ;;  %6740 = vmatprep.subr.bf16.mxu1 %v7451_v15  ;;  %v7134_v3 = vld [vmem:[%s9273_s24 + $0xe0] ss:$12 sps:$4 sm:$0xff]  }
0x127e   :  { %2889 = vadd.xlane.f32.xlu0 %v2880_v62 }
0x127f   :  { %6741 = vmatpush3.bf16.msra.mxu1 %v7134_v3 }
0x1280   :  { %6742 = vmatprep.subr.bf16.mxu1 %v7451_v15 }
0x12c3   :  { %v2662_v48 = vpop.f32.mrf.mxu0 }
0x12c4   :  { %v2663_v31 = vadd.f32 %v2662_v48, %v8349_v2  ;;  %v7135_v48 = vld [vmem:[%s9273_s24 + $0xc0] ss:$12 sps:$4 sm:$0xff]  }
0x12c5   :  { %v2664_v44 = vpop.f32.mrf.mxu0 }
0x12c6   :  { %v2665_v45 = vadd.f32 %v2664_v44, %v8346_v30  ;;  %v2679_v18 = vmax.f32 %v2663_v31, 0.0  ;;  %v7138_v44 = vld [vmem:[%s9273_s24 + $0xc8] ss:$12 sps:$4 sm:$0xff]  }
0x12c7   :  { %v2666_v49 = vpop.f32.mrf.mxu0  ;;  %6743 = vmatpush3.bf16.msra.mxu1 %v7138_v44 }
0x12c8   :  { %v2667_v27 = vadd.f32 %v2666_v49, %v8349_v2  ;;  %v2680_v25 = vmax.f32 %v2665_v45, 0.0 }
0x12c9   :  { %v2668_v32 = vpop.f32.mrf.mxu0 }
0x12ca   :  { %v2669_v7 = vadd.f32 %v2668_v32, %v8346_v30  ;;  %v2681_v14 = vmax.f32 %v2667_v27, 0.0 }
0x12cc   :  { %v2682_v54 = vmax.f32 %v2669_v7, 0.0  ;;  %v2687_v37 = vpack.c.bf16 %v2681_v14, %v2679_v18 }
0x12ce   :  { %v2688_v52 = vpack.c.bf16 %v2682_v54, %v2680_v25 }
0x12d0   :  { %2870 = vmatprep.mubr.bf16.mxu1 %v2688_v52 }
0x12d1   :  { %2871 = vmatmul.mubr.bf16.gmra.mxu1 %v2687_v37 }
0x12d2   :  { %6744 = vmatprep.mubr.msk.bf16.mxu1 %vm7453_vm1, %v7451_v15 }
0x12fd   :  { %v6336_v39 = vpop.f32.mrf.mxu1 }
0x12ff   :  { %v6337_v24 = vpop.f32.mrf.mxu1 }
0x1300   :  { %v6338_v59 = vadd.f32 %v6337_v24, %v6336_v39 }
0x1301   :  { %v6339_v12 = vpop.f32.mrf.mxu1 }
0x1302   :  { %v2865_v2 = vadd.f32 %v6338_v59, %v8374_v35 }
0x1303   :  { %v6340_v29 = vpop.f32.mrf.mxu1  ;;  %v2888_v42 = vpop.xlane.xlu1 %2887 }
0x1304   :  { %v6341_v30 = vadd.f32 %v6340_v29, %v6339_v12  ;;  %v2899_v63 = vmul.f32 0.0078125, %v2888_v42  ;;  %v8388_v56 = vadd.f32 %v2865_v2, %v8334_v40 }
0x1306   :  { %v2868_v57 = vadd.f32 %v6341_v30, %v8374_v35  ;;  %v8391_v55 = vsub.f32 %v2879_v26, %v2899_v63  ;;  %2891 = vadd.xlane.f32.xlu1 %v8388_v56  ;;  %v7131_v26 = vld [vmem:[%s9273_s24 + $0xd8] ss:$12 sps:$4 sm:$0xff]  }
0x1307   :  { %v2890_v50 = vpop.xlane.xlu0 %2889 }
0x1308   :  { %v2900_v53 = vmul.f32 0.0078125, %v2890_v50  ;;  %v8395_v51 = vadd.f32 %v2868_v57, %v8337_v11  ;;  %v2911_v22 = vmul.f32 %v8391_v55, %v8391_v55  ;;  %v7107_v11 = vld [vmem:[%s9273_s24 + $0x168] ss:$12 sps:$4 sm:$0xff]  }
0x1309   :  { %3173 = vmatpush1.bf16.msra.mxu0 %v7107_v11 }
0x130a   :  { %v8399_v13 = vsub.f32 %v2880_v62, %v2900_v53  ;;  %2893 = vadd.xlane.f32.xlu0 %v8395_v51  ;;  %2917 = vadd.xlane.f32.xlu1 %v2911_v22  ;;  %v7137_v62 = vld [vmem:[%s9273_s24 + $0xc4] ss:$12 sps:$4 sm:$0xff]   ;;  %v8493_v22 = vld [vmem:[%s9254_s15] ss:$0 sm:$0xff] }
0x130b   :  { %3174 = vmatprep.subr.bf16.mxu0 %v7113_v6 }
0x130c   :  { %v2912_v40 = vmul.f32 %v8399_v13, %v8399_v13 }
0x130d   :  { %3175 = vmatpush1.bf16.msra.mxu0 %v7111_v43 }
0x130e   :  { %2919 = vadd.xlane.f32.xlu0 %v2912_v40  ;;  %3176 = vmatprep.subr.bf16.mxu0 %v7117_v0 }
0x1311   :  { %3177 = vmatpush1.bf16.msra.mxu0 %v7115_v8 }
0x1312   :  { %3178 = vmatprep.subr.bf16.mxu0 %v7121_v28 }
0x1315   :  { %3179 = vmatpush1.bf16.msra.mxu0 %v7119_v23 }
0x1316   :  { %3180 = vmatprep.subr.bf16.mxu0 %v7125_v17 }
0x1319   :  { %3181 = vmatpush1.bf16.msra.mxu0 %v7123_v9 }
0x131a   :  { %3182 = vmatprep.subr.bf16.mxu0 %v7129_v41 }
0x131d   :  { %3183 = vmatpush1.bf16.msra.mxu0 %v7127_v38 }
0x131e   :  { %3184 = vmatprep.subr.bf16.mxu0 %v7133_v47 }
0x1321   :  { %3185 = vmatpush1.bf16.msra.mxu0 %v7131_v26 }
0x1322   :  { %3186 = vmatprep.subr.bf16.mxu0 %v7137_v62 }
0x1325   :  { %3187 = vmatpush1.bf16.msra.mxu0 %v7135_v48 }
0x138f   :  { %v2892_v49 = vpop.xlane.xlu1 %2891 }
0x1390   :  { %v2901_v45 = vmul.f32 0.0078125, %v2892_v49 }
0x1391   :  { %v6342_v27 = vpop.f32.mrf.mxu1 }
0x1392   :  { %v2907_v31 = vsub.f32 %v8388_v56, %v2901_v45  ;;  %v6023_v45 = vld [vmem:[%s9245_s6 + $0x1] ss:$2 sm:$0x7] }
0x1393   :  { %v2894_v32 = vpop.xlane.xlu0 %2893  ;;  %v6343_v7 = vpop.f32.mrf.mxu1 }
0x1394   :  { %v2902_v14 = vmul.f32 0.0078125, %v2894_v32  ;;  %v6344_v25 = vadd.f32 %v6343_v7, %v6342_v27  ;;  %v2918_v54 = vpop.xlane.xlu1 %2917  ;;  %v2913_v18 = vmul.f32 %v2907_v31, %v2907_v31  ;;  %v8531_v32 = vrot.slane %v6023_v45, %v7724_v5 }
0x1395   :  { %v2929_v52 = vmul.f32 0.0078125, %v2918_v54  ;;  %v6345_v37 = vpop.f32.mrf.mxu1  ;;  %v8535_v7 = vrot.slane %v6023_v45, %v261_v20  ;;  %v8538_v54 = vrot.slane %v6023_v45, %v7733_v16 }
0x1396   :  { %v2908_v39 = vsub.f32 %v8395_v51, %v2902_v14  ;;  %v2873_v24 = vadd.f32 %v6344_v25, %v8374_v35  ;;  %2921 = vadd.xlane.f32.xlu1 %v2913_v18 }
0x1397   :  { %v2935_v59 = vadd.f32 1e-05, %v2929_v52  ;;  %v2920_v12 = vpop.xlane.xlu0 %2919  ;;  %v6346_v2 = vpop.f32.mrf.mxu1 }
0x1398   :  { %v2930_v29 = vmul.f32 0.0078125, %v2920_v12  ;;  %v6347_v42 = vadd.f32 %v6346_v2, %v6345_v37  ;;  %v2914_v30 = vmul.f32 %v2908_v39, %v2908_v39  ;;  %v2883_v63 = vadd.f32 %v2873_v24, %v8359_v19 }
0x1399   :  { %7303 = vrsqrt.f32 %v2935_v59 }
0x139a   :  { %v2936_v56 = vadd.f32 1e-05, %v2930_v29  ;;  %v2876_v57 = vadd.f32 %v6347_v42, %v8374_v35  ;;  %2923 = vadd.xlane.f32.xlu0 %v2914_v30  ;;  %2895 = vadd.xlane.f32.xlu1 %v2883_v63  ;;  %v8500_v35 = vld [vmem:[%s9255_s16] ss:$0 sm:$0xff] }
0x139c   :  { %7305 = vrsqrt.f32 %v2936_v56  ;;  %v2884_v50 = vadd.f32 %v2876_v57, %v8362_v58 }
0x139e   :  { %2897 = vadd.xlane.f32.xlu0 %v2884_v50 }
0x13a6   :  { %v7304_v53 = vpop.eup %7303 }
0x13a7   :  { %v2947_v51 = vmul.f32 %v7304_v53, %v8391_v55 }
0x13a9   :  { %v7306_v40 = vpop.eup %7305  ;;  %v2957_v60 = vmul.f32 %v8493_v22, %v2947_v51 }
0x13aa   :  { %v2948_v19 = vmul.f32 %v7306_v40, %v8399_v13 }
0x13ab   :  { %v8504_v11 = vadd.f32 %v8500_v35, %v2957_v60 }
0x13ac   :  { %v2958_v58 = vmul.f32 %v8493_v22, %v2948_v19 }
0x13ae   :  { %v8507_v55 = vadd.f32 %v8500_v35, %v2958_v58 }
0x13b0   :  { %v3023_v1 = vpack.c.bf16 %v8507_v55, %v8504_v11 }
0x13b2   :  { %3205 = vmatmul.mubr.bf16.vlgmr.msra.gmra.mxu0 %v3023_v1  ;;  %6745 = vmatmul.mubr.bf16.vlgmr.msra.gmra.mxu1 %v3023_v1 }
0x13b3   :  { %3214 = vmatprep.mubr.bf16.mxu0 %v7452_v34  ;;  %6748 = vmatprep.mubr.msk.bf16.mxu1 %vm7453_vm1, %v7451_v15 }
0x141f   :  { %v2922_v13 = vpop.xlane.xlu1 %2921 }
0x1420   :  { %v2931_v6 = vmul.f32 0.0078125, %v2922_v13 }
0x1422   :  { %v2937_v43 = vadd.f32 1e-05, %v2931_v6 }
0x1423   :  { %v2924_v36 = vpop.xlane.xlu0 %2923  ;;  %v2896_v0 = vpop.xlane.xlu1 %2895 }
0x1424   :  { %7307 = vrsqrt.f32 %v2937_v43  ;;  %v2932_v8 = vmul.f32 0.0078125, %v2924_v36  ;;  %v2903_v61 = vmul.f32 0.0078125, %v2896_v0 }
0x1426   :  { %v2938_v28 = vadd.f32 1e-05, %v2932_v8  ;;  %v2909_v23 = vsub.f32 %v2883_v63, %v2903_v61 }
0x1427   :  { %v2898_v10 = vpop.xlane.xlu0 %2897 }
0x1428   :  { %7309 = vrsqrt.f32 %v2938_v28  ;;  %v2904_v17 = vmul.f32 0.0078125, %v2898_v10  ;;  %v2915_v9 = vmul.f32 %v2909_v23, %v2909_v23 }
0x142a   :  { %v2910_v21 = vsub.f32 %v2884_v50, %v2904_v17  ;;  %2925 = vadd.xlane.f32.xlu1 %v2915_v9 }
0x142c   :  { %v2916_v41 = vmul.f32 %v2910_v21, %v2910_v21 }
0x142e   :  { %2927 = vadd.xlane.f32.xlu0 %v2916_v41 }
0x1431   :  { %v7308_v38 = vpop.eup %7307 }
0x1432   :  { %v2949_v46 = vmul.f32 %v7308_v38, %v2907_v31 }
0x1434   :  { %v2959_v3 = vmul.f32 %v8493_v22, %v2949_v46 }
0x1435   :  { %v7310_v47 = vpop.eup %7309 }
0x1436   :  { %v2950_v26 = vmul.f32 %v7310_v47, %v2908_v39  ;;  %v8517_v48 = vadd.f32 %v8500_v35, %v2959_v3 }
0x1438   :  { %v2960_v62 = vmul.f32 %v8493_v22, %v2950_v26 }
0x143a   :  { %v8520_v44 = vadd.f32 %v8500_v35, %v2960_v62 }
0x143c   :  { %v3024_v49 = vpack.c.bf16 %v8520_v44, %v8517_v48 }
0x143e   :  { %3215 = vmatmul.mubr.bf16.gmra.mxu0 %v3024_v49  ;;  %6749 = vmatmul.mubr.bf16.gmra.mxu1 %v3024_v49 }
0x143f   :  { %3224 = vmatprep.mubr.bf16.mxu0 %v7452_v34  ;;  %6752 = vmatprep.mubr.msk.bf16.mxu1 %vm7453_vm1, %v7451_v15 }
0x1472   :  { %v3206_v27 = vpop.f32.mrf.mxu0  ;;  %v3269_v31 = vpop.f32.mrf.mxu1 }
0x1473   :  { %v3207_v37 = vadd.f32 %v3206_v27, %v8531_v32  ;;  %v3270_v39 = vadd.f32 %v3269_v31, %v8535_v7 }
0x1474   :  { %v3208_v14 = vpop.f32.mrf.mxu0  ;;  %v6746_v25 = vpop.f32.mrf.mxu1 }
0x1475   :  { %v3209_v4 = vadd.f32 %v3208_v14, %v8538_v54 }
0x1476   :  { %v3210_v18 = vpop.f32.mrf.mxu0  ;;  %v3272_v52 = vpop.f32.mrf.mxu1 }
0x1477   :  { %v3211_v24 = vadd.f32 %v3210_v18, %v8531_v32  ;;  %v3273_v59 = vadd.f32 %v3272_v52, %v8535_v7 }
0x1478   :  { %v3212_v12 = vpop.f32.mrf.mxu0  ;;  %v6747_v2 = vpop.f32.mrf.mxu1 }
0x1479   :  { %v8545_v20 = vpack.c.bf16 %v3211_v24, %v3207_v37  ;;  %v8547_v29 = vpack.c.bf16 %v3273_v59, %v3270_v39  ;;  %v3213_v42 = vadd.f32 %v3212_v12, %v8538_v54 }
0x147b   :  { %v8550_v30 = vpack.c.bf16 %v3213_v42, %v3209_v4 }
0x147d   :  { %3466 = vrot.lane.b32.xlu0 %v8550_v30, %s7454_s5  ;;  %v3303_v47 = vsel %vm518_vm3, %v8550_v30, 0 }
0x14b3   :  { %v2926_v63 = vpop.xlane.xlu1 %2925 }
0x14b4   :  { %v2933_v56 = vmul.f32 0.0078125, %v2926_v63 }
0x14b6   :  { %v2939_v57 = vadd.f32 1e-05, %v2933_v56 }
0x14b7   :  { %v2928_v50 = vpop.xlane.xlu0 %2927 }
0x14b8   :  { %7311 = vrsqrt.f32 %v2939_v57  ;;  %v2934_v53 = vmul.f32 0.0078125, %v2928_v50 }
0x14ba   :  { %v2940_v51 = vadd.f32 1e-05, %v2934_v53 }
0x14bc   :  { %7313 = vrsqrt.f32 %v2940_v51 }
0x14c5   :  { %v7312_v40 = vpop.eup %7311 }
0x14c6   :  { %v2951_v19 = vmul.f32 %v7312_v40, %v2909_v23 }
0x14c8   :  { %v2961_v1 = vmul.f32 %v8493_v22, %v2951_v19 }
0x14c9   :  { %v7314_v60 = vpop.eup %7313 }
0x14ca   :  { %v2952_v58 = vmul.f32 %v7314_v60, %v2910_v21  ;;  %v8557_v6 = vadd.f32 %v8500_v35, %v2961_v1 }
0x14cc   :  { %v2962_v13 = vmul.f32 %v8493_v22, %v2952_v58 }
0x14ce   :  { %v8560_v43 = vadd.f32 %v8500_v35, %v2962_v13 }
0x14d0   :  { %v3025_v36 = vpack.c.bf16 %v8560_v43, %v8557_v6 }
0x14d2   :  { %3225 = vmatmul.mubr.bf16.gmra.mxu0 %v3025_v36  ;;  %6753 = vmatmul.mubr.bf16.gmra.mxu1 %v3025_v36 }
0x14d3   :  { %6760 = vmatprep.mubr.msk.bf16.mxu0 %vm518_vm3, %v8545_v20 }
0x14ef   :  { %v3467_v62 = vpop.permute.xlu0 %3466 }
0x14f0   :  { %v3477_v45 = vsel %vm518_vm3, %v3467_v62, 0 }
0x14fe   :  { %v3216_v0 = vpop.f32.mrf.mxu0  ;;  %v3277_v8 = vpop.f32.mrf.mxu1 }
0x14ff   :  { %v3278_v61 = vadd.f32 %v3277_v8, %v8535_v7  ;;  %v3217_v38 = vadd.f32 %v3216_v0, %v8531_v32 }
0x1500   :  { %v3218_v28 = vpop.f32.mrf.mxu0  ;;  %v6750_v22 = vpop.f32.mrf.mxu1 }
0x1501   :  { %v8567_v23 = vpack.c.bf16 %v3278_v61, %v3278_v61  ;;  %v3219_v10 = vadd.f32 %v3218_v28, %v8538_v54  ;;  %v8589_v46 = vpack.c.bf16 %v3217_v38, %v3217_v38 }
0x1502   :  { %v3280_v35 = vpop.f32.mrf.mxu1  ;;  %v3220_v31 = vpop.f32.mrf.mxu0 }
0x1503   :  { %v8570_v17 = vpack.c.bf16 %v3219_v10, %v3219_v10  ;;  %6994 = vmatprep.subr.msk.bf16.mxu1 %vm629_vm4, %v8567_v23  ;;  %v3406_v9 = vsel %vm629_vm4, %v8567_v23, 0  ;;  %v3221_v52 = vadd.f32 %v3220_v31, %v8531_v32  ;;  %v3281_v37 = vadd.f32 %v3280_v35, %v8535_v7 }
0x1504   :  { %v6751_v21 = vpop.f32.mrf.mxu1  ;;  %6765 = vmatpush3.bf16.msra.mxu1 %v3406_v9  ;;  %v8603_v14 = vpop.f32.mrf.mxu0 }
0x1505   :  { %6992 = vmatprep.subr.msk.bf16.mxu0 %vm518_vm3, %v8570_v17  ;;  %6766 = vmatprep.subr.bf16.mxu1 %v8547_v29  ;;  %v3306_v41 = vsel %vm518_vm3, %v8570_v17, 0 }
0x1506   :  { %3468 = vrot.lane.b32.xlu1 %v8570_v17, %s7454_s5  ;;  %6757 = vmatpush3.bf16.xpose.msra.mxu0 %v3306_v41 }
0x1507   :  { %6993 = vmatprep.subr.msk.bf16.mxu0 %vm518_vm3, %v8550_v30 }
0x1508   :  { %6767 = vmatpush3.bf16.msra.mxu1 %v8547_v29 }
0x150a   :  { %3460 = vrot.lane.b32.xlu1 %v8545_v20, %s7454_s5 }
0x150e   :  { %3462 = vrot.lane.b32.xlu1 %v8589_v46, %s7454_s5  ;;  %6759 = vmatpush3.bf16.xpose.msra.mxu0 %v3303_v47 }
0x1515   :  { %6761 = vmatmul.mubr.msk.bf16.vlgmr.msra.gmra.mxu0 %vm518_vm3, %v8589_v46 }
0x1578   :  { %v3469_v26 = vpop.permute.xlu1 %3468 }
0x1579   :  { %6995 = vmatprep.subr.msk.bf16.mxu0 %vm518_vm3, %v3469_v26  ;;  %v3480_v3 = vsel %vm518_vm3, %v3469_v26, 0 }
0x157a   :  { %6773 = vmatpush3.bf16.xpose.msra.mxu0 %v3480_v3 }
0x157b   :  { %6996 = vmatprep.subr.msk.bf16.mxu0 %vm518_vm3, %v3467_v62 }
0x157c   :  { %v3461_v49 = vpop.permute.xlu1 %3460 }
0x157d   :  { %6776 = vmatprep.mubr.msk.bf16.mxu0 %vm518_vm3, %v3461_v49 }
0x1580   :  { %v3463_v27 = vpop.permute.xlu1 %3462 }
0x1582   :  { %6775 = vmatpush3.bf16.xpose.msra.mxu0 %v3477_v45 }
0x1589   :  { %6777 = vmatmul.mubr.msk.bf16.vlgmr.msra.gmra.mxu0 %vm518_vm3, %v3463_v27 }
0x1592   :  { %v3226_v25 = vpop.f32.mrf.mxu0  ;;  %v3285_v18 = vpop.f32.mrf.mxu1 }
0x1593   :  { %v3227_v39 = vadd.f32 %v3226_v25, %v8531_v32  ;;  %v3286_v24 = vadd.f32 %v3285_v18, %v8535_v7 }
0x1594   :  { %v6754_v59 = vpop.f32.mrf.mxu1  ;;  %v8615_v63 = vpop.f32.mrf.mxu0 }
0x1595   :  { %v8609_v12 = vpack.c.bf16 %v3227_v39, %v3221_v52  ;;  %v8611_v2 = vpack.c.bf16 %v3286_v24, %v3281_v37 }
0x1596   :  { %v8613_v4 = vpop.f32.mrf.mxu1  ;;  %v8617_v56 = vpop.f32.mrf.mxu0 }
0x1598   :  { %v6755_v42 = vpop.f32.mrf.mxu1  ;;  %v8619_v57 = vpop.f32.mrf.mxu0 }
0x15d5   :  { %v6762_v50 = vpop.f32.mrf.mxu0 }
0x15d6   :  { %v3358_v51 = vmul.f32 0.17677669, %v6762_v50 }
0x15d7   :  { %v3342_v53 = vpop.f32.mrf.mxu0 }
0x15d8   :  { %v3356_v40 = vmul.f32 0.17677669, %v3342_v53  ;;  %v3361_v1 = vadd.f32 %v3358_v51, %v7804_v33 }
0x15d9   :  { %v6763_v19 = vpop.f32.mrf.mxu0 }
0x15da   :  { %v3359_v60 = vadd.f32 %v3356_v40, %v7804_v33  ;;  %v3368_v8 = vsel %vm585_vm6, %v3361_v1, -inf }
0x15db   :  { %v3345_v58 = vpop.f32.mrf.mxu0 }
0x15dc   :  { %v3357_v13 = vmul.f32 0.17677669, %v3345_v58  ;;  %v3362_v36 = vsel %vm585_vm6, %v3359_v60, -inf }
0x15dd   :  { %3363 = vmax.xlane.f32.xlu0 %v3362_v36 }
0x15de   :  { %v3360_v0 = vadd.f32 %v3357_v13, %v7804_v33 }
0x15e0   :  { %v3365_v61 = vsel %vm585_vm6, %v3360_v0, -inf }
0x15e1   :  { %3369 = vmax.xlane.f32.xlu0 %v3368_v8  ;;  %3366 = vmax.xlane.f32.xlu1 %v3365_v61 }
0x1649   :  { %v6778_v28 = vpop.f32.mrf.mxu0 }
0x164a   :  { %v3532_v10 = vmul.f32 0.17677669, %v6778_v28 }
0x164b   :  { %v3516_v22 = vpop.f32.mrf.mxu0 }
0x164c   :  { %v3530_v35 = vmul.f32 0.17677669, %v3516_v22  ;;  %v3535_v38 = vadd.f32 %v3532_v10, %v7804_v33 }
0x164d   :  { %v6779_v9 = vpop.f32.mrf.mxu0 }
0x164e   :  { %v3533_v21 = vadd.f32 %v3530_v35, %v7804_v33  ;;  %v3542_v62 = vsel %vm585_vm6, %v3535_v38, -inf }
0x164f   :  { %v3519_v41 = vpop.f32.mrf.mxu0 }
0x1650   :  { %v3531_v47 = vmul.f32 0.17677669, %v3519_v41  ;;  %v3536_v26 = vsel %vm585_vm6, %v3533_v21, -inf }
0x1651   :  { %3537 = vmax.xlane.f32.xlu0 %v3536_v26 }
0x1652   :  { %v3534_v3 = vadd.f32 %v3531_v47, %v7804_v33 }
0x1654   :  { %v3539_v49 = vsel %vm585_vm6, %v3534_v3, -inf }
0x1655   :  { %3543 = vmax.xlane.f32.xlu0 %v3542_v62  ;;  %3540 = vmax.xlane.f32.xlu1 %v3539_v49 }
0x1666   :  { %v3364_v45 = vpop.xlane.xlu0 %3363 }
0x1667   :  { %v3371_v27 = vsub.f32 %v3359_v60, %v3364_v45 }
0x1669   :  { %v3374_v37 = vmul.f32 1.442695, %v3371_v27 }
0x166a   :  { %v3370_v31 = vpop.xlane.xlu0 %3369  ;;  %v3367_v25 = vpop.xlane.xlu1 %3366 }
0x166b   :  { %v3373_v18 = vsub.f32 %v3361_v1, %v3370_v31  ;;  %v3372_v52 = vsub.f32 %v3360_v0, %v3367_v25 }
0x166d   :  { %v3378_v39 = vmul.f32 1.442695, %v3373_v18  ;;  %v3376_v24 = vmul.f32 1.442695, %v3372_v52 }
0x166f   :  { %7315 = vpow2.f32 %v3378_v39 }
0x1670   :  { %7317 = vpow2.f32 %v3376_v24  ;;  %v8680_v24 = vld [vmem:[%s9246_s7 + $0x58] sm:$0xff]  }
0x1671   :  { %7319 = vpow2.f32 %v3374_v37 }
0x167c   :  { %v7316_v59 = vpop.eup %7315 }
0x167d   :  { %v7318_v42 = vpop.eup %7317  ;;  %v3386_v50 = vsel %vm585_vm6, %v7316_v59, 0.0 }
0x167e   :  { %v7320_v53 = vpop.eup %7319  ;;  %3387 = vadd.xlane.f32.xlu1 %v3386_v50  ;;  %v3383_v51 = vsel %vm585_vm6, %v7318_v42, 0.0 }
0x167f   :  { %3384 = vadd.xlane.f32.xlu0 %v3383_v51  ;;  %v3380_v40 = vsel %vm585_vm6, %v7320_v53, 0.0 }
0x1682   :  { %3381 = vadd.xlane.f32.xlu1 %v3380_v40 }
0x16da   :  { %v3538_v19 = vpop.xlane.xlu0 %3537 }
0x16db   :  { %v3545_v60 = vsub.f32 %v3533_v21, %v3538_v19 }
0x16dd   :  { %v3548_v0 = vmul.f32 1.442695, %v3545_v60 }
0x16de   :  { %v3544_v58 = vpop.xlane.xlu0 %3543  ;;  %v3541_v1 = vpop.xlane.xlu1 %3540 }
0x16df   :  { %v3547_v13 = vsub.f32 %v3535_v38, %v3544_v58  ;;  %v3546_v36 = vsub.f32 %v3534_v3, %v3541_v1  ;;  %v8686_v58 = vld [vmem:[%s9246_s7 + $0x50] sm:$0xff]  }
0x16e1   :  { %v3552_v8 = vmul.f32 1.442695, %v3547_v13  ;;  %v3550_v61 = vmul.f32 1.442695, %v3546_v36 }
0x16e3   :  { %7321 = vpow2.f32 %v3552_v8 }
0x16e4   :  { %7323 = vpow2.f32 %v3550_v61 }
0x16e5   :  { %7325 = vpow2.f32 %v3548_v0 }
0x16f0   :  { %v7322_v28 = vpop.eup %7321 }
0x16f1   :  { %v7324_v22 = vpop.eup %7323  ;;  %v3560_v10 = vsel %vm585_vm6, %v7322_v28, 0.0 }
0x16f2   :  { %v7326_v35 = vpop.eup %7325  ;;  %3561 = vadd.xlane.f32.xlu0 %v3560_v10  ;;  %v3557_v9 = vsel %vm585_vm6, %v7324_v22, 0.0 }
0x16f3   :  { %3558 = vadd.xlane.f32.xlu1 %v3557_v9  ;;  %v3554_v21 = vsel %vm585_vm6, %v7326_v35, 0.0 }
0x16f6   :  { %3555 = vadd.xlane.f32.xlu0 %v3554_v21 }
0x1704   :  { %3575 = vrot.lane.b32.xlu1 %v8567_v23, %s7454_s5 }
0x1707   :  { %v3388_v41 = vpop.xlane.xlu1 %3387 }
0x1708   :  { %3775 = vrot.lane.b32.xlu1 %v8570_v17, %s7456_s22  ;;  %v3385_v38 = vpop.xlane.xlu0 %3384  ;;  %7327 = vrcp.f32 %v3388_v41 }
0x1709   :  { %7329 = vrcp.f32 %v3385_v38 }
0x170b   :  { %v3382_v47 = vpop.xlane.xlu1 %3381 }
0x170c   :  { %3773 = vrot.lane.b32.xlu1 %v8550_v30, %s7456_s22  ;;  %3573 = vrot.lane.b32.xlu0 %v8547_v29, %s7454_s5  ;;  %7331 = vrcp.f32 %v3382_v47 }
0x1710   :  { %3771 = vrot.lane.b32.xlu1 %v8589_v46, %s7456_s22  ;;  %3769 = vrot.lane.b32.xlu0 %v8545_v20, %s7456_s22 }
0x1714   :  { %4015 = vrot.lane.b32.xlu1 %v8550_v30, %s7457_s25  ;;  %4017 = vrot.lane.b32.xlu0 %v8570_v17, %s7457_s25  ;;  %v8664_v30 = vld [vmem:[%s9246_s7 + $0x48] sm:$0xff]  }
0x1715   :  { %v7328_v26 = vpop.eup %7327  ;;  %6796 = vmatprep.subr.bf16.mxu0 %v8664_v30 }
0x1716   :  { %v7330_v3 = vpop.eup %7329  ;;  %v3394_v49 = vmul.f32 %v7328_v26, %v7316_v59  ;;  %6797 = vmatpush3.bf16.msra.mxu0 %v8664_v30 }
0x1717   :  { %v3393_v27 = vmul.f32 %v7330_v3, %v7318_v42 }
0x1718   :  { %4013 = vrot.lane.b32.xlu1 %v8589_v46, %s7457_s25  ;;  %4011 = vrot.lane.b32.xlu0 %v8545_v20, %s7457_s25  ;;  %v3396_v25 = vpack.c.bf16 %v3394_v49, %v3394_v49  ;;  %v8671_v20 = vld [vmem:[%s9246_s7 + $0x40] sm:$0xff]  }
0x1719   :  { %v7332_v62 = vpop.eup %7331  ;;  %6798 = vmatprep.subr.bf16.mxu0 %v8671_v20 }
0x171a   :  { %v3392_v45 = vmul.f32 %v7332_v62, %v7320_v53  ;;  %6799 = vmatpush3.bf16.msra.mxu0 %v8671_v20 }
0x171c   :  { %v3395_v31 = vpack.c.bf16 %v3393_v27, %v3392_v45 }
0x171e   :  { %6768 = vmatprep.mubr.msk.bf16.mxu1 %vm585_vm6, %v3395_v31 }
0x171f   :  { %6769 = vmatmul.mubr.msk.bf16.vlgmr.msra.gmra.mxu1 %vm585_vm6, %v3396_v25  ;;  %v3233_v25 = vadd.f32 %v8619_v57, %v8538_v54 }
0x177b   :  { %v3562_v17 = vpop.xlane.xlu0 %3561 }
0x177c   :  { %v3559_v46 = vpop.xlane.xlu1 %3558  ;;  %7333 = vrcp.f32 %v3562_v17  ;;  %v8709_v17 = vpack.c.bf16 %v3233_v25, %v3233_v25 }
0x177d   :  { %7335 = vrcp.f32 %v3559_v46 }
0x177e   :  { %v4267_v57 = vsel %vm518_vm3, %v8709_v17, 0 }
0x177f   :  { %v3556_v18 = vpop.xlane.xlu0 %3555 }
0x1780   :  { %7337 = vrcp.f32 %v3556_v18  ;;  %v3576_v52 = vpop.permute.xlu1 %3575  ;;  %v3229_v18 = vadd.f32 %v8615_v63, %v8538_v54 }
0x1781   :  { %v3585_v37 = vsel %vm629_vm4, %v3576_v52, 0  ;;  %6997 = vmatprep.subr.msk.bf16.mxu1 %vm629_vm4, %v3576_v52  ;;  %v3223_v52 = vadd.f32 %v8603_v14, %v8538_v54  ;;  %v3231_v54 = vadd.f32 %v8617_v56, %v8531_v32 }
0x1782   :  { %6781 = vmatpush3.bf16.msra.mxu1 %v3585_v37 }
0x1783   :  { %v3574_v39 = vpop.permute.xlu0 %3573  ;;  %v8731_v14 = vpack.c.bf16 %v3231_v54, %v3231_v54 }
0x1784   :  { %6782 = vmatprep.subr.bf16.mxu1 %v3574_v39  ;;  %v3776_v1 = vpop.permute.xlu1 %3775 }
0x1785   :  { %v3787_v38 = vsel %vm518_vm3, %v3776_v1, 0 }
0x1786   :  { %6783 = vmatpush3.bf16.msra.mxu1 %v3574_v39  ;;  %v8718_v39 = vpack.c.bf16 %v3229_v18, %v3223_v52 }
0x1787   :  { %6788 = vmatprep.subr.bf16.mxu1 %v8680_v24  ;;  %v3770_v47 = vpop.permute.xlu0 %3769 }
0x1788   :  { %v3774_v26 = vpop.permute.xlu1 %3773  ;;  %v4264_v63 = vsel %vm518_vm3, %v8718_v39, 0 }
0x1789   :  { %v7334_v59 = vpop.eup %7333  ;;  %v3784_v3 = vsel %vm518_vm3, %v3774_v26, 0 }
0x178a   :  { %v7336_v42 = vpop.eup %7335  ;;  %v3568_v53 = vmul.f32 %v7334_v59, %v7322_v28 }
0x178b   :  { %v3567_v40 = vmul.f32 %v7336_v42, %v7324_v22  ;;  %v4018_v62 = vpop.permute.xlu0 %4017 }
0x178c   :  { %v3570_v60 = vpack.c.bf16 %v3568_v53, %v3568_v53  ;;  %v3772_v49 = vpop.permute.xlu1 %3771  ;;  %v4029_v45 = vsel %vm518_vm3, %v4018_v62, 0 }
0x178d   :  { %v7338_v50 = vpop.eup %7337 }
0x178e   :  { %v3566_v51 = vmul.f32 %v7338_v50, %v7326_v35 }
0x178f   :  { %v4012_v27 = vpop.permute.xlu0 %4011 }
0x1790   :  { %v3569_v19 = vpack.c.bf16 %v3567_v40, %v3566_v51  ;;  %v4016_v31 = vpop.permute.xlu1 %4015 }
0x1791   :  { %v4026_v46 = vsel %vm518_vm3, %v4016_v31, 0 }
0x1792   :  { %6784 = vmatprep.mubr.msk.bf16.mxu1 %vm585_vm6, %v3569_v19 }
0x1793   :  { %6785 = vmatmul.mubr.msk.bf16.vlgmr.msra.gmra.mxu1 %vm585_vm6, %v3570_v60 }
0x1794   :  { %6789 = vmatpush3.bf16.msra.mxu1 %v8680_v24  ;;  %v4014_v37 = vpop.permute.xlu1 %4013 }
0x1795   :  { %6790 = vmatprep.subr.bf16.mxu1 %v8686_v58 }
0x1798   :  { %6791 = vmatpush3.bf16.msra.mxu1 %v8686_v58 }
0x1799   :  { %6998 = vmatprep.subr.msk.bf16.mxu1 %vm518_vm3, %v3776_v1 }
0x17df   :  { %v6770_v13 = vpop.f32.mrf.mxu1 }
0x17e0   :  { %v3457_v28 = vpack.c.bf16 %v6770_v13, %v6770_v13 }
0x17e1   :  { %v3442_v36 = vpop.f32.mrf.mxu1 }
0x17e3   :  { %v6771_v0 = vpop.f32.mrf.mxu1 }
0x17e5   :  { %v3445_v8 = vpop.f32.mrf.mxu1 }
0x17e6   :  { %v3456_v61 = vpack.c.bf16 %v3445_v8, %v3442_v36 }
0x17e8   :  { %6800 = vmatprep.mubr.msk.bf16.mxu0 %vm518_vm3, %v3456_v61 }
0x17e9   :  { %6801 = vmatmul.mubr.msk.bf16.vlgmr.msra.gmra.mxu0 %vm518_vm3, %v3457_v28 }
0x1853   :  { %v6786_v22 = vpop.f32.mrf.mxu1 }
0x1854   :  { %v3636_v41 = vpack.c.bf16 %v6786_v22, %v6786_v22 }
0x1855   :  { %v3621_v10 = vpop.f32.mrf.mxu1 }
0x1857   :  { %v6787_v35 = vpop.f32.mrf.mxu1 }
0x1859   :  { %v3624_v9 = vpop.f32.mrf.mxu1 }
0x185a   :  { %v3635_v21 = vpack.c.bf16 %v3624_v9, %v3621_v10 }
0x185c   :  { %6792 = vmatprep.mubr.msk.bf16.mxu1 %vm518_vm3, %v3635_v21 }
0x185d   :  { %6793 = vmatmul.mubr.msk.bf16.vlgmr.msra.gmra.mxu1 %vm518_vm3, %v3636_v41 }
0x185e   :  { %6805 = vmatpush3.bf16.xpose.msra.mxu1 %v3787_v38  ;;  %6808 = vmatprep.mubr.msk.bf16.mxu1 %vm518_vm3, %v3770_v47 }
0x185f   :  { %6999 = vmatprep.subr.msk.bf16.mxu1 %vm518_vm3, %v3774_v26 }
0x1866   :  { %6807 = vmatpush3.bf16.xpose.msra.mxu1 %v3784_v3 }
0x1867   :  { %7001 = vmatprep.subr.msk.bf16.mxu1 %vm518_vm3, %v4018_v62 }
0x186d   :  { %6809 = vmatmul.mubr.msk.bf16.vlgmr.msra.gmra.mxu1 %vm518_vm3, %v3772_v49 }
0x186e   :  { %6829 = vmatpush3.bf16.xpose.msra.mxu1 %v4029_v45  ;;  %6832 = vmatprep.mubr.msk.bf16.mxu1 %vm518_vm3, %v4012_v27 }
0x186f   :  { %7002 = vmatprep.subr.msk.bf16.mxu1 %vm518_vm3, %v4016_v31 }
0x1876   :  { %6831 = vmatpush3.bf16.xpose.msra.mxu1 %v4026_v46 }
0x1877   :  { %7004 = vmatprep.subr.msk.bf16.mxu1 %vm518_vm3, %v8709_v17 }
0x187d   :  { %6833 = vmatmul.mubr.msk.bf16.vlgmr.msra.gmra.mxu1 %vm518_vm3, %v4014_v37 }
0x187e   :  { %6853 = vmatpush3.bf16.xpose.msra.mxu1 %v4267_v57  ;;  %6856 = vmatprep.mubr.msk.bf16.mxu1 %vm518_vm3, %v8609_v12 }
0x187f   :  { %7005 = vmatprep.subr.msk.bf16.mxu1 %vm518_vm3, %v8718_v39 }
0x1886   :  { %6855 = vmatpush3.bf16.xpose.msra.mxu1 %v4264_v63 }
0x188d   :  { %6857 = vmatmul.mubr.msk.bf16.vlgmr.msra.gmra.mxu1 %vm518_vm3, %v8731_v14 }
0x18a9   :  { %v8735_v59 = vpop.f32.mrf.mxu0 }
0x18ab   :  { %v8737_v42 = vpop.f32.mrf.mxu0 }
0x18ad   :  { %v6803_v50 = vpop.f32.mrf.mxu0 }
0x191d   :  { %v8739_v53 = vpop.f32.mrf.mxu1 }
0x191f   :  { %v8741_v51 = vpop.f32.mrf.mxu1 }
0x1921   :  { %v6795_v40 = vpop.f32.mrf.mxu1 }
0x1923   :  { %v8743_v19 = vpop.f32.mrf.mxu1 }
0x192d   :  { %v6810_v60 = vpop.f32.mrf.mxu1 }
0x192e   :  { %v3839_v32 = vmul.f32 0.17677669, %v6810_v60 }
0x192f   :  { %v3823_v1 = vpop.f32.mrf.mxu1 }
0x1930   :  { %v3837_v56 = vmul.f32 0.17677669, %v3823_v1  ;;  %v3842_v8 = vadd.f32 %v3839_v32, %v7804_v33 }
0x1931   :  { %v6811_v13 = vpop.f32.mrf.mxu1 }
0x1932   :  { %v3840_v36 = vadd.f32 %v3837_v56, %v7804_v33  ;;  %v3849_v10 = vsel %vm585_vm6, %v3842_v8, -inf }
0x1933   :  { %v3826_v0 = vpop.f32.mrf.mxu1 }
0x1934   :  { %v3838_v61 = vmul.f32 0.17677669, %v3826_v0  ;;  %v3843_v28 = vsel %vm585_vm6, %v3840_v36, -inf }
0x1935   :  { %3844 = vmax.xlane.f32.xlu0 %v3843_v28 }
0x1936   :  { %v3841_v22 = vadd.f32 %v3838_v61, %v7804_v33 }
0x1938   :  { %v3846_v35 = vsel %vm585_vm6, %v3841_v22, -inf }
0x1939   :  { %3850 = vmax.xlane.f32.xlu0 %v3849_v10  ;;  %3847 = vmax.xlane.f32.xlu1 %v3846_v35 }
0x193d   :  { %v6834_v9 = vpop.f32.mrf.mxu1 }
0x193e   :  { %v4081_v32 = vmul.f32 0.17677669, %v6834_v9 }
0x193f   :  { %v4065_v21 = vpop.f32.mrf.mxu1 }
0x1940   :  { %v4079_v60 = vmul.f32 0.17677669, %v4065_v21 }
0x1941   :  { %v6835_v41 = vpop.f32.mrf.mxu1 }
0x1942   :  { %v4082_v56 = vadd.f32 %v4079_v60, %v7804_v33  ;;  %v8773_v41 = vld [vmem:[%s9246_s7 + $0x68] sm:$0xff]  }
0x1943   :  { %v4068_v38 = vpop.f32.mrf.mxu1 }
0x1944   :  { %v4080_v1 = vmul.f32 0.17677669, %v4068_v38  ;;  %v4085_v0 = vsel %vm585_vm6, %v4082_v56, -inf }
0x1946   :  { %v4083_v13 = vadd.f32 %v4080_v1, %v7804_v33 }
0x194d   :  { %v8751_v47 = vpop.f32.mrf.mxu1 }
0x194f   :  { %v8753_v26 = vpop.f32.mrf.mxu1 }
0x1951   :  { %v6859_v3 = vpop.f32.mrf.mxu1 }
0x19be   :  { %v3845_v62 = vpop.xlane.xlu0 %3844 }
0x19bf   :  { %v3852_v49 = vsub.f32 %v3840_v36, %v3845_v62  ;;  %v4084_v36 = vadd.f32 %v4081_v32, %v7804_v33 }
0x19c1   :  { %v3855_v46 = vmul.f32 1.442695, %v3852_v49  ;;  %v4091_v61 = vsel %vm585_vm6, %v4084_v36, -inf }
0x19c2   :  { %v3851_v45 = vpop.xlane.xlu0 %3850  ;;  %v3848_v27 = vpop.xlane.xlu1 %3847 }
0x19c3   :  { %v3854_v31 = vsub.f32 %v3842_v8, %v3851_v45  ;;  %v3853_v25 = vsub.f32 %v3841_v22, %v3848_v27  ;;  %v4088_v8 = vsel %vm585_vm6, %v4083_v13, -inf }
0x19c5   :  { %v3859_v18 = vmul.f32 1.442695, %v3854_v31  ;;  %v3857_v52 = vmul.f32 1.442695, %v3853_v25 }
0x19c7   :  { %7339 = vpow2.f32 %v3859_v18 }
0x19c8   :  { %7341 = vpow2.f32 %v3857_v52 }
0x19c9   :  { %7343 = vpow2.f32 %v3855_v46 }
0x19d4   :  { %v7340_v37 = vpop.eup %7339 }
0x19d5   :  { %v7342_v57 = vpop.eup %7341  ;;  %v3867_v63 = vsel %vm585_vm6, %v7340_v37, 0.0 }
0x19d6   :  { %v7344_v54 = vpop.eup %7343  ;;  %3868 = vadd.xlane.f32.xlu0 %v3867_v63  ;;  %v3864_v50 = vsel %vm585_vm6, %v7342_v57, 0.0 }
0x19d7   :  { %3865 = vadd.xlane.f32.xlu1 %v3864_v50  ;;  %v3861_v40 = vsel %vm585_vm6, %v7344_v54, 0.0 }
0x19da   :  { %3862 = vadd.xlane.f32.xlu0 %v3861_v40 }
0x19e8   :  { %3880 = vrot.lane.b32.xlu1 %v8567_v23, %s7456_s22 }
0x19f0   :  { %3878 = vrot.lane.b32.xlu0 %v8547_v29, %s7456_s22 }
0x1a0c   :  { %4086 = vmax.xlane.f32.xlu1 %v4085_v0 }
0x1a0f   :  { %4089 = vmax.xlane.f32.xlu0 %v4088_v8 }
0x1a10   :  { %4092 = vmax.xlane.f32.xlu1 %v4091_v61  ;;  %v4306_v61 = vpop.f32.mrf.mxu1 }
0x1a5f   :  { %v3869_v28 = vpop.xlane.xlu0 %3868 }
0x1a60   :  { %v3866_v22 = vpop.xlane.xlu1 %3865  ;;  %7345 = vrcp.f32 %v3869_v28  ;;  %v4319_v28 = vmul.f32 0.17677669, %v8751_v47 }
0x1a61   :  { %7347 = vrcp.f32 %v3866_v22 }
0x1a63   :  { %v3863_v10 = vpop.xlane.xlu0 %3862 }
0x1a64   :  { %7349 = vrcp.f32 %v3863_v10  ;;  %v3881_v35 = vpop.permute.xlu1 %3880  ;;  %v4318_v10 = vmul.f32 0.17677669, %v4306_v61  ;;  %v3289_v61 = vadd.f32 %v8613_v4, %v8535_v7 }
0x1a65   :  { %v3890_v9 = vsel %vm629_vm4, %v3881_v35, 0  ;;  %7000 = vmatprep.subr.msk.bf16.mxu0 %vm629_vm4, %v3881_v35  ;;  %v4322_v35 = vadd.f32 %v4319_v28, %v7804_v33 }
0x1a66   :  { %6813 = vmatpush3.bf16.msra.mxu0 %v3890_v9 }
0x1a67   :  { %v3879_v21 = vpop.permute.xlu0 %3878 }
0x1a68   :  { %6814 = vmatprep.subr.bf16.mxu0 %v3879_v21 }
0x1a6a   :  { %6815 = vmatpush3.bf16.msra.mxu0 %v3879_v21  ;;  %v4321_v21 = vadd.f32 %v4318_v10, %v7804_v33 }
0x1a6b   :  { %6820 = vmatprep.subr.bf16.mxu0 %v8773_v41 }
0x1a6d   :  { %v7346_v38 = vpop.eup %7345 }
0x1a6e   :  { %v7348_v3 = vpop.eup %7347  ;;  %v3875_v49 = vmul.f32 %v7346_v38, %v7340_v37 }
0x1a6f   :  { %v3874_v27 = vmul.f32 %v7348_v3, %v7342_v57 }
0x1a70   :  { %v3877_v25 = vpack.c.bf16 %v3875_v49, %v3875_v49 }
0x1a71   :  { %v7350_v62 = vpop.eup %7349 }
0x1a72   :  { %v3873_v45 = vmul.f32 %v7350_v62, %v7344_v54 }
0x1a74   :  { %v3876_v31 = vpack.c.bf16 %v3874_v27, %v3873_v45 }
0x1a76   :  { %6816 = vmatprep.mubr.msk.bf16.mxu0 %vm585_vm6, %v3876_v31 }
0x1a77   :  { %6817 = vmatmul.mubr.msk.bf16.vlgmr.msra.gmra.mxu0 %vm585_vm6, %v3877_v25 }
0x1a78   :  { %6821 = vmatpush3.bf16.msra.mxu0 %v8773_v41 }
0x1a95   :  { %v4087_v46 = vpop.xlane.xlu1 %4086 }
0x1a96   :  { %v4094_v18 = vsub.f32 %v4082_v56, %v4087_v46 }
0x1a98   :  { %v4090_v52 = vpop.xlane.xlu0 %4089  ;;  %v4097_v1 = vmul.f32 1.442695, %v4094_v18 }
0x1a99   :  { %v4095_v63 = vsub.f32 %v4083_v13, %v4090_v52  ;;  %v4093_v50 = vpop.xlane.xlu1 %4092  ;;  %v8785_v13 = vld [vmem:[%s9246_s7 + $0x60] sm:$0xff]  }
0x1a9a   :  { %v4096_v40 = vsub.f32 %v4084_v36, %v4093_v50  ;;  %6822 = vmatprep.subr.bf16.mxu0 %v8785_v13  ;;  %v4317_v36 = vmul.f32 0.17677669, %v8753_v26  ;;  %v8801_v26 = vpop.f32.mrf.mxu0 }
0x1a9b   :  { %v4099_v60 = vmul.f32 1.442695, %v4095_v63  ;;  %6823 = vmatpush3.bf16.msra.mxu0 %v8785_v13  ;;  %v8810_v63 = vld [vmem:[%s9246_s7 + $0x78] sm:$0xff]  }
0x1a9c   :  { %v4101_v32 = vmul.f32 1.442695, %v4096_v40  ;;  %v4320_v22 = vadd.f32 %v4317_v36, %v7804_v33  ;;  %v8816_v36 = vld [vmem:[%s9246_s7 + $0x70] sm:$0xff]  }
0x1a9d   :  { %7351 = vpow2.f32 %v4099_v60 }
0x1a9e   :  { %7353 = vpow2.f32 %v4101_v32  ;;  %v4323_v9 = vsel %vm585_vm6, %v4320_v22, -inf }
0x1a9f   :  { %7355 = vpow2.f32 %v4097_v1 }
0x1aaa   :  { %v7352_v37 = vpop.eup %7351 }
0x1aab   :  { %v7354_v57 = vpop.eup %7353  ;;  %v4106_v54 = vsel %vm585_vm6, %v7352_v37, 0.0 }
0x1aac   :  { %4107 = vadd.xlane.f32.xlu1 %v4106_v54  ;;  %v4109_v0 = vsel %vm585_vm6, %v7354_v57, 0.0  ;;  %v7356_v8 = vpop.eup %7355 }
0x1aad   :  { %4110 = vadd.xlane.f32.xlu0 %v4109_v0  ;;  %v4103_v56 = vsel %vm585_vm6, %v7356_v8, 0.0 }
0x1ab1   :  { %4104 = vadd.xlane.f32.xlu0 %v4103_v56 }
0x1abd   :  { %4122 = vrot.lane.b32.xlu1 %v8567_v23, %s7457_s25  ;;  %v4329_v23 = vsel %vm585_vm6, %v4322_v35, -inf }
0x1ac7   :  { %4120 = vrot.lane.b32.xlu0 %v8547_v29, %s7457_s25  ;;  %v4326_v29 = vsel %vm585_vm6, %v4321_v21, -inf }
0x1ae1   :  { %4324 = vmax.xlane.f32.xlu1 %v4323_v9 }
0x1ae5   :  { %4330 = vmax.xlane.f32.xlu1 %v4329_v23 }
0x1ae6   :  { %4327 = vmax.xlane.f32.xlu0 %v4326_v29 }
0x1b35   :  { %v4108_v38 = vpop.xlane.xlu1 %4107 }
0x1b36   :  { %v4111_v47 = vpop.xlane.xlu0 %4110 }
0x1b37   :  { %v6818_v3 = vpop.f32.mrf.mxu0  ;;  %7357 = vrcp.f32 %v4111_v47 }
0x1b38   :  { %7359 = vrcp.f32 %v4108_v38  ;;  %v3941_v46 = vpack.c.bf16 %v6818_v3, %v6818_v3 }
0x1b39   :  { %v3926_v62 = vpop.f32.mrf.mxu0  ;;  %v4123_v49 = vpop.permute.xlu1 %4122 }
0x1b3a   :  { %v4105_v45 = vpop.xlane.xlu0 %4104  ;;  %7003 = vmatprep.subr.msk.bf16.mxu0 %vm629_vm4, %v4123_v49  ;;  %v4132_v18 = vsel %vm629_vm4, %v4123_v49, 0 }
0x1b3b   :  { %7361 = vrcp.f32 %v4105_v45  ;;  %v6819_v27 = vpop.f32.mrf.mxu0  ;;  %v3756_v45 = vadd.f32 %v8737_v42, %v8741_v51 }
0x1b3d   :  { %v3929_v31 = vpop.f32.mrf.mxu0 }
0x1b3e   :  { %v3940_v25 = vpack.c.bf16 %v3929_v31, %v3926_v62  ;;  %v4121_v52 = vpop.permute.xlu0 %4120 }
0x1b40   :  { %6824 = vmatprep.mubr.msk.bf16.mxu0 %vm518_vm3, %v3940_v25 }
0x1b41   :  { %6825 = vmatmul.mubr.msk.bf16.vlgmr.msra.gmra.mxu0 %vm518_vm3, %v3941_v46 }
0x1b42   :  { %6837 = vmatpush3.bf16.msra.mxu0 %v4132_v18  ;;  %v3759_v18 = vadd.f32 %v8801_v26, %v8743_v19 }
0x1b43   :  { %6838 = vmatprep.subr.bf16.mxu0 %v4121_v52 }
0x1b44   :  { %v7358_v50 = vpop.eup %7357 }
0x1b45   :  { %v7360_v40 = vpop.eup %7359  ;;  %v4117_v1 = vmul.f32 %v7358_v50, %v7354_v57  ;;  %v8824_v57 = vpack.c.bf16 %v3289_v61, %v3289_v61 }
0x1b46   :  { %6839 = vmatpush3.bf16.msra.mxu0 %v4121_v52  ;;  %v4116_v54 = vmul.f32 %v7360_v40, %v7352_v37 }
0x1b47   :  { %6844 = vmatprep.subr.bf16.mxu0 %v8810_v63  ;;  %v4119_v56 = vpack.c.bf16 %v4117_v1, %v4117_v1  ;;  %v4367_v19 = vsel %vm629_vm4, %v8824_v57, 0 }
0x1b48   :  { %v7362_v60 = vpop.eup %7361 }
0x1b49   :  { %v4115_v32 = vmul.f32 %v7362_v60, %v7356_v8 }
0x1b4b   :  { %v4118_v0 = vpack.c.bf16 %v4116_v54, %v4115_v32 }
0x1b4d   :  { %6840 = vmatprep.mubr.msk.bf16.mxu0 %vm585_vm6, %v4118_v0 }
0x1b4e   :  { %6841 = vmatmul.mubr.msk.bf16.vlgmr.msra.gmra.mxu0 %vm585_vm6, %v4119_v56 }
0x1b4f   :  { %6845 = vmatpush3.bf16.msra.mxu0 %v8810_v63 }
0x1b50   :  { %6846 = vmatprep.subr.bf16.mxu0 %v8816_v36 }
0x1b53   :  { %6847 = vmatpush3.bf16.msra.mxu0 %v8816_v36 }
0x1b54   :  { %7006 = vmatprep.subr.msk.bf16.mxu0 %vm629_vm4, %v8824_v57 }
0x1b6a   :  { %v4325_v37 = vpop.xlane.xlu1 %4324 }
0x1b6b   :  { %v4332_v8 = vsub.f32 %v4320_v22, %v4325_v37 }
0x1b6d   :  { %v4335_v28 = vmul.f32 1.442695, %v4332_v8 }
0x1b6e   :  { %v4331_v10 = vpop.xlane.xlu1 %4330 }
0x1b6f   :  { %7363 = vpow2.f32 %v4335_v28  ;;  %v4328_v9 = vpop.xlane.xlu0 %4327  ;;  %v4334_v7 = vsub.f32 %v4322_v35, %v4331_v10  ;;  %v3764_v35 = vadd.f32 %v8735_v59, %v8739_v53 }
0x1b70   :  { %v4333_v4 = vsub.f32 %v4321_v21, %v4328_v9 }
0x1b71   :  { %v4339_v23 = vmul.f32 1.442695, %v4334_v7 }
0x1b72   :  { %v4337_v29 = vmul.f32 1.442695, %v4333_v4 }
0x1b73   :  { %7365 = vpow2.f32 %v4339_v23 }
0x1b74   :  { %7367 = vpow2.f32 %v4337_v29 }
0x1b7c   :  { %v7364_v38 = vpop.eup %7363 }
0x1b7d   :  { %v4341_v47 = vsel %vm585_vm6, %v7364_v38, 0.0 }
0x1b7e   :  { %4342 = vadd.xlane.f32.xlu0 %v4341_v47 }
0x1b80   :  { %v7366_v3 = vpop.eup %7365 }
0x1b81   :  { %v7368_v62 = vpop.eup %7367  ;;  %v4347_v49 = vsel %vm585_vm6, %v7366_v3, 0.0 }
0x1b82   :  { %v4344_v22 = vsel %vm585_vm6, %v7368_v62, 0.0  ;;  %4348 = vadd.xlane.f32.xlu0 %v4347_v49 }
0x1b83   :  { %4345 = vadd.xlane.f32.xlu1 %v4344_v22 }
0x1b94   :  { %4429 = vrot.lane.b32.xlu1 %v8709_v17, %s7454_s5 }
0x1b98   :  { %4421 = vrot.lane.b32.xlu1 %v8609_v12, %s7454_s5  ;;  %4427 = vrot.lane.b32.xlu0 %v8718_v39, %s7454_s5 }
0x1b9c   :  { %4423 = vrot.lane.b32.xlu1 %v8731_v14, %s7454_s5 }
0x1c01   :  { %v6826_v21 = vpop.f32.mrf.mxu0 }
0x1c02   :  { %v4010_v27 = vadd.f32 %v6826_v21, %v3764_v35 }
0x1c03   :  { %v3994_v31 = vpop.f32.mrf.mxu0 }
0x1c04   :  { %v4008_v25 = vadd.f32 %v3994_v31, %v3756_v45 }
0x1c05   :  { %v6827_v46 = vpop.f32.mrf.mxu0 }
0x1c07   :  { %v3997_v52 = vpop.f32.mrf.mxu0  ;;  %v4343_v50 = vpop.xlane.xlu0 %4342 }
0x1c08   :  { %v4009_v40 = vadd.f32 %v3997_v52, %v3759_v18  ;;  %7369 = vrcp.f32 %v4343_v50 }
0x1c0b   :  { %v4349_v60 = vpop.xlane.xlu0 %4348 }
0x1c0c   :  { %7371 = vrcp.f32 %v4349_v60  ;;  %v4346_v1 = vpop.xlane.xlu1 %4345 }
0x1c0d   :  { %7373 = vrcp.f32 %v4346_v1 }
0x1c0e   :  { %v6842_v59 = vpop.f32.mrf.mxu0 }
0x1c0f   :  { %v4183_v51 = vpack.c.bf16 %v6842_v59, %v6842_v59  ;;  %v4428_v23 = vpop.permute.xlu0 %4427 }
0x1c10   :  { %v4168_v53 = vpop.f32.mrf.mxu0  ;;  %v4430_v61 = vpop.permute.xlu1 %4429  ;;  %v4438_v29 = vsel %vm518_vm3, %v4428_v23, 0 }
0x1c11   :  { %v4441_v7 = vsel %vm518_vm3, %v4430_v61, 0 }
0x1c12   :  { %v6843_v32 = vpop.f32.mrf.mxu0 }
0x1c14   :  { %v4171_v54 = vpop.f32.mrf.mxu0  ;;  %v4422_v4 = vpop.permute.xlu1 %4421 }
0x1c15   :  { %v4182_v42 = vpack.c.bf16 %v4171_v54, %v4168_v53  ;;  %v7370_v0 = vpop.eup %7369 }
0x1c16   :  { %v4353_v8 = vmul.f32 %v7370_v0, %v7364_v38 }
0x1c17   :  { %6848 = vmatprep.mubr.msk.bf16.mxu0 %vm518_vm3, %v4182_v42 }
0x1c18   :  { %6849 = vmatmul.mubr.msk.bf16.vlgmr.msra.gmra.mxu0 %vm518_vm3, %v4183_v51  ;;  %v4424_v38 = vpop.permute.xlu1 %4423 }
0x1c19   :  { %v7372_v26 = vpop.eup %7371  ;;  %6861 = vmatpush3.bf16.msra.mxu0 %v4367_v19 }
0x1c1a   :  { %v7374_v56 = vpop.eup %7373  ;;  %6862 = vmatprep.subr.bf16.mxu0 %v8611_v2  ;;  %v4355_v37 = vmul.f32 %v7372_v26, %v7366_v3 }
0x1c1b   :  { %v4354_v28 = vmul.f32 %v7374_v56, %v7368_v62 }
0x1c1c   :  { %v4357_v10 = vpack.c.bf16 %v4355_v37, %v4355_v37 }
0x1c1d   :  { %6863 = vmatpush3.bf16.msra.mxu0 %v8611_v2  ;;  %v4356_v9 = vpack.c.bf16 %v4354_v28, %v4353_v8 }
0x1c1e   :  { %7007 = vmatprep.subr.msk.bf16.mxu0 %vm518_vm3, %v4430_v61 }
0x1c1f   :  { %6864 = vmatprep.mubr.msk.bf16.mxu0 %vm585_vm6, %v4356_v9 }
0x1c20   :  { %6865 = vmatmul.mubr.msk.bf16.vlgmr.msra.gmra.mxu0 %vm585_vm6, %v4357_v10 }
0x1c21   :  { %6869 = vmatpush3.bf16.xpose.msra.mxu0 %v4441_v7  ;;  %6872 = vmatprep.mubr.msk.bf16.mxu0 %vm518_vm3, %v4422_v4 }
0x1c22   :  { %7008 = vmatprep.subr.msk.bf16.mxu0 %vm518_vm3, %v4428_v23 }
0x1c29   :  { %6871 = vmatpush3.bf16.xpose.msra.mxu0 %v4438_v29 }
0x1c2a   :  { %6892 = vmatprep.subr.bf16.mxu0 %v8664_v30 }
0x1c30   :  { %6873 = vmatmul.mubr.msk.bf16.vlgmr.msra.gmra.mxu0 %vm518_vm3, %v4424_v38 }
0x1c31   :  { %6893 = vmatpush3.bf16.msra.mxu0 %v8664_v30 }
0x1c32   :  { %6894 = vmatprep.subr.bf16.mxu0 %v8671_v20 }
0x1c35   :  { %6895 = vmatpush3.bf16.msra.mxu0 %v8671_v20 }
0x1cd8   :  { %v6850_v47 = vpop.f32.mrf.mxu0 }
0x1cd9   :  { %v8864_v3 = vadd.f32 %v6850_v47, %v4010_v27 }
0x1cda   :  { %v4236_v62 = vpop.f32.mrf.mxu0 }
0x1cdb   :  { %v8866_v49 = vadd.f32 %v4236_v62, %v4008_v25 }
0x1cdc   :  { %v6851_v22 = vpop.f32.mrf.mxu0 }
0x1cde   :  { %v4239_v35 = vpop.f32.mrf.mxu0 }
0x1cdf   :  { %v8868_v21 = vadd.f32 %v4239_v35, %v4009_v40 }
0x1ce0   :  { %v6866_v45 = vpop.f32.mrf.mxu0 }
0x1ce1   :  { %v4418_v30 = vpack.c.bf16 %v6866_v45, %v6866_v45 }
0x1ce2   :  { %v4403_v31 = vpop.f32.mrf.mxu0 }
0x1ce4   :  { %v6867_v46 = vpop.f32.mrf.mxu0 }
0x1ce6   :  { %v4406_v18 = vpop.f32.mrf.mxu0 }
0x1ce7   :  { %v4417_v52 = vpack.c.bf16 %v4406_v18, %v4403_v31 }
0x1ce9   :  { %6896 = vmatprep.mubr.msk.bf16.mxu0 %vm518_vm3, %v4417_v52 }
0x1cea   :  { %6897 = vmatmul.mubr.msk.bf16.vlgmr.msra.gmra.mxu0 %vm518_vm3, %v4418_v30 }
0x1cf0   :  { %v6874_v20 = vpop.f32.mrf.mxu0 }
0x1cf1   :  { %v4493_v50 = vmul.f32 0.17677669, %v6874_v20 }
0x1cf2   :  { %v4477_v27 = vpop.f32.mrf.mxu0 }
0x1cf3   :  { %v4491_v60 = vmul.f32 0.17677669, %v4477_v27  ;;  %v4496_v40 = vadd.f32 %v4493_v50, %v7804_v33 }
0x1cf4   :  { %v6875_v25 = vpop.f32.mrf.mxu0 }
0x1cf5   :  { %v4494_v1 = vadd.f32 %v4491_v60, %v7804_v33  ;;  %v4503_v42 = vsel %vm585_vm6, %v4496_v40, -inf }
0x1cf6   :  { %v4480_v59 = vpop.f32.mrf.mxu0 }
0x1cf7   :  { %v4492_v53 = vmul.f32 0.17677669, %v4480_v59  ;;  %v4497_v32 = vsel %vm585_vm6, %v4494_v1, -inf }
0x1cf8   :  { %4498 = vmax.xlane.f32.xlu0 %v4497_v32 }
0x1cf9   :  { %v4495_v54 = vadd.f32 %v4492_v53, %v7804_v33 }
0x1cfb   :  { %v4500_v51 = vsel %vm585_vm6, %v4495_v54, -inf }
0x1cfc   :  { %4504 = vmax.xlane.f32.xlu0 %v4503_v42  ;;  %4501 = vmax.xlane.f32.xlu1 %v4500_v51 }
0x1d81   :  { %v4499_v0 = vpop.xlane.xlu0 %4498 }
0x1d82   :  { %v4506_v19 = vsub.f32 %v4494_v1, %v4499_v0 }
0x1d84   :  { %v4509_v8 = vmul.f32 1.442695, %v4506_v19 }
0x1d85   :  { %v4505_v26 = vpop.xlane.xlu0 %4504  ;;  %v4502_v56 = vpop.xlane.xlu1 %4501 }
0x1d86   :  { %v4508_v61 = vsub.f32 %v4496_v40, %v4505_v26  ;;  %v4507_v37 = vsub.f32 %v4495_v54, %v4502_v56 }
0x1d88   :  { %v4513_v28 = vmul.f32 1.442695, %v4508_v61  ;;  %v4511_v10 = vmul.f32 1.442695, %v4507_v37 }
0x1d8a   :  { %7375 = vpow2.f32 %v4513_v28 }
0x1d8b   :  { %7377 = vpow2.f32 %v4511_v10 }
0x1d8c   :  { %7379 = vpow2.f32 %v4509_v8 }
0x1d97   :  { %v7376_v9 = vpop.eup %7375 }
0x1d98   :  { %v7378_v7 = vpop.eup %7377  ;;  %v4521_v4 = vsel %vm585_vm6, %v7376_v9, 0.0 }
0x1d99   :  { %v7380_v23 = vpop.eup %7379  ;;  %4522 = vadd.xlane.f32.xlu0 %v4521_v4  ;;  %v4518_v29 = vsel %vm585_vm6, %v7378_v7, 0.0 }
0x1d9a   :  { %4519 = vadd.xlane.f32.xlu1 %v4518_v29  ;;  %v4515_v38 = vsel %vm585_vm6, %v7380_v23, 0.0 }
0x1d9d   :  { %4516 = vadd.xlane.f32.xlu0 %v4515_v38 }
0x1daa   :  { %v8881_v47 = vpop.f32.mrf.mxu0 }
0x1dab   :  { %4536 = vrot.lane.b32.xlu1 %v8824_v57, %s7454_s5 }
0x1dac   :  { %v8885_v62 = vpop.f32.mrf.mxu0 }
0x1dae   :  { %v6899_v22 = vpop.f32.mrf.mxu0 }
0x1daf   :  { %4712 = vrot.lane.b32.xlu1 %v8709_v17, %s7456_s22 }
0x1db3   :  { %4710 = vrot.lane.b32.xlu1 %v8718_v39, %s7456_s22  ;;  %4534 = vrot.lane.b32.xlu0 %v8611_v2, %s7454_s5 }
0x1db7   :  { %4708 = vrot.lane.b32.xlu1 %v8731_v14, %s7456_s22  ;;  %4706 = vrot.lane.b32.xlu0 %v8609_v12, %s7456_s22 }
0x1dbb   :  { %4940 = vrot.lane.b32.xlu1 %v8718_v39, %s7457_s25  ;;  %4942 = vrot.lane.b32.xlu0 %v8709_v17, %s7457_s25 }
0x1dbf   :  { %4938 = vrot.lane.b32.xlu1 %v8731_v14, %s7457_s25  ;;  %4936 = vrot.lane.b32.xlu0 %v8609_v12, %s7457_s25 }
0x1e22   :  { %v4523_v35 = vpop.xlane.xlu0 %4522 }
0x1e23   :  { %v4520_v45 = vpop.xlane.xlu1 %4519  ;;  %7381 = vrcp.f32 %v4523_v35 }
0x1e24   :  { %7383 = vrcp.f32 %v4520_v45 }
0x1e26   :  { %v4517_v31 = vpop.xlane.xlu0 %4516 }
0x1e27   :  { %7385 = vrcp.f32 %v4517_v31  ;;  %v4537_v46 = vpop.permute.xlu1 %4536 }
0x1e28   :  { %v4546_v18 = vsel %vm629_vm4, %v4537_v46, 0  ;;  %7009 = vmatprep.subr.msk.bf16.mxu1 %vm629_vm4, %v4537_v46 }
0x1e29   :  { %6877 = vmatpush3.bf16.msra.mxu1 %v4546_v18 }
0x1e2a   :  { %v4535_v39 = vpop.permute.xlu0 %4534 }
0x1e2b   :  { %6878 = vmatprep.subr.bf16.mxu1 %v4535_v39  ;;  %v4713_v60 = vpop.permute.xlu1 %4712 }
0x1e2c   :  { %v4724_v54 = vsel %vm518_vm3, %v4713_v60, 0 }
0x1e2d   :  { %6879 = vmatpush3.bf16.msra.mxu1 %v4535_v39 }
0x1e2e   :  { %6884 = vmatprep.subr.bf16.mxu1 %v8680_v24  ;;  %v4707_v42 = vpop.permute.xlu0 %4706 }
0x1e30   :  { %v7382_v17 = vpop.eup %7381 }
0x1e31   :  { %v7384_v14 = vpop.eup %7383  ;;  %v4529_v52 = vmul.f32 %v7382_v17, %v7376_v9 }
0x1e32   :  { %v4528_v20 = vmul.f32 %v7384_v14, %v7378_v7  ;;  %v4943_v51 = vpop.permute.xlu0 %4942 }
0x1e33   :  { %v4531_v50 = vpack.c.bf16 %v4529_v52, %v4529_v52  ;;  %v4954_v19 = vsel %vm518_vm3, %v4943_v51, 0 }
0x1e34   :  { %v7386_v12 = vpop.eup %7385 }
0x1e35   :  { %v4527_v30 = vmul.f32 %v7386_v12, %v7380_v23 }
0x1e36   :  { %v4937_v26 = vpop.permute.xlu0 %4936 }
0x1e37   :  { %v4530_v27 = vpack.c.bf16 %v4528_v20, %v4527_v30 }
0x1e39   :  { %6880 = vmatprep.mubr.msk.bf16.mxu1 %vm585_vm6, %v4530_v27 }
0x1e3a   :  { %6881 = vmatmul.mubr.msk.bf16.vlgmr.msra.gmra.mxu1 %vm585_vm6, %v4531_v50 }
0x1e3b   :  { %6885 = vmatpush3.bf16.msra.mxu1 %v8680_v24  ;;  %v4711_v24 = vpop.permute.xlu1 %4710 }
0x1e3c   :  { %6886 = vmatprep.subr.bf16.mxu1 %v8686_v58 }
0x1e3f   :  { %6887 = vmatpush3.bf16.msra.mxu1 %v8686_v58  ;;  %v4721_v58 = vsel %vm518_vm3, %v4711_v24, 0  ;;  %v4709_v0 = vpop.permute.xlu1 %4708 }
0x1e40   :  { %7010 = vmatprep.subr.msk.bf16.mxu1 %vm518_vm3, %v4713_v60 }
0x1e43   :  { %v4941_v56 = vpop.permute.xlu1 %4940 }
0x1e44   :  { %v4951_v61 = vsel %vm518_vm3, %v4941_v56, 0 }
0x1e47   :  { %v4939_v37 = vpop.permute.xlu1 %4938 }
0x1efa   :  { %v6882_v25 = vpop.f32.mrf.mxu1 }
0x1efb   :  { %v4597_v32 = vpack.c.bf16 %v6882_v25, %v6882_v25 }
0x1efc   :  { %v4582_v1 = vpop.f32.mrf.mxu1 }
0x1efe   :  { %v6883_v59 = vpop.f32.mrf.mxu1 }
0x1f00   :  { %v4585_v40 = vpop.f32.mrf.mxu1 }
0x1f01   :  { %v4596_v53 = vpack.c.bf16 %v4585_v40, %v4582_v1 }
0x1f03   :  { %6888 = vmatprep.mubr.msk.bf16.mxu1 %vm518_vm3, %v4596_v53 }
0x1f04   :  { %6889 = vmatmul.mubr.msk.bf16.vlgmr.msra.gmra.mxu1 %vm518_vm3, %v4597_v32 }
0x1f05   :  { %6901 = vmatpush3.bf16.xpose.msra.mxu1 %v4724_v54  ;;  %6904 = vmatprep.mubr.msk.bf16.mxu1 %vm518_vm3, %v4707_v42 }
0x1f06   :  { %7011 = vmatprep.subr.msk.bf16.mxu1 %vm518_vm3, %v4711_v24 }
0x1f0d   :  { %6903 = vmatpush3.bf16.xpose.msra.mxu1 %v4721_v58 }
0x1f0e   :  { %7013 = vmatprep.subr.msk.bf16.mxu1 %vm518_vm3, %v4943_v51 }
0x1f14   :  { %6905 = vmatmul.mubr.msk.bf16.vlgmr.msra.gmra.mxu1 %vm518_vm3, %v4709_v0 }
0x1f15   :  { %6925 = vmatpush3.bf16.xpose.msra.mxu1 %v4954_v19  ;;  %6928 = vmatprep.mubr.msk.bf16.mxu1 %vm518_vm3, %v4937_v26 }
0x1f16   :  { %7014 = vmatprep.subr.msk.bf16.mxu1 %vm518_vm3, %v4941_v56 }
0x1f1d   :  { %6927 = vmatpush3.bf16.xpose.msra.mxu1 %v4951_v61 }
0x1f24   :  { %6929 = vmatmul.mubr.msk.bf16.vlgmr.msra.gmra.mxu1 %vm518_vm3, %v4939_v37 }
0x1f25   :  { %5416 = vmatprep.mubr.bf16.mxu1 %v7452_v34 }
0x1fc4   :  { %v8928_v8 = vpop.f32.mrf.mxu1 }
0x1fc6   :  { %v8930_v28 = vpop.f32.mrf.mxu1 }
0x1fc8   :  { %v6891_v10 = vpop.f32.mrf.mxu1 }
0x1fca   :  { %v8932_v9 = vpop.f32.mrf.mxu1 }
0x1fd4   :  { %v6906_v7 = vpop.f32.mrf.mxu1 }
0x1fd5   :  { %v4776_v23 = vmul.f32 0.17677669, %v6906_v7 }
0x1fd6   :  { %v4760_v4 = vpop.f32.mrf.mxu1 }
0x1fd7   :  { %v4774_v29 = vmul.f32 0.17677669, %v4760_v4  ;;  %v4779_v45 = vadd.f32 %v4776_v23, %v7804_v33 }
0x1fd8   :  { %v6907_v38 = vpop.f32.mrf.mxu1 }
0x1fd9   :  { %v4777_v22 = vadd.f32 %v4774_v29, %v7804_v33  ;;  %v4786_v39 = vsel %vm585_vm6, %v4779_v45, -inf }
0x1fda   :  { %v4763_v35 = vpop.f32.mrf.mxu1 }
0x1fdb   :  { %v4775_v31 = vmul.f32 0.17677669, %v4763_v35  ;;  %v4780_v46 = vsel %vm585_vm6, %v4777_v22, -inf }
0x1fdc   :  { %4781 = vmax.xlane.f32.xlu0 %v4780_v46 }
0x1fdd   :  { %v4778_v18 = vadd.f32 %v4775_v31, %v7804_v33 }
0x1fdf   :  { %v4783_v17 = vsel %vm585_vm6, %v4778_v18, -inf }
0x1fe0   :  { %4787 = vmax.xlane.f32.xlu0 %v4786_v39  ;;  %4784 = vmax.xlane.f32.xlu1 %v4783_v17 }
0x1fe4   :  { %v6930_v14 = vpop.f32.mrf.mxu1 }
0x1fe5   :  { %v5006_v26 = vmul.f32 0.17677669, %v6930_v14 }
0x1fe6   :  { %v4990_v12 = vpop.f32.mrf.mxu1 }
0x1fe7   :  { %v5004_v51 = vmul.f32 0.17677669, %v4990_v12  ;;  %v5009_v37 = vadd.f32 %v5006_v26, %v7804_v33 }
0x1fe8   :  { %v6931_v52 = vpop.f32.mrf.mxu1 }
0x1fe9   :  { %v5007_v56 = vadd.f32 %v5004_v51, %v7804_v33  ;;  %v5016_v4 = vsel %vm585_vm6, %v5009_v37, -inf }
0x1fea   :  { %v4993_v0 = vpop.f32.mrf.mxu1 }
0x1feb   :  { %v5005_v19 = vmul.f32 0.17677669, %v4993_v0  ;;  %v5010_v10 = vsel %vm585_vm6, %v5007_v56, -inf }
0x1fed   :  { %v5008_v61 = vadd.f32 %v5005_v19, %v7804_v33  ;;  %v4695_v19 = vpop.f32.mrf.mxu0 }
0x1fef   :  { %v5013_v7 = vsel %vm585_vm6, %v5008_v61, -inf }
0x2065   :  { %v4782_v30 = vpop.xlane.xlu0 %4781 }
0x2066   :  { %v4789_v20 = vsub.f32 %v4777_v22, %v4782_v30 }
0x2068   :  { %v4792_v1 = vmul.f32 1.442695, %v4789_v20 }
0x2069   :  { %v4788_v27 = vpop.xlane.xlu0 %4787  ;;  %v4785_v50 = vpop.xlane.xlu1 %4784 }
0x206a   :  { %v4791_v60 = vsub.f32 %v4779_v45, %v4788_v27  ;;  %v4790_v25 = vsub.f32 %v4778_v18, %v4785_v50 }
0x206c   :  { %v4796_v59 = vmul.f32 1.442695, %v4791_v60  ;;  %v4794_v40 = vmul.f32 1.442695, %v4790_v25 }
0x206e   :  { %7387 = vpow2.f32 %v4796_v59 }
0x206f   :  { %7389 = vpow2.f32 %v4794_v40 }
0x2070   :  { %7391 = vpow2.f32 %v4792_v1 }
0x207b   :  { %v7388_v53 = vpop.eup %7387 }
0x207c   :  { %v7390_v32 = vpop.eup %7389  ;;  %v4804_v54 = vsel %vm585_vm6, %v7388_v53, 0.0 }
0x207d   :  { %v7392_v42 = vpop.eup %7391  ;;  %4805 = vadd.xlane.f32.xlu0 %v4804_v54  ;;  %v4801_v24 = vsel %vm585_vm6, %v7390_v32, 0.0 }
0x207e   :  { %4802 = vadd.xlane.f32.xlu1 %v4801_v24  ;;  %v4798_v58 = vsel %vm585_vm6, %v7392_v42, 0.0 }
0x2081   :  { %4799 = vadd.xlane.f32.xlu0 %v4798_v58 }
0x208f   :  { %4817 = vrot.lane.b32.xlu1 %v8824_v57, %s7456_s22 }
0x2097   :  { %4815 = vrot.lane.b32.xlu0 %v8611_v2, %s7456_s22 }
0x20b3   :  { %5011 = vmax.xlane.f32.xlu1 %v5010_v10 }
0x20b6   :  { %5014 = vmax.xlane.f32.xlu0 %v5013_v7 }
0x20b7   :  { %5017 = vmax.xlane.f32.xlu1 %v5016_v4 }
0x2106   :  { %v4806_v23 = vpop.xlane.xlu0 %4805 }
0x2107   :  { %v4803_v29 = vpop.xlane.xlu1 %4802  ;;  %7393 = vrcp.f32 %v4806_v23 }
0x2108   :  { %7395 = vrcp.f32 %v4803_v29 }
0x210a   :  { %v4800_v38 = vpop.xlane.xlu0 %4799 }
0x210b   :  { %7397 = vrcp.f32 %v4800_v38  ;;  %v4818_v22 = vpop.permute.xlu1 %4817 }
0x210c   :  { %v4827_v35 = vsel %vm629_vm4, %v4818_v22, 0  ;;  %7012 = vmatprep.subr.msk.bf16.mxu0 %vm629_vm4, %v4818_v22 }
0x210d   :  { %6909 = vmatpush3.bf16.msra.mxu0 %v4827_v35 }
0x210e   :  { %v4816_v33 = vpop.permute.xlu0 %4815 }
0x210f   :  { %6910 = vmatprep.subr.bf16.mxu0 %v4816_v33 }
0x2111   :  { %6911 = vmatpush3.bf16.msra.mxu0 %v4816_v33 }
0x2112   :  { %6916 = vmatprep.subr.bf16.mxu0 %v8773_v41 }
0x2114   :  { %v7394_v45 = vpop.eup %7393 }
0x2115   :  { %v7396_v31 = vpop.eup %7395  ;;  %v4812_v18 = vmul.f32 %v7394_v45, %v7388_v53 }
0x2116   :  { %v4811_v17 = vmul.f32 %v7396_v31, %v7390_v32 }
0x2117   :  { %v4814_v12 = vpack.c.bf16 %v4812_v18, %v4812_v18 }
0x2118   :  { %v7398_v46 = vpop.eup %7397 }
0x2119   :  { %v4810_v39 = vmul.f32 %v7398_v46, %v7392_v42  ;;  %v8971_v42 = vld [vmem:[%s9247_s8 + $0x1] ss:$0 sm:$0xff] }
0x211a   :  { %v5171_v24 = vadd.f32 %v8971_v42, %v8866_v49  ;;  %v5173_v58 = vadd.f32 %v8971_v42, %v8864_v3  ;;  %v5172_v0 = vadd.f32 %v8971_v42, %v8868_v21 }
0x211b   :  { %v4813_v14 = vpack.c.bf16 %v4811_v17, %v4810_v39 }
0x211c   :  { %v5177_v51 = vadd.f32 %v5171_v24, %v8504_v11 }
0x211d   :  { %6912 = vmatprep.mubr.msk.bf16.mxu0 %vm585_vm6, %v4813_v14 }
0x211e   :  { %6913 = vmatmul.mubr.msk.bf16.vlgmr.msra.gmra.mxu0 %vm585_vm6, %v4814_v12 }
0x211f   :  { %6917 = vmatpush3.bf16.msra.mxu0 %v8773_v41 }
0x2120   :  { %6918 = vmatprep.subr.bf16.mxu0 %v8785_v13 }
0x2123   :  { %6919 = vmatpush3.bf16.msra.mxu0 %v8785_v13 }
0x213c   :  { %v5012_v52 = vpop.xlane.xlu1 %5011 }
0x213d   :  { %v5019_v30 = vsub.f32 %v5007_v56, %v5012_v52 }
0x213f   :  { %v5015_v20 = vpop.xlane.xlu0 %5014  ;;  %v5022_v1 = vmul.f32 1.442695, %v5019_v30  ;;  %v4693_v30 = vadd.f32 %v8885_v62, %v8930_v28  ;;  %v7149_v62 = vld [vmem:[%s9250_s11 + $0xf4] ss:$8 sps:$4 sm:$0xff]  }
0x2140   :  { %v5020_v27 = vsub.f32 %v5008_v61, %v5015_v20  ;;  %v5018_v50 = vpop.xlane.xlu1 %5017  ;;  %5384 = vmatprep.subr.bf16.mxu1 %v7149_v62  ;;  %v7177_v62 = vld [vmem:[%s9252_s13 + $0xe0] sm:$0xff]  }
0x2141   :  { %v5021_v60 = vsub.f32 %v5009_v37, %v5018_v50 }
0x2142   :  { %v5024_v25 = vmul.f32 1.442695, %v5020_v27 }
0x2143   :  { %v5026_v59 = vmul.f32 1.442695, %v5021_v60 }
0x2144   :  { %7399 = vpow2.f32 %v5024_v25  ;;  %v4696_v25 = vadd.f32 %v4695_v19, %v8932_v9 }
0x2145   :  { %7401 = vpow2.f32 %v5026_v59 }
0x2146   :  { %7403 = vpow2.f32 %v5022_v1 }
0x2151   :  { %v7400_v40 = vpop.eup %7399 }
0x2152   :  { %v7402_v53 = vpop.eup %7401  ;;  %v5031_v41 = vsel %vm585_vm6, %v7400_v40, 0.0 }
0x2153   :  { %5032 = vadd.xlane.f32.xlu1 %v5031_v41  ;;  %v5034_v32 = vsel %vm585_vm6, %v7402_v53, 0.0  ;;  %v7404_v13 = vpop.eup %7403 }
0x2154   :  { %5035 = vadd.xlane.f32.xlu0 %v5034_v32  ;;  %v5028_v54 = vsel %vm585_vm6, %v7404_v13, 0.0 }
0x2158   :  { %5029 = vadd.xlane.f32.xlu0 %v5028_v54 }
0x2164   :  { %5047 = vrot.lane.b32.xlu1 %v8824_v57, %s7457_s25  ;;  %v5179_v57 = vadd.f32 %v5173_v58, %v8517_v48 }
0x216e   :  { %5045 = vrot.lane.b32.xlu0 %v8611_v2, %s7457_s25  ;;  %v8982_v2 = vadd.f32 %v5172_v0, %v8507_v55 }
0x2188   :  { %5185 = vadd.xlane.f32.xlu1 %v5177_v51 }
0x218c   :  { %5189 = vadd.xlane.f32.xlu1 %v5179_v57 }
0x218d   :  { %5187 = vadd.xlane.f32.xlu0 %v8982_v2 }
0x21dc   :  { %v5033_v26 = vpop.xlane.xlu1 %5032 }
0x21dd   :  { %v5036_v49 = vpop.xlane.xlu0 %5035 }
0x21de   :  { %v6914_v56 = vpop.f32.mrf.mxu0  ;;  %7405 = vrcp.f32 %v5036_v49 }
0x21df   :  { %7407 = vrcp.f32 %v5033_v26  ;;  %v4878_v55 = vpack.c.bf16 %v6914_v56, %v6914_v56 }
0x21e0   :  { %v4863_v3 = vpop.f32.mrf.mxu0  ;;  %v5048_v11 = vpop.permute.xlu1 %5047 }
0x21e1   :  { %v5030_v61 = vpop.xlane.xlu0 %5029  ;;  %7015 = vmatprep.subr.msk.bf16.mxu0 %vm629_vm4, %v5048_v11  ;;  %v5057_v10 = vsel %vm629_vm4, %v5048_v11, 0 }
0x21e2   :  { %7409 = vrcp.f32 %v5030_v61  ;;  %v6915_v21 = vpop.f32.mrf.mxu0 }
0x21e3   :  { %v7152_v21 = vld [vmem:[%s9250_s11 + $0xe4] ss:$8 sps:$4 sm:$0xff]  }
0x21e4   :  { %v4866_v48 = vpop.f32.mrf.mxu0 }
0x21e5   :  { %v4877_v37 = vpack.c.bf16 %v4866_v48, %v4863_v3  ;;  %v5046_v7 = vpop.permute.xlu0 %5045  ;;  %v7158_v48 = vld [vmem:[%s9250_s11 + $0xc4] ss:$8 sps:$4 sm:$0xff]  }
0x21e7   :  { %6920 = vmatprep.mubr.msk.bf16.mxu0 %vm518_vm3, %v4877_v37  ;;  %v7156_v37 = vld [vmem:[%s9250_s11 + $0xc0] ss:$8 sps:$4 sm:$0xff]  }
0x21e8   :  { %6921 = vmatmul.mubr.msk.bf16.vlgmr.msra.gmra.mxu0 %vm518_vm3, %v4878_v55  ;;  %v7161_v55 = vld [vmem:[%s9250_s11 + $0xb4] ss:$8 sps:$4 sm:$0xff]  }
0x21e9   :  { %6933 = vmatpush3.bf16.msra.mxu0 %v5057_v10  ;;  %v7159_v10 = vld [vmem:[%s9250_s11 + $0xb0] ss:$8 sps:$4 sm:$0xff]  }
0x21ea   :  { %6934 = vmatprep.subr.bf16.mxu0 %v5046_v7 }
0x21eb   :  { %v7406_v4 = vpop.eup %7405 }
0x21ec   :  { %v7408_v23 = vpop.eup %7407  ;;  %v5042_v38 = vmul.f32 %v7406_v4, %v7402_v53  ;;  %v7162_v4 = vld [vmem:[%s9250_s11 + $0xa0] ss:$8 sps:$4 sm:$0xff]  }
0x21ed   :  { %6935 = vmatpush3.bf16.msra.mxu0 %v5046_v7  ;;  %v5041_v35 = vmul.f32 %v7408_v23, %v7400_v40  ;;  %v7164_v7 = vld [vmem:[%s9250_s11 + $0xa4] ss:$8 sps:$4 sm:$0xff]   ;;  %v7167_v23 = vld [vmem:[%s9250_s11 + $0x94] ss:$8 sps:$4 sm:$0xff]  }
0x21ee   :  { %6940 = vmatprep.subr.bf16.mxu0 %v8810_v63  ;;  %v5044_v45 = vpack.c.bf16 %v5042_v38, %v5042_v38  ;;  %v7170_v38 = vld [vmem:[%s9250_s11 + $0x84] ss:$8 sps:$4 sm:$0xff]  }
0x21ef   :  { %v7410_v29 = vpop.eup %7409 }
0x21f0   :  { %v5040_v22 = vmul.f32 %v7410_v29, %v7404_v13  ;;  %v7165_v29 = vld [vmem:[%s9250_s11 + $0x90] ss:$8 sps:$4 sm:$0xff]  }
0x21f2   :  { %v5043_v33 = vpack.c.bf16 %v5041_v35, %v5040_v22  ;;  %v7168_v22 = vld [vmem:[%s9250_s11 + $0x80] ss:$8 sps:$4 sm:$0xff]  }
0x21f4   :  { %6936 = vmatprep.mubr.msk.bf16.mxu0 %vm585_vm6, %v5043_v33 }
0x21f5   :  { %6937 = vmatmul.mubr.msk.bf16.vlgmr.msra.gmra.mxu0 %vm585_vm6, %v5044_v45 }
0x21f6   :  { %6941 = vmatpush3.bf16.msra.mxu0 %v8810_v63  ;;  %v4701_v63 = vadd.f32 %v8881_v47, %v8928_v8  ;;  %v7147_v47 = vld [vmem:[%s9250_s11 + $0xf0] ss:$8 sps:$4 sm:$0xff]  }
0x21f7   :  { %6942 = vmatprep.subr.bf16.mxu0 %v8816_v36  ;;  %5385 = vmatpush1.bf16.msra.mxu1 %v7147_v47  ;;  %v7176_v47 = vld [vmem:[%s9252_s13 + $0xa8] sm:$0xff]  }
0x21f8   :  { %5386 = vmatprep.subr.bf16.mxu1 %v7152_v21 }
0x21fa   :  { %6943 = vmatpush3.bf16.msra.mxu0 %v8816_v36 }
0x2211   :  { %v5186_v31 = vpop.xlane.xlu1 %5185 }
0x2212   :  { %v5197_v46 = vmul.f32 0.0078125, %v5186_v31 }
0x2214   :  { %v8995_v18 = vsub.f32 %v5177_v51, %v5197_v46 }
0x2215   :  { %v5190_v39 = vpop.xlane.xlu1 %5189 }
0x2216   :  { %v5199_v17 = vmul.f32 0.0078125, %v5190_v39  ;;  %v5209_v14 = vmul.f32 %v8995_v18, %v8995_v18  ;;  %v5188_v8 = vpop.xlane.xlu0 %5187 }
0x2217   :  { %v5198_v58 = vmul.f32 0.0078125, %v5188_v8  ;;  %v7178_v8 = vld [vmem:[%s9252_s13 + $0xa0] sm:$0xff]  }
0x2218   :  { %v8999_v12 = vsub.f32 %v5179_v57, %v5199_v17  ;;  %5215 = vadd.xlane.f32.xlu1 %v5209_v14 }
0x2219   :  { %v5204_v26 = vsub.f32 %v8982_v2, %v5198_v58  ;;  %v7150_v2 = vld [vmem:[%s9250_s11 + $0xe0] ss:$8 sps:$4 sm:$0xff]   ;;  %v7182_v58 = vld [vmem:[%s9252_s13 + $0x90] sm:$0xff]  }
0x221a   :  { %v5211_v52 = vmul.f32 %v8999_v12, %v8999_v12  ;;  %5387 = vmatpush1.bf16.msra.mxu1 %v7150_v2 }
0x221b   :  { %v5210_v11 = vmul.f32 %v5204_v26, %v5204_v26 }
0x221c   :  { %5219 = vadd.xlane.f32.xlu1 %v5211_v52 }
0x22a1   :  { %v5216_v35 = vpop.xlane.xlu1 %5215 }
0x22a2   :  { %v5227_v33 = vmul.f32 0.0078125, %v5216_v35 }
0x22a4   :  { %v5233_v45 = vadd.f32 1e-05, %v5227_v33 }
0x22a6   :  { %7411 = vrsqrt.f32 %v5233_v45 }
0x22a8   :  { %v6922_v36 = vpop.f32.mrf.mxu0 }
0x22a9   :  { %v4935_v20 = vadd.f32 %v6922_v36, %v4701_v63 }
0x22aa   :  { %v4919_v27 = vpop.f32.mrf.mxu0 }
0x22ab   :  { %v4933_v50 = vadd.f32 %v4919_v27, %v4693_v30 }
0x22ac   :  { %v6923_v60 = vpop.f32.mrf.mxu0 }
0x22ae   :  { %v4922_v1 = vpop.f32.mrf.mxu0 }
0x22af   :  { %v4934_v59 = vadd.f32 %v4922_v1, %v4696_v25  ;;  %v9086_v1 = vld [vmem:[%s9249_s10 + $0x1] ss:$0 sm:$0xff] }
0x22b5   :  { %v6938_v40 = vpop.f32.mrf.mxu0 }
0x22b6   :  { %v5108_v54 = vpack.c.bf16 %v6938_v40, %v6938_v40 }
0x22b7   :  { %v5093_v53 = vpop.f32.mrf.mxu0 }
0x22b9   :  { %v6939_v41 = vpop.f32.mrf.mxu0 }
0x22ba   :  { %v7172_v41 = vld [vmem:[%s9252_s13 + $0xb8] sm:$0xff]  }
0x22bb   :  { %v5096_v32 = vpop.f32.mrf.mxu0 }
0x22bc   :  { %v5107_v13 = vpack.c.bf16 %v5096_v32, %v5093_v53  ;;  %v7171_v53 = vld [vmem:[%s9252_s13 + $0xf8] sm:$0xff]   ;;  %v7173_v32 = vld [vmem:[%s9252_s13 + $0xf0] sm:$0xff]  }
0x22bd   :  { %6455 = vmatprep.subr.bf16.mxu0 %v7171_v53 }
0x22be   :  { %6944 = vmatprep.mubr.msk.bf16.mxu0 %vm518_vm3, %v5107_v13  ;;  %v7174_v13 = vld [vmem:[%s9252_s13 + $0xb0] sm:$0xff]  }
0x22bf   :  { %6945 = vmatmul.mubr.msk.bf16.vlgmr.msra.gmra.mxu0 %vm518_vm3, %v5108_v54  ;;  %v7175_v54 = vld [vmem:[%s9252_s13 + $0xe8] sm:$0xff]  }
0x22c0   :  { %6456 = vmatpush3.bf16.msra.mxu0 %v7172_v41 }
0x22c1   :  { %6457 = vmatprep.subr.bf16.mxu0 %v7173_v32 }
0x22c4   :  { %6458 = vmatpush3.bf16.msra.mxu0 %v7174_v13 }
0x22c5   :  { %6459 = vmatprep.subr.bf16.mxu0 %v7175_v54 }
0x22c8   :  { %6460 = vmatpush3.bf16.msra.mxu0 %v7176_v47 }
0x22c9   :  { %6461 = vmatprep.subr.bf16.mxu0 %v7177_v62  ;;  %v6172_v62 = vld [vmem:[%s9253_s14 + $0x1] ss:$0 sm:$0xff]  ;;  %s5843_s14 = sshll.u32 %s7458_s29, 4  ;;  %s5844_s14 = int_to_ptr.vmem [resolvable:$true] %s5843_s14 }
0x22ca   :  { %p7434_p1 = scmp.lt.s32.totalorder %s5844_s14, %s5844_s14 }
0x22cc   :  { %6462 = vmatpush3.bf16.msra.mxu0 %v7178_v8 }
0x237f   :  { %v6946_v28 = vpop.f32.mrf.mxu0 }
0x2380   :  { %v5165_v9 = vadd.f32 %v6946_v28, %v4935_v20  ;;  %v7412_v20 = vpop.eup %7411  ;;  %v7179_v28 = vld [vmem:[%s9252_s13 + $0xd8] sm:$0xff]  }
0x2381   :  { %v5149_v24 = vpop.f32.mrf.mxu0  ;;  %v5245_v27 = vmul.f32 %v7412_v20, %v8995_v18  ;;  %6463 = vmatprep.subr.bf16.mxu0 %v7179_v28 }
0x2382   :  { %v5163_v51 = vadd.f32 %v5149_v24, %v4933_v50  ;;  %v5176_v14 = vadd.f32 %v8971_v42, %v5165_v9  ;;  %v9080_v50 = vld [vmem:[%s9248_s9 + $0x1] ss:$0 sm:$0xff]  ;;  %v7180_v9 = vld [vmem:[%s9252_s13 + $0x98] sm:$0xff]   ;;  %v7181_v24 = vld [vmem:[%s9252_s13 + $0xd0] sm:$0xff]  }
0x2383   :  { %v6947_v0 = vpop.f32.mrf.mxu0  ;;  %v5255_v25 = vmul.f32 %v9080_v50, %v5245_v27  ;;  %6464 = vmatpush3.bf16.msra.mxu0 %v7180_v9 }
0x2384   :  { %v5174_v57 = vadd.f32 %v8971_v42, %v5163_v51  ;;  %v9073_v30 = vadd.f32 %v5176_v14, %v8560_v43  ;;  %6465 = vmatprep.subr.bf16.mxu0 %v7181_v24  ;;  %v7183_v51 = vld [vmem:[%s9252_s13 + $0xc8] sm:$0xff]  }
0x2385   :  { %v5152_v19 = vpop.f32.mrf.mxu0  ;;  %v7184_v0 = vld [vmem:[%s9252_s13 + $0x88] sm:$0xff]  }
0x2386   :  { %v5164_v49 = vadd.f32 %v5152_v19, %v4934_v59  ;;  %v5180_v56 = vadd.f32 %v5174_v57, %v8520_v44  ;;  %v7155_v44 = vld [vmem:[%s9250_s11 + $0xd4] ss:$8 sps:$4 sm:$0xff]   ;;  %v9090_v59 = vadd.f32 %v9086_v1, %v5255_v25  ;;  %v7185_v57 = vld [vmem:[%s9252_s13 + $0xc0] sm:$0xff]  }
0x2387   :  { %5388 = vmatprep.subr.bf16.mxu1 %v7155_v44  ;;  %6466 = vmatpush3.bf16.msra.mxu0 %v7182_v58  ;;  %v7186_v19 = vld [vmem:[%s9252_s13 + $0x80] sm:$0xff]  }
0x2388   :  { %v5175_v3 = vadd.f32 %v8971_v42, %v5164_v49  ;;  %5191 = vadd.xlane.f32.xlu0 %v5180_v56  ;;  %6467 = vmatprep.subr.bf16.mxu0 %v7183_v51 }
0x238a   :  { %v9021_v61 = vadd.f32 %v5175_v3, %v8557_v6  ;;  %v7153_v6 = vld [vmem:[%s9250_s11 + $0xd0] ss:$8 sps:$4 sm:$0xff]  }
0x238b   :  { %5389 = vmatpush1.bf16.msra.mxu1 %v7153_v6  ;;  %6468 = vmatpush3.bf16.msra.mxu0 %v7184_v0 }
0x238c   :  { %5217 = vadd.xlane.f32.xlu0 %v5210_v11  ;;  %5193 = vadd.xlane.f32.xlu1 %v9021_v61 }
0x238d   :  { %5390 = vmatprep.subr.bf16.mxu1 %v7158_v48  ;;  %6469 = vmatprep.subr.bf16.mxu0 %v7185_v57 }
0x238f   :  { %5391 = vmatpush1.bf16.msra.mxu1 %v7156_v37  ;;  %6470 = vmatpush3.bf16.msra.mxu0 %v7186_v19 }
0x2390   :  { %5392 = vmatprep.subr.bf16.mxu1 %v7161_v55 }
0x2393   :  { %5393 = vmatpush1.bf16.msra.mxu1 %v7159_v10 }
0x2394   :  { %5394 = vmatprep.subr.bf16.mxu1 %v7164_v7 }
0x2397   :  { %5395 = vmatpush1.bf16.msra.mxu1 %v7162_v4 }
0x2398   :  { %5396 = vmatprep.subr.bf16.mxu1 %v7167_v23 }
0x239b   :  { %5397 = vmatpush1.bf16.msra.mxu1 %v7165_v29 }
0x239c   :  { %5398 = vmatprep.subr.bf16.mxu1 %v7170_v38 }
0x239f   :  { %5399 = vmatpush1.bf16.msra.mxu1 %v7168_v22 }
0x23a0   :  { %6948 = vmatprep.subr.bf16.mxu1 %v7451_v15 }
0x2411   :  { %v5192_v31 = vpop.xlane.xlu0 %5191 }
0x2412   :  { %v5200_v46 = vmul.f32 0.0078125, %v5192_v31 }
0x2414   :  { %v9067_v39 = vsub.f32 %v5180_v56, %v5200_v46 }
0x2415   :  { %v5218_v17 = vpop.xlane.xlu0 %5217 }
0x2416   :  { %v5228_v52 = vmul.f32 0.0078125, %v5218_v17  ;;  %v5212_v63 = vmul.f32 %v9067_v39, %v9067_v39 }
0x2418   :  { %v5234_v36 = vadd.f32 1e-05, %v5228_v52  ;;  %5221 = vadd.xlane.f32.xlu0 %v5212_v63 }
0x241a   :  { %7413 = vrsqrt.f32 %v5234_v36 }
0x241c   :  { %5195 = vadd.xlane.f32.xlu0 %v9073_v30 }
0x2427   :  { %v7414_v42 = vpop.eup %7413 }
0x2428   :  { %v5246_v60 = vmul.f32 %v7414_v42, %v5204_v26  ;;  %v5220_v26 = vpop.xlane.xlu1 %5219 }
0x2429   :  { %v5229_v49 = vmul.f32 0.0078125, %v5220_v26 }
0x242a   :  { %v5256_v43 = vmul.f32 %v9080_v50, %v5246_v60 }
0x242b   :  { %v5235_v56 = vadd.f32 1e-05, %v5229_v49 }
0x242c   :  { %v5266_v18 = vadd.f32 %v9086_v1, %v5256_v43 }
0x242d   :  { %7415 = vrsqrt.f32 %v5235_v56  ;;  %v5194_v56 = vpop.xlane.xlu1 %5193 }
0x242e   :  { %v5271_v40 = vpack.c.bf16 %v5266_v18, %v9090_v59 }
0x2430   :  { %5417 = vmatmul.mubr.bf16.vlgmr.msra.gmra.mxu1 %v5271_v40 }
0x2431   :  { %5426 = vmatprep.mubr.bf16.mxu1 %v7452_v34 }
0x243a   :  { %v7416_v2 = vpop.eup %7415 }
0x243b   :  { %v5247_v44 = vmul.f32 %v7416_v2, %v8999_v12  ;;  %v6123_v12 = vld [vmem:[%s9251_s12 + $0x1] ss:$2 sm:$0x3]  ;;  %v5201_v2 = vmul.f32 0.0078125, %v5194_v56 }
0x243c   :  { %v9157_v29 = vrot.slane %v6123_v12, %v7733_v16  ;;  %v9160_v38 = vrot.slane %v6123_v12, %v7724_v5 }
0x243d   :  { %v5257_v37 = vmul.f32 %v9080_v50, %v5247_v44 }
0x243f   :  { %v5267_v10 = vadd.f32 %v9086_v1, %v5257_v37 }
0x24a1   :  { %v5222_v3 = vpop.xlane.xlu0 %5221 }
0x24a2   :  { %v5230_v11 = vmul.f32 0.0078125, %v5222_v3 }
0x24a4   :  { %v5236_v21 = vadd.f32 1e-05, %v5230_v11 }
0x24a5   :  { %v5196_v54 = vpop.xlane.xlu0 %5195 }
0x24a6   :  { %7417 = vrsqrt.f32 %v5236_v21  ;;  %v5202_v28 = vmul.f32 0.0078125, %v5196_v54 }
0x24a8   :  { %v5208_v0 = vsub.f32 %v9073_v30, %v5202_v28 }
0x24aa   :  { %v5214_v19 = vmul.f32 %v5208_v0, %v5208_v0 }
0x24b3   :  { %v7418_v6 = vpop.eup %7417 }
0x24b4   :  { %v5248_v48 = vmul.f32 %v7418_v6, %v9067_v39 }
0x24b6   :  { %v5258_v55 = vmul.f32 %v9080_v50, %v5248_v48 }
0x24b8   :  { %v9149_v7 = vadd.f32 %v9086_v1, %v5258_v55  ;;  %v5207_v55 = vsub.f32 %v9021_v61, %v5201_v2  ;;  %v7187_v2 = vld [vmem:[%s9258_s19 + $0x38] sm:$0xff]  }
0x24b9   :  { %6949 = vmatpush3.bf16.msra.mxu1 %v7187_v2 }
0x24ba   :  { %v5272_v4 = vpack.c.bf16 %v9149_v7, %v5267_v10  ;;  %6950 = vmatprep.subr.bf16.mxu1 %v7451_v15 }
0x24bc   :  { %5427 = vmatmul.mubr.bf16.gmra.mxu1 %v5272_v4 }
0x24bd   :  { %5436 = vmatprep.mubr.bf16.mxu1 %v7452_v34 }
0x24f0   :  { %v5418_v23 = vpop.f32.mrf.mxu1 }
0x24f1   :  { %v5419_v31 = vadd.f32 %v5418_v23, %v9160_v38 }
0x24f2   :  { %v5420_v22 = vpop.f32.mrf.mxu1 }
0x24f3   :  { %v5421_v33 = vadd.f32 %v5420_v22, %v9157_v29  ;;  %v5447_v52 = vmax.f32 %v5419_v31, 0.0 }
0x24f4   :  { %v5422_v35 = vpop.f32.mrf.mxu1 }
0x24f5   :  { %v5423_v45 = vadd.f32 %v5422_v35, %v9160_v38  ;;  %v5448_v17 = vmax.f32 %v5421_v33, 0.0 }
0x24f6   :  { %v5424_v34 = vpop.f32.mrf.mxu1 }
0x24f7   :  { %v5425_v46 = vadd.f32 %v5424_v34, %v9157_v29  ;;  %v5449_v39 = vmax.f32 %v5423_v45, 0.0 }
0x24f9   :  { %v5450_v14 = vmax.f32 %v5425_v46, 0.0  ;;  %v5459_v63 = vpack.c.bf16 %v5449_v39, %v5447_v52 }
0x24fb   :  { %v5460_v16 = vpack.c.bf16 %v5450_v14, %v5448_v17 }
0x24fd   :  { %5631 = vmatprep.mubr.bf16.mxu0 %v5460_v16 }
0x24fe   :  { %5632 = vmatmul.mubr.bf16.vlgmr.msra.gmra.mxu0 %v5459_v63 }
0x257c   :  { %v5428_v5 = vpop.f32.mrf.mxu1 }
0x257d   :  { %v5429_v60 = vadd.f32 %v5428_v5, %v9160_v38 }
0x257e   :  { %v5430_v36 = vpop.f32.mrf.mxu1 }
0x257f   :  { %v5431_v27 = vadd.f32 %v5430_v36, %v9157_v29  ;;  %v5451_v41 = vmax.f32 %v5429_v60, 0.0 }
0x2580   :  { %v5432_v20 = vpop.f32.mrf.mxu1 }
0x2581   :  { %v5433_v42 = vadd.f32 %v5432_v20, %v9160_v38  ;;  %v5452_v40 = vmax.f32 %v5431_v27, 0.0 }
0x2582   :  { %v5434_v25 = vpop.f32.mrf.mxu1 }
0x2583   :  { %v5435_v43 = vadd.f32 %v5434_v25, %v9157_v29  ;;  %v5453_v18 = vmax.f32 %v5433_v42, 0.0 }
0x2585   :  { %v5454_v53 = vmax.f32 %v5435_v43, 0.0  ;;  %v5461_v13 = vpack.c.bf16 %v5453_v18, %v5451_v41 }
0x2587   :  { %v5462_v32 = vpack.c.bf16 %v5454_v53, %v5452_v40 }
0x2589   :  { %5638 = vmatprep.mubr.bf16.mxu0 %v5462_v32  ;;  %v6190_v32 = vld [vmem:[%s9255_s16 + $0x1] ss:$0 sm:$0xff] }
0x258a   :  { %5639 = vmatmul.mubr.bf16.gmra.mxu0 %v5461_v13 }
0x25be   :  { %v6471_v47 = vpop.f32.mrf.mxu0 }
0x25c0   :  { %v6472_v8 = vpop.f32.mrf.mxu0 }
0x25c1   :  { %v6473_v9 = vadd.f32 %v6472_v8, %v6471_v47 }
0x25c2   :  { %v6474_v24 = vpop.f32.mrf.mxu0 }
0x25c3   :  { %v5634_v58 = vadd.f32 %v6473_v9, %v6172_v62 }
0x25c4   :  { %v6475_v51 = vpop.f32.mrf.mxu0 }
0x25c5   :  { %v5652_v57 = vadd.f32 %v5634_v58, %v9090_v59  ;;  %v5213_v59 = vmul.f32 %v5207_v55, %v5207_v55 }
0x25c7   :  { %5656 = vadd.xlane.f32.xlu0 %v5652_v57 }
0x25cb   :  { %5225 = vadd.xlane.f32.xlu0 %v5214_v19 }
0x264a   :  { %v6477_v26 = vpop.f32.mrf.mxu0 }
0x264c   :  { %v6478_v49 = vpop.f32.mrf.mxu0 }
0x264e   :  { %v6480_v3 = vpop.f32.mrf.mxu0 }
0x2650   :  { %v5657_v11 = vpop.xlane.xlu0 %5656  ;;  %v6481_v21 = vpop.f32.mrf.mxu0 }
0x2651   :  { %v5660_v44 = vmul.f32 0.0078125, %v5657_v11  ;;  %v6482_v6 = vadd.f32 %v6481_v21, %v6480_v3 }
0x2653   :  { %v5662_v48 = vsub.f32 %v5652_v57, %v5660_v44  ;;  %v5643_v37 = vadd.f32 %v6482_v6, %v6172_v62 }
0x2654   :  { %v5226_v4 = vpop.xlane.xlu0 %5225 }
0x2655   :  { %v5664_v10 = vmul.f32 %v5662_v48, %v5662_v48  ;;  %v5653_v30 = vadd.f32 %v5643_v37, %v9149_v7  ;;  %v5232_v12 = vmul.f32 0.0078125, %v5226_v4  ;;  %v7193_v4 = vld [vmem:[%s9258_s19 + $0x8] sm:$0xff]  }
0x2657   :  { %5666 = vadd.xlane.f32.xlu0 %v5664_v10  ;;  %5658 = vadd.xlane.f32.xlu1 %v5653_v30  ;;  %v5238_v23 = vadd.f32 1e-05, %v5232_v12  ;;  %v7190_v10 = vld [vmem:[%s9258_s19 + $0x20] sm:$0xff]  }
0x2658   :  { %v7194_v12 = vld [vmem:[%s9258_s19] sm:$0xff]  }
0x2659   :  { %7419 = vrsqrt.f32 %v5238_v23 }
0x265b   :  { %5223 = vadd.xlane.f32.xlu1 %v5213_v59  ;;  %v7192_v59 = vld [vmem:[%s9258_s19 + $0x10] sm:$0xff]  }
0x2666   :  { %v7420_v61 = vpop.eup %7419 }
0x2667   :  { %v5250_v39 = vmul.f32 %v7420_v61, %v5208_v0  ;;  %v6191_v61 = vld [vmem:[%s9256_s17] ss:$0 sm:$0xff]  ;;  %s7429_s17 = scalar_lea.vmem %s5844_s14, 32 }
0x2668   :  { %p7430_p0 = scmp.ne.s32.totalorder %s5844_s14, %s7429_s17  ;;  %p7435_p2 = scmp.lt.s32.totalorder %s7429_s17, %s7429_s17 }
0x2669   :  { %v5260_v14 = vmul.f32 %v9080_v50, %v5250_v39 }
0x266a   :  { %p7436_p3 = por %p7435_p2, %p7434_p1 }
0x266b   :  { %v5270_v63 = vadd.f32 %v9086_v1, %v5260_v14 }
0x266c   :  { %p7437_p4 = pnand %p7436_p3, %p7430_p0 }
0x26e0   :  { %v5659_v22 = vpop.xlane.xlu1 %5658  ;;  %v5667_v36 = vpop.xlane.xlu0 %5666 }
0x26e1   :  { %v5661_v35 = vmul.f32 0.0078125, %v5659_v22  ;;  %v5670_v20 = vmul.f32 0.0078125, %v5667_v36 }
0x26e3   :  { %v5663_v33 = vsub.f32 %v5653_v30, %v5661_v35  ;;  %v5672_v27 = vadd.f32 1e-05, %v5670_v20  ;;  %v7191_v30 = vld [vmem:[%s9258_s19 + $0x18] sm:$0xff]  }
0x26e4   :  { %v5224_v45 = vpop.xlane.xlu1 %5223 }
0x26e5   :  { %v5231_v31 = vmul.f32 0.0078125, %v5224_v45  ;;  %v5665_v34 = vmul.f32 %v5663_v33, %v5663_v33 }
0x26e7   :  { %v5237_v46 = vadd.f32 1e-05, %v5231_v31  ;;  %5668 = vadd.xlane.f32.xlu1 %v5665_v34 }
0x26e9   :  { %7421 = vrsqrt.f32 %v5237_v46 }
0x26ea   :  { %7423 = vrsqrt.f32 %v5672_v27 }
0x26f6   :  { %v7422_v7 = vpop.eup %7421 }
0x26f7   :  { %v5249_v17 = vmul.f32 %v7422_v7, %v5207_v55  ;;  %v7424_v43 = vpop.eup %7423  ;;  %v7189_v55 = vld [vmem:[%s9258_s19 + $0x28] sm:$0xff]  }
0x26f8   :  { %v5676_v18 = vmul.f32 %v7424_v43, %v5662_v48 }
0x26f9   :  { %v5259_v52 = vmul.f32 %v9080_v50, %v5249_v17 }
0x26fb   :  { %v5269_v16 = vadd.f32 %v9086_v1, %v5259_v52  ;;  %v6189_v1 = vld [vmem:[%s9254_s15 + $0x1] ss:$0 sm:$0xff]  ;;  %v6193_v52 = vld [vmem:[%s9259_s20] ss:$0 sm:$0xff] }
0x26fc   :  { %v5682_v53 = vmul.f32 %v6189_v1, %v5676_v18 }
0x26fd   :  { %v5273_v5 = vpack.c.bf16 %v5270_v63, %v5269_v16 }
0x26fe   :  { %v5688_v54 = vadd.f32 %v6190_v32, %v5682_v53 }
0x26ff   :  { %5437 = vmatmul.mubr.bf16.gmra.mxu1 %v5273_v5 }
0x2700   :  { %6964 = vmatprep.mubr.msk.bf16.mxu1 %vm7453_vm1, %v7451_v15 }
0x2770   :  { %v5669_v42 = vpop.xlane.xlu1 %5668 }
0x2771   :  { %v5671_v60 = vmul.f32 0.0078125, %v5669_v42 }
0x2773   :  { %v5673_v25 = vadd.f32 1e-05, %v5671_v60 }
0x2775   :  { %7425 = vrsqrt.f32 %v5673_v25 }
0x2782   :  { %v7426_v50 = vpop.eup %7425 }
0x2783   :  { %v5677_v40 = vmul.f32 %v7426_v50, %v5663_v33 }
0x2785   :  { %v5683_v41 = vmul.f32 %v6189_v1, %v5677_v40 }
0x2787   :  { %v5689_v13 = vadd.f32 %v6190_v32, %v5683_v41 }
0x2789   :  { %v5691_v47 = vrot.slane %v5689_v13, 7 }
0x278b   :  { %v5693_v62 = vsel %vm169_vm2, %v5688_v54, %v5691_v47 }
0x278c   :  { %v5697_v8 = vsel %vm5696_vm7, %v5693_v62, 0.0 }
0x278d   :  { %5698 = vadd.xlane.f32.xlu1 %v5697_v8 }
0x27bf   :  { %v5438_v28 = vpop.f32.mrf.mxu1 }
0x27c0   :  { %v5439_v0 = vadd.f32 %v5438_v28, %v9160_v38 }
0x27c1   :  { %v5440_v9 = vpop.f32.mrf.mxu1 }
0x27c2   :  { %v5441_v58 = vadd.f32 %v5440_v9, %v9157_v29  ;;  %v5455_v3 = vmax.f32 %v5439_v0, 0.0 }
0x27c3   :  { %v5442_v24 = vpop.f32.mrf.mxu1 }
0x27c4   :  { %v5443_v51 = vadd.f32 %v5442_v24, %v9160_v38  ;;  %v5456_v49 = vmax.f32 %v5441_v58, 0.0  ;;  %v7188_v38 = vld [vmem:[%s9258_s19 + $0x30] sm:$0xff]  }
0x27c5   :  { %v5444_v57 = vpop.f32.mrf.mxu1  ;;  %6951 = vmatpush3.bf16.msra.mxu1 %v7188_v38 }
0x27c6   :  { %v5445_v19 = vadd.f32 %v5444_v57, %v9157_v29  ;;  %v5457_v26 = vmax.f32 %v5443_v51, 0.0  ;;  %6952 = vmatprep.subr.bf16.mxu1 %v7451_v15 }
0x27c8   :  { %v5458_v56 = vmax.f32 %v5445_v19, 0.0  ;;  %v5463_v21 = vpack.c.bf16 %v5457_v26, %v5455_v3 }
0x27c9   :  { %6953 = vmatpush3.bf16.msra.mxu1 %v7189_v55 }
0x27ca   :  { %v5464_v11 = vpack.c.bf16 %v5458_v56, %v5456_v49  ;;  %6954 = vmatprep.subr.bf16.mxu1 %v7451_v15 }
0x27cc   :  { %5645 = vmatprep.mubr.bf16.mxu0 %v5464_v11 }
0x27cd   :  { %5646 = vmatmul.mubr.bf16.gmra.mxu0 %v5463_v21  ;;  %6955 = vmatpush3.bf16.msra.mxu1 %v7190_v10 }
0x27ce   :  { %6956 = vmatprep.subr.bf16.mxu1 %v7451_v15 }
0x27d1   :  { %6957 = vmatpush3.bf16.msra.mxu1 %v7191_v30 }
0x27d2   :  { %6958 = vmatprep.subr.bf16.mxu1 %v7451_v15 }
0x27d5   :  { %6959 = vmatpush3.bf16.msra.mxu1 %v7192_v59 }
0x27d6   :  { %6960 = vmatprep.subr.bf16.mxu1 %v7451_v15 }
0x27d9   :  { %6961 = vmatpush3.bf16.msra.mxu1 %v7193_v4 }
0x27da   :  { %6962 = vmatprep.subr.bf16.mxu1 %v7451_v15  ;;  %v6192_v15 = vld [vmem:[%s9257_s18] ss:$0 sm:$0xff] }
0x27dd   :  { %6963 = vmatpush3.bf16.msra.mxu1 %v7194_v12 }
0x2816   :  { %v5699_v44 = vpop.xlane.xlu1 %5698 }
0x2817   :  { %v5700_v29 = vmul.f32 0.0078125, %v5699_v44 }
0x2819   :  { %v5701_v6 = vsub.f32 %v5693_v62, %v5700_v29 }
0x281b   :  { %v5702_v48 = vmul.f32 %v5701_v6, %v5701_v6 }
0x281d   :  { %v5703_v37 = vsel %vm5696_vm7, %v5702_v48, 0.0 }
0x281e   :  { %5704 = vadd.xlane.f32.xlu0 %v5703_v37 }
0x288d   :  { %v6483_v23 = vpop.f32.mrf.mxu0 }
0x288f   :  { %v6484_v22 = vpop.f32.mrf.mxu0 }
0x2891   :  { %v6486_v35 = vpop.f32.mrf.mxu0 }
0x2893   :  { %v6487_v33 = vpop.f32.mrf.mxu0 }
0x28a7   :  { %v5705_v45 = vpop.xlane.xlu0 %5704 }
0x28a8   :  { %v5706_v31 = vmul.f32 0.0078125, %v5705_v45 }
0x28aa   :  { %v5707_v34 = vadd.f32 1e-05, %v5706_v31 }
0x28ac   :  { %7427 = vrsqrt.f32 %v5707_v34 }
0x28b9   :  { %v7428_v46 = vpop.eup %7427 }
0x28ba   :  { %v5709_v39 = vmul.f32 %v7428_v46, %v5701_v6 }
0x28bc   :  { %v5716_v7 = vmul.f32 %v6191_v61, %v5709_v39 }
0x28be   :  { %v5723_v17 = vadd.f32 %v6192_v15, %v5716_v7 }
0x28c0   :  { %v5724_v14 = vpack.c.bf16 %v5723_v17, %v5723_v17 }
0x28c2   :  { %6965 = vmatmul.mubr.bf16.vlgmr.msra.gmra.mxu1 %v5724_v14 }
0x2982   :  { %v5830_v16 = vpop.f32.mrf.mxu1 }
0x2983   :  { %v5831_v63 = vadd.f32 %v6193_v52, %v5830_v16 }
0x2984   :  { %v6966_v5 = vpop.f32.mrf.mxu1 }
0x2985   :  { %5836 = vst [vmem:[#allocation2] sm:$0x3] %v5831_v63 }
0x2986   :  { %v5833_v36 = vpop.f32.mrf.mxu1 }
0x2987   :  { %7440 = shalt.err (!%p7437_p4)
}
0x2988   :  { %5846 = dma.vmem_to_hbm [thread:$0]  %s5844_s14, 32, %s9260_s21, [#allocation3]   ;;  %v6967_v20 = vpop.f32.mrf.mxu1 }
0x2989   :  { %7449 = dma.done.wait [#allocation3], 32  }
0x298a   :  { %7450 = vsyncadd [#allocation3], 4294967264 }
0x298b   :  { %5850 = vsyncpa [#allocation3], 1 }

</bundles_post_ra>
